<compile_context>
chip_gen: v6e
topology: v6e:2x2x1
jax: 0.10.0
libtpu: 0.0.40
codegen_flags: <defaults>
</compile_context>

<pallas_src>
import functools

import jax
import jax.numpy as jnp
from jax.experimental import pallas as pl
from jax.experimental.pallas import tpu as pltpu

EPS = 1e-5  # nn.LayerNorm default eps


# ----------------------------- in-kernel helpers -----------------------------

def _layernorm(x, g, b):
    mu = jnp.mean(x, axis=-1, keepdims=True)
    var = jnp.mean((x - mu) ** 2, axis=-1, keepdims=True)
    return (x - mu) * jax.lax.rsqrt(var + EPS) * g + b


def _gelu(x):
    # tanh-based GELU (transcendental rides the EUP slot).
    c = 0.7978845608028654  # sqrt(2/pi)
    return 0.5 * x * (1.0 + jnp.tanh(c * (x + 0.044715 * (x * x * x))))


# --------------------------------- kernel ------------------------------------

def vit_fused_kernel(
    # inputs (per-batch-tile / shared / per-layer)
    patches_ref, cls_pos_ref, pos_ref,
    pe_g1_ref, pe_b1_ref, pe_w_ref, pe_bw_ref, pe_g2_ref, pe_b2_ref,
    ln1_g_ref, ln1_b_ref, wqkv_ref, wo_ref, bo_ref,
    ln2_g_ref, ln2_b_ref, w1_ref, b1_ref, w2_ref, b2_ref,
    fin_g_ref, fin_b_ref, hw1_ref, hb1_ref, hw2_ref, hb2_ref,
    # output + scratch
    o_ref, seq_ref,
    *, heads, dim_head, n_true,
):
    d = pl.program_id(1)
    depth = pl.num_programs(1)
    bt, n_tok, dim = seq_ref.shape
    inner = heads * dim_head
    bf16 = jnp.bfloat16

    # ---- first layer only: patch embedding + CLS token + positional emb ----
    @pl.when(d == 0)
    def _embed():
        _, P, patch_dim = patches_ref.shape
        p2 = patches_ref[...].reshape(bt * P, patch_dim)
        p2 = _layernorm(p2, pe_g1_ref[...], pe_b1_ref[...])
        tok = jnp.dot(p2.astype(bf16), pe_w_ref[...],
                      preferred_element_type=jnp.float32) + pe_bw_ref[...]
        tok = _layernorm(tok, pe_g2_ref[...], pe_b2_ref[...])
        pos = pos_ref[...]                                   # (1, n_tok, dim)
        tok = tok.reshape(bt, P, dim) + pos[:, 1:1 + P, :]
        # rows: 0 <- cls_token + pos[0]; 1..P <- patch embeds; rest <- zeros
        seq_ref[:, 1:1 + P, :] = tok
        seq_ref[:, 0:1, :] = jnp.broadcast_to(cls_pos_ref[...], (bt, 1, dim))
        if n_tok > P + 1:
            seq_ref[:, P + 1:, :] = jnp.zeros((bt, n_tok - P - 1, dim),
                                              jnp.float32)

    # ---- transformer layer `d`: pre-LN multi-head attention + residual ----
    x2 = seq_ref[...].reshape(bt * n_tok, dim)               # f32
    xn = _layernorm(x2, ln1_g_ref[...], ln1_b_ref[...]).astype(bf16)

    # fused, lane-dense QKV projection (softmax scale folded into q columns)
    qkv = jnp.dot(xn, wqkv_ref[...], preferred_element_type=jnp.float32)
    qkv = qkv.reshape(bt, n_tok, 3 * inner)
    q = qkv[:, :, 0:inner].astype(bf16)
    k = qkv[:, :, inner:2 * inner].astype(bf16)
    v = qkv[:, :, 2 * inner:3 * inner].astype(bf16)

    head_outs = []
    for h in range(heads):                       # static unroll over heads
        sl = slice(h * dim_head, (h + 1) * dim_head)
        qh, kh, vh = q[:, :, sl], k[:, :, sl], v[:, :, sl]
        dots = jnp.einsum('bqd,bkd->bqk', qh, kh,
                          preferred_element_type=jnp.float32)
        if n_tok > n_true:                       # mask padded key columns
            col = jax.lax.broadcasted_iota(jnp.int32, dots.shape, 2)
            dots = jnp.where(col < n_true, dots, -1e30)
        m = jnp.max(dots, axis=-1, keepdims=True)
        e = jnp.exp(dots - m)
        denom = jnp.sum(e, axis=-1, keepdims=True)
        oh = jnp.einsum('bqk,bkd->bqd', e.astype(bf16), vh,
                        preferred_element_type=jnp.float32)
        head_outs.append(oh * (1.0 / denom))     # normalize AFTER attn@v
    out = jnp.concatenate(head_outs, axis=-1)    # (bt, n_tok, inner)

    # fused output projection: K = inner (full MXU depth), lane-dense output
    out2 = out.reshape(bt * n_tok, inner).astype(bf16)
    proj = jnp.dot(out2, wo_ref[...], preferred_element_type=jnp.float32)
    x2 = x2 + proj + bo_ref[...]

    # ---- FeedForward: pre-LN MLP + residual ----
    h2 = _layernorm(x2, ln2_g_ref[...], ln2_b_ref[...]).astype(bf16)
    h2 = jnp.dot(h2, w1_ref[...], preferred_element_type=jnp.float32) + b1_ref[...]
    h2 = _gelu(h2).astype(bf16)
    h2 = jnp.dot(h2, w2_ref[...], preferred_element_type=jnp.float32) + b2_ref[...]
    x2 = x2 + h2
    seq_ref[...] = x2.reshape(bt, n_tok, dim)

    # ---- last layer only: final LN, CLS pool, mlp_head -> logits ----
    # pool='cls': final LayerNorm is per-token, so slice-then-norm == norm-then-slice.
    @pl.when(d == depth - 1)
    def _head():
        cls = x2.reshape(bt, n_tok, dim)[:, 0, :]            # (bt, dim)
        cls = _layernorm(cls, fin_g_ref[...], fin_b_ref[...])
        h1 = jnp.dot(cls.astype(bf16), hw1_ref[...],
                     preferred_element_type=jnp.float32) + hb1_ref[...]
        h1 = _gelu(h1).astype(bf16)
        logits = jnp.dot(h1, hw2_ref[...],
                         preferred_element_type=jnp.float32) + hb2_ref[...]
        o_ref[...] = logits[:, None, :]


# ------------------------------ parameters -----------------------------------

def init_vit_params(key, *, image_size, patch_size, channels, dim, depth,
                    heads, dim_head, mlp_dim, num_classes):
    num_patches = (image_size // patch_size) * (image_size // patch_size)
    patch_dim = channels * patch_size * patch_size
    inner = heads * dim_head
    scale = float(dim_head) ** -0.5
    keys = iter(jax.random.split(key, 32))
    bf16 = jnp.bfloat16

    def nrm(shape, dtype=jnp.float32, std=0.02):
        return (std * jax.random.normal(next(keys), shape, jnp.float32)).astype(dtype)

    # Fused QKV weights: (depth, dim, 3*inner).  From a PyTorch checkpoint:
    # to_qkv.weight (3*inner, dim) -> W.T, with dim_head**-0.5 multiplied into
    # the first `inner` columns (q).  to_out Linear (dim, inner) -> W.T.
    wq = scale * 0.02 * jax.random.normal(next(keys), (depth, dim, inner), jnp.float32)
    wk = 0.02 * jax.random.normal(next(keys), (depth, dim, inner), jnp.float32)
    wv = 0.02 * jax.random.normal(next(keys), (depth, dim, inner), jnp.float32)

    p = {
        # patch embedding: LN -> Linear -> LN
        "pe_ln1_g": jnp.ones((1, patch_dim), jnp.float32),
        "pe_ln1_b": jnp.zeros((1, patch_dim), jnp.float32),
        "pe_w": nrm((patch_dim, dim), bf16),
        "pe_b": nrm((1, dim)),
        "pe_ln2_g": jnp.ones((1, dim), jnp.float32),
        "pe_ln2_b": jnp.zeros((1, dim), jnp.float32),
        "pos_emb": nrm((1, num_patches + 1, dim), std=1.0),
        "cls_tok": nrm((1, 1, dim), std=1.0),
        # final transformer LayerNorm + mlp_head
        "final_ln_g": jnp.ones((1, dim), jnp.float32),
        "final_ln_b": jnp.zeros((1, dim), jnp.float32),
        "head_w1": nrm((dim, mlp_dim), bf16),
        "head_b1": nrm((1, mlp_dim)),
        "head_w2": nrm((mlp_dim, num_classes), bf16),
        "head_b2": nrm((1, num_classes)),
        # transformer layers, stacked along a leading depth axis
        "ln1_g": jnp.ones((depth, 1, dim), jnp.float32),
        "ln1_b": jnp.zeros((depth, 1, dim), jnp.float32),
        "wqkv": jnp.concatenate([wq, wk, wv], axis=-1).astype(bf16),
        "wo": nrm((depth, inner, dim), bf16),
        "bo": nrm((depth, 1, dim)),
        "ln2_g": jnp.ones((depth, 1, dim), jnp.float32),
        "ln2_b": jnp.zeros((depth, 1, dim), jnp.float32),
        "ff_w1": nrm((depth, dim, mlp_dim), bf16),
        "ff_b1": nrm((depth, 1, mlp_dim)),
        "ff_w2": nrm((depth, mlp_dim, dim), bf16),
        "ff_b2": nrm((depth, 1, dim)),
    }
    return p


# --------------------------------- forward ------------------------------------

def vit_forward(params, x, *, patch_size, heads, dim_head, max_batch_tile=8):
    # x: (B, C, H, W) NCHW, as in the PyTorch module.
    B, C, H, W = x.shape
    ph = pw = patch_size
    nh, nw = H // ph, W // pw
    P = nh * nw
    patch_dim = C * ph * pw

    # einops 'b c (h p1) (w p2) -> b (h w) (p1 p2 c)'  (pure layout glue; no
    # dummy-CLS concatenate — the kernel writes the CLS / padding rows itself)
    patches = x.reshape(B, C, nh, ph, nw, pw).transpose(0, 2, 4, 3, 5, 1)
    patches = patches.reshape(B, P, patch_dim)

    dim = params["pe_w"].shape[1]
    depth = params["wqkv"].shape[0]
    inner = heads * dim_head
    mlp_dim = params["ff_w1"].shape[2]
    num_classes = params["head_w2"].shape[1]

    n_true = P + 1
    # TODO(synk): pad to a multiple of 128 at production sizes (lane-dense dots).
    n_pad = ((n_true + 7) // 8) * 8

    pos = params["pos_emb"][:, :n_true]
    pos = jnp.pad(pos, ((0, 0), (0, n_pad - n_true), (0, 0)))
    cls_pos = params["cls_tok"] + params["pos_emb"][:, :1]    # (1, 1, dim)

    # Batch tile: amortize per-layer weight DMA across B_t images per step.
    # (~4-8 on v5e/v6e; keep ~2-4 on v7x's 64 MiB VMEM.)  Even batch-grid
    # extents let megacore (v7x) shard batch tiles across both TensorCores.
    bt = min(B, max_batch_tile)
    while B % bt:
        bt -= 1

    def fixed(shape):
        # TODO(synk): pipeline_mode=pl.Buffered(1) on these depth-invariant
        # blocks would halve their VMEM footprint (most useful on v7x).
        n = len(shape)
        return pl.BlockSpec(shape, lambda *_: (0,) * n)

    def per_layer(tail):
        return pl.BlockSpec((None,) + tail,
                            lambda b, d: (d,) + (0,) * len(tail))

    in_specs = [
        pl.BlockSpec((bt, P, patch_dim), lambda b, d: (b, 0, 0)),     # patches
        fixed((1, 1, dim)),                                           # cls + pos[0]
        fixed((1, n_pad, dim)),                                       # pos emb (padded)
        fixed((1, patch_dim)), fixed((1, patch_dim)),                 # patch LN1
        fixed((patch_dim, dim)), fixed((1, dim)),                     # patch Linear
        fixed((1, dim)), fixed((1, dim)),                             # patch LN2
        per_layer((1, dim)), per_layer((1, dim)),                     # attn LN
        per_layer((dim, 3 * inner)),                                  # wqkv (scaled q)
        per_layer((inner, dim)), per_layer((1, dim)),                 # wo / bo
        per_layer((1, dim)), per_layer((1, dim)),                     # ffn LN
        per_layer((dim, mlp_dim)), per_layer((1, mlp_dim)),           # ffn w1/b1
        per_layer((mlp_dim, dim)), per_layer((1, dim)),               # ffn w2/b2
        fixed((1, dim)), fixed((1, dim)),                             # final LN
        fixed((dim, mlp_dim)), fixed((1, mlp_dim)),                   # head w1/b1
        fixed((mlp_dim, num_classes)), fixed((1, num_classes)),       # head w2/b2
    ]

    # Advisory cost estimate so XLA can schedule around the fused custom call.
    param_bytes = sum(int(v.size) * v.dtype.itemsize for v in params.values())
    flops_layer = (2 * n_pad * dim * 3 * inner                # qkv projection
                   + 4 * heads * n_pad * n_pad * dim_head     # dots + attn@v
                   + 2 * n_pad * inner * dim                  # out projection
                   + 4 * n_pad * dim * mlp_dim)               # FFN
    flops = B * (depth * flops_layer
                 + 2 * P * patch_dim * dim
                 + 2 * (dim * mlp_dim + mlp_dim * num_classes))
    transc = B * (depth * (heads * n_pad * n_pad + n_pad * mlp_dim) + mlp_dim)
    bytes_accessed = (param_bytes * max(B // bt, 1)
                      + int(patches.size) * 4 + B * num_classes * 4)
    cost = pl.CostEstimate(flops=int(flops), transcendentals=int(transc),
                           bytes_accessed=int(bytes_accessed))

    kernel = functools.partial(vit_fused_kernel, heads=heads,
                               dim_head=dim_head, n_true=n_true)

    logits = pl.pallas_call(
        kernel,
        grid=(B // bt, depth),
        in_specs=in_specs,
        out_specs=pl.BlockSpec((bt, 1, num_classes), lambda b, d: (b, 0, 0)),
        out_shape=jax.ShapeDtypeStruct((B, 1, num_classes), jnp.float32),
        scratch_shapes=[pltpu.VMEM((bt, n_pad, dim), jnp.float32)],   # resident seq
        compiler_params=pltpu.CompilerParams(
            dimension_semantics=("parallel", "arbitrary"),
            # 64 MiB: headroom on v5e/v6e (128 MiB physical); tiny usage here.
            # TODO(synk): re-budget <= ~50 MiB working set for v7x production dims.
            vmem_limit_bytes=64 * 1024 * 1024),
        cost_estimate=cost,
    )(patches, cls_pos, pos,
      params["pe_ln1_g"], params["pe_ln1_b"], params["pe_w"], params["pe_b"],
      params["pe_ln2_g"], params["pe_ln2_b"],
      params["ln1_g"], params["ln1_b"], params["wqkv"], params["wo"], params["bo"],
      params["ln2_g"], params["ln2_b"], params["ff_w1"], params["ff_b1"],
      params["ff_w2"], params["ff_b2"],
      params["final_ln_g"], params["final_ln_b"],
      params["head_w1"], params["head_b1"], params["head_w2"], params["head_b2"])
    return logits[:, 0, :]


# ----------------------------------- main -------------------------------------

if __name__ == "__main__":
    cfg = dict(image_size=16, patch_size=4, channels=3, dim=32, depth=2,
               heads=4, dim_head=8, mlp_dim=64, num_classes=10)

    key = jax.random.PRNGKey(0)
    kp, kx = jax.random.split(key)
    params = init_vit_params(kp, **cfg)
    x = jax.random.normal(
        kx, (2, cfg["channels"], cfg["image_size"], cfg["image_size"]),
        jnp.float32)

    fwd = jax.jit(functools.partial(vit_forward, patch_size=cfg["patch_size"],
                                    heads=cfg["heads"],
                                    dim_head=cfg["dim_head"]))
    out = fwd(params, x)
    jax.block_until_ready(out)
    assert out.shape == (2, cfg["num_classes"]), out.shape
    assert bool(jnp.all(jnp.isfinite(out)))
    print("KERNEL_OK")
</pallas_src>

<mosaic_0001>
module attributes {stable_mosaic.version = 11 : i64} {
  func.func @vit_fused_kernel(%arg0: i32, %arg1: i32, %arg2: memref<2x16x48xf32, #tpu.memory_space<vmem>>, %arg3: memref<1x1x32xf32, #tpu.memory_space<vmem>>, %arg4: memref<1x24x32xf32, #tpu.memory_space<vmem>>, %arg5: memref<1x48xf32, #tpu.memory_space<vmem>>, %arg6: memref<1x48xf32, #tpu.memory_space<vmem>>, %arg7: memref<48x32xbf16, #tpu.memory_space<vmem>>, %arg8: memref<1x32xf32, #tpu.memory_space<vmem>>, %arg9: memref<1x32xf32, #tpu.memory_space<vmem>>, %arg10: memref<1x32xf32, #tpu.memory_space<vmem>>, %arg11: memref<1x1x32xf32, #tpu.memory_space<vmem>>, %arg12: memref<1x1x32xf32, #tpu.memory_space<vmem>>, %arg13: memref<1x32x96xbf16, #tpu.memory_space<vmem>>, %arg14: memref<1x32x32xbf16, #tpu.memory_space<vmem>>, %arg15: memref<1x1x32xf32, #tpu.memory_space<vmem>>, %arg16: memref<1x1x32xf32, #tpu.memory_space<vmem>>, %arg17: memref<1x1x32xf32, #tpu.memory_space<vmem>>, %arg18: memref<1x32x64xbf16, #tpu.memory_space<vmem>>, %arg19: memref<1x1x64xf32, #tpu.memory_space<vmem>>, %arg20: memref<1x64x32xbf16, #tpu.memory_space<vmem>>, %arg21: memref<1x1x32xf32, #tpu.memory_space<vmem>>, %arg22: memref<1x32xf32, #tpu.memory_space<vmem>>, %arg23: memref<1x32xf32, #tpu.memory_space<vmem>>, %arg24: memref<32x64xbf16, #tpu.memory_space<vmem>>, %arg25: memref<1x64xf32, #tpu.memory_space<vmem>>, %arg26: memref<64x10xbf16, #tpu.memory_space<vmem>>, %arg27: memref<1x10xf32, #tpu.memory_space<vmem>>, %arg28: memref<2x1x10xf32, #tpu.memory_space<vmem>>, %arg29: memref<2x24x32xf32, #tpu.memory_space<vmem>>) attributes {dimension_semantics = [#tpu.dimension_semantics<parallel>, #tpu.dimension_semantics<arbitrary>], iteration_bounds = array<i64: 1, 2>, scalar_prefetch = 0 : i64, scratch_operands = 1 : i64, tpu.core_type = #tpu.core_type<tc>, window_params = [{transform_indices = @transform_0, window_bounds = array<i64: 2, 16, 48>}, {pipeline_mode = #tpu.pipeline_mode<synchronous>, transform_indices = @transform_1, window_bounds = array<i64: 1, 1, 32>}, {pipeline_mode = #tpu.pipeline_mode<synchronous>, transform_indices = @transform_2, window_bounds = array<i64: 1, 24, 32>}, {pipeline_mode = #tpu.pipeline_mode<synchronous>, transform_indices = @transform_3, window_bounds = array<i64: 1, 48>}, {pipeline_mode = #tpu.pipeline_mode<synchronous>, transform_indices = @transform_4, window_bounds = array<i64: 1, 48>}, {pipeline_mode = #tpu.pipeline_mode<synchronous>, transform_indices = @transform_5, window_bounds = array<i64: 48, 32>}, {pipeline_mode = #tpu.pipeline_mode<synchronous>, transform_indices = @transform_6, window_bounds = array<i64: 1, 32>}, {pipeline_mode = #tpu.pipeline_mode<synchronous>, transform_indices = @transform_7, window_bounds = array<i64: 1, 32>}, {pipeline_mode = #tpu.pipeline_mode<synchronous>, transform_indices = @transform_8, window_bounds = array<i64: 1, 32>}, {transform_indices = @transform_9, window_bounds = array<i64: 1, 1, 32>}, {transform_indices = @transform_10, window_bounds = array<i64: 1, 1, 32>}, {transform_indices = @transform_11, window_bounds = array<i64: 1, 32, 96>}, {transform_indices = @transform_12, window_bounds = array<i64: 1, 32, 32>}, {transform_indices = @transform_13, window_bounds = array<i64: 1, 1, 32>}, {transform_indices = @transform_14, window_bounds = array<i64: 1, 1, 32>}, {transform_indices = @transform_15, window_bounds = array<i64: 1, 1, 32>}, {transform_indices = @transform_16, window_bounds = array<i64: 1, 32, 64>}, {transform_indices = @transform_17, window_bounds = array<i64: 1, 1, 64>}, {transform_indices = @transform_18, window_bounds = array<i64: 1, 64, 32>}, {transform_indices = @transform_19, window_bounds = array<i64: 1, 1, 32>}, {pipeline_mode = #tpu.pipeline_mode<synchronous>, transform_indices = @transform_20, window_bounds = array<i64: 1, 32>}, {pipeline_mode = #tpu.pipeline_mode<synchronous>, transform_indices = @transform_21, window_bounds = array<i64: 1, 32>}, {pipeline_mode = #tpu.pipeline_mode<synchronous>, transform_indices = @transform_22, window_bounds = array<i64: 32, 64>}, {pipeline_mode = #tpu.pipeline_mode<synchronous>, transform_indices = @transform_23, window_bounds = array<i64: 1, 64>}, {pipeline_mode = #tpu.pipeline_mode<synchronous>, transform_indices = @transform_24, window_bounds = array<i64: 64, 10>}, {pipeline_mode = #tpu.pipeline_mode<synchronous>, transform_indices = @transform_25, window_bounds = array<i64: 1, 10>}, {transform_indices = @transform_26, window_bounds = array<i64: 2, 1, 10>}]} {
    %c0_i32 = arith.constant 0 : i32
    %0 = arith.cmpi eq, %arg1, %c0_i32 : i32
    %1 = arith.extui %0 : i1 to i32
    %c0_i32_0 = arith.constant 0 : i32
    %2 = arith.cmpi ne, %1, %c0_i32_0 : i32
    scf.if %2 {
      %c0_84 = arith.constant 0 : index
      %c0_85 = arith.constant 0 : index
      %c0_86 = arith.constant 0 : index
      %202 = vector.load %arg2[%c0_84, %c0_85, %c0_86] : memref<2x16x48xf32, #tpu.memory_space<vmem>>, vector<2x16x48xf32>
      %203 = vector.shape_cast %202 : vector<2x16x48xf32> to vector<32x48xf32>
      %c0_87 = arith.constant 0 : index
      %c0_88 = arith.constant 0 : index
      %204 = vector.load %arg5[%c0_87, %c0_88] : memref<1x48xf32, #tpu.memory_space<vmem>>, vector<1x48xf32>
      %c0_89 = arith.constant 0 : index
      %c0_90 = arith.constant 0 : index
      %205 = vector.load %arg6[%c0_89, %c0_90] : memref<1x48xf32, #tpu.memory_space<vmem>>, vector<1x48xf32>
      %cst_91 = arith.constant dense<0.000000e+00> : vector<32xf32>
      %206 = vector.multi_reduction <add>, %203, %cst_91 [1] : vector<32x48xf32> to vector<32xf32>
      %207 = vector.shape_cast %206 : vector<32xf32> to vector<32x1xf32>
      %cst_92 = arith.constant 4.800000e+01 : f32
      %208 = vector.broadcast %cst_92 : f32 to vector<32x1xf32>
      %209 = arith.divf %207, %208 : vector<32x1xf32>
      %210 = vector.broadcast %209 : vector<32x1xf32> to vector<32x48xf32>
      %211 = arith.subf %203, %210 : vector<32x48xf32>
      %212 = arith.mulf %211, %211 : vector<32x48xf32>
      %cst_93 = arith.constant dense<0.000000e+00> : vector<32xf32>
      %213 = vector.multi_reduction <add>, %212, %cst_93 [1] : vector<32x48xf32> to vector<32xf32>
      %214 = vector.shape_cast %213 : vector<32xf32> to vector<32x1xf32>
      %cst_94 = arith.constant 4.800000e+01 : f32
      %215 = vector.broadcast %cst_94 : f32 to vector<32x1xf32>
      %216 = arith.divf %214, %215 : vector<32x1xf32>
      %217 = vector.broadcast %209 : vector<32x1xf32> to vector<32x48xf32>
      %218 = arith.subf %203, %217 : vector<32x48xf32>
      %cst_95 = arith.constant 9.99999974E-6 : f32
      %219 = vector.broadcast %cst_95 : f32 to vector<32x1xf32>
      %220 = arith.addf %216, %219 : vector<32x1xf32>
      %221 = math.rsqrt %220 : vector<32x1xf32>
      %222 = vector.broadcast %221 : vector<32x1xf32> to vector<32x48xf32>
      %223 = arith.mulf %218, %222 : vector<32x48xf32>
      %224 = vector.broadcast %204 : vector<1x48xf32> to vector<32x48xf32>
      %225 = arith.mulf %223, %224 : vector<32x48xf32>
      %226 = vector.broadcast %205 : vector<1x48xf32> to vector<32x48xf32>
      %227 = arith.addf %225, %226 : vector<32x48xf32>
      %228 = arith.truncf %227 : vector<32x48xf32> to vector<32x48xbf16>
      %c0_96 = arith.constant 0 : index
      %c0_97 = arith.constant 0 : index
      %229 = vector.load %arg7[%c0_96, %c0_97] : memref<48x32xbf16, #tpu.memory_space<vmem>>, vector<48x32xbf16>
      %cst_98 = arith.constant dense<0.000000e+00> : vector<32x32xf32>
      %230 = tpu.matmul %228, %229, %cst_98 {dimension_numbers = #tpu.dot_dimension_numbers<[1], [0], [0], [1], [0, 0, 1, 1], [], []>} : vector<32x48xbf16>, vector<48x32xbf16>, vector<32x32xf32> -> vector<32x32xf32>
      %c0_99 = arith.constant 0 : index
      %c0_100 = arith.constant 0 : index
      %231 = vector.load %arg8[%c0_99, %c0_100] : memref<1x32xf32, #tpu.memory_space<vmem>>, vector<1x32xf32>
      %232 = vector.broadcast %231 : vector<1x32xf32> to vector<32x32xf32>
      %233 = arith.addf %230, %232 : vector<32x32xf32>
      %c0_101 = arith.constant 0 : index
      %c0_102 = arith.constant 0 : index
      %234 = vector.load %arg9[%c0_101, %c0_102] : memref<1x32xf32, #tpu.memory_space<vmem>>, vector<1x32xf32>
      %c0_103 = arith.constant 0 : index
      %c0_104 = arith.constant 0 : index
      %235 = vector.load %arg10[%c0_103, %c0_104] : memref<1x32xf32, #tpu.memory_space<vmem>>, vector<1x32xf32>
      %cst_105 = arith.constant dense<0.000000e+00> : vector<32xf32>
      %236 = vector.multi_reduction <add>, %233, %cst_105 [1] : vector<32x32xf32> to vector<32xf32>
      %237 = vector.shape_cast %236 : vector<32xf32> to vector<32x1xf32>
      %cst_106 = arith.constant 3.200000e+01 : f32
      %238 = vector.broadcast %cst_106 : f32 to vector<32x1xf32>
      %239 = arith.divf %237, %238 : vector<32x1xf32>
      %240 = vector.broadcast %239 : vector<32x1xf32> to vector<32x32xf32>
      %241 = arith.subf %233, %240 : vector<32x32xf32>
      %242 = arith.mulf %241, %241 : vector<32x32xf32>
      %cst_107 = arith.constant dense<0.000000e+00> : vector<32xf32>
      %243 = vector.multi_reduction <add>, %242, %cst_107 [1] : vector<32x32xf32> to vector<32xf32>
      %244 = vector.shape_cast %243 : vector<32xf32> to vector<32x1xf32>
      %cst_108 = arith.constant 3.200000e+01 : f32
      %245 = vector.broadcast %cst_108 : f32 to vector<32x1xf32>
      %246 = arith.divf %244, %245 : vector<32x1xf32>
      %247 = vector.broadcast %239 : vector<32x1xf32> to vector<32x32xf32>
      %248 = arith.subf %233, %247 : vector<32x32xf32>
      %cst_109 = arith.constant 9.99999974E-6 : f32
      %249 = vector.broadcast %cst_109 : f32 to vector<32x1xf32>
      %250 = arith.addf %246, %249 : vector<32x1xf32>
      %251 = math.rsqrt %250 : vector<32x1xf32>
      %252 = vector.broadcast %251 : vector<32x1xf32> to vector<32x32xf32>
      %253 = arith.mulf %248, %252 : vector<32x32xf32>
      %254 = vector.broadcast %234 : vector<1x32xf32> to vector<32x32xf32>
      %255 = arith.mulf %253, %254 : vector<32x32xf32>
      %256 = vector.broadcast %235 : vector<1x32xf32> to vector<32x32xf32>
      %257 = arith.addf %255, %256 : vector<32x32xf32>
      %c0_110 = arith.constant 0 : index
      %c0_111 = arith.constant 0 : index
      %c0_112 = arith.constant 0 : index
      %258 = vector.load %arg4[%c0_110, %c0_111, %c0_112] : memref<1x24x32xf32, #tpu.memory_space<vmem>>, vector<1x24x32xf32>
      %259 = vector.shape_cast %257 : vector<32x32xf32> to vector<2x16x32xf32>
      %260 = vector.extract_strided_slice %258 {offsets = [0, 1, 0], sizes = [1, 16, 32], strides = [1, 1, 1]} : vector<1x24x32xf32> to vector<1x16x32xf32>
      %261 = vector.broadcast %260 : vector<1x16x32xf32> to vector<2x16x32xf32>
      %262 = arith.addf %259, %261 : vector<2x16x32xf32>
      %c0_113 = arith.constant 0 : index
      %c1 = arith.constant 1 : index
      %c0_114 = arith.constant 0 : index
      %263 = vector.load %arg29[%c0_113, %c1, %c0_114] : memref<2x24x32xf32, #tpu.memory_space<vmem>>, vector<2x16x32xf32>
      tpu.vector_store %arg29[%c0_113, %c1, %c0_114], %262 {strides = array<i32>} : memref<2x24x32xf32, #tpu.memory_space<vmem>>, vector<2x16x32xf32>,
      %c0_115 = arith.constant 0 : index
      %c0_116 = arith.constant 0 : index
      %c0_117 = arith.constant 0 : index
      %264 = vector.load %arg3[%c0_115, %c0_116, %c0_117] : memref<1x1x32xf32, #tpu.memory_space<vmem>>, vector<1x1x32xf32>
      %265 = vector.shape_cast %264 : vector<1x1x32xf32> to vector<1x1x32xf32>
      %266 = vector.broadcast %265 : vector<1x1x32xf32> to vector<2x1x32xf32>
      %c0_118 = arith.constant 0 : index
      %c0_119 = arith.constant 0 : index
      %c0_120 = arith.constant 0 : index
      %267 = vector.load %arg29[%c0_118, %c0_119, %c0_120] : memref<2x24x32xf32, #tpu.memory_space<vmem>>, vector<2x1x32xf32>
      tpu.vector_store %arg29[%c0_118, %c0_119, %c0_120], %266 {strides = array<i32>} : memref<2x24x32xf32, #tpu.memory_space<vmem>>, vector<2x1x32xf32>,
      %cst_121 = arith.constant 0.000000e+00 : f32
      %268 = vector.broadcast %cst_121 : f32 to vector<2x7x32xf32>
      %c0_122 = arith.constant 0 : index
      %c17 = arith.constant 17 : index
      %c0_123 = arith.constant 0 : index
      %269 = vector.load %arg29[%c0_122, %c17, %c0_123] : memref<2x24x32xf32, #tpu.memory_space<vmem>>, vector<2x7x32xf32>
      tpu.vector_store %arg29[%c0_122, %c17, %c0_123], %268 {strides = array<i32>} : memref<2x24x32xf32, #tpu.memory_space<vmem>>, vector<2x7x32xf32>,
    } else {
    }
    %c0 = arith.constant 0 : index
    %c0_1 = arith.constant 0 : index
    %c0_2 = arith.constant 0 : index
    %3 = vector.load %arg29[%c0, %c0_1, %c0_2] : memref<2x24x32xf32, #tpu.memory_space<vmem>>, vector<2x24x32xf32>
    %4 = vector.shape_cast %3 : vector<2x24x32xf32> to vector<48x32xf32>
    %c0_3 = arith.constant 0 : index
    %c0_4 = arith.constant 0 : index
    %c0_5 = arith.constant 0 : index
    %5 = vector.load %arg11[%c0_3, %c0_4, %c0_5] : memref<1x1x32xf32, #tpu.memory_space<vmem>>, vector<1x1x32xf32>
    %6 = vector.shape_cast %5 : vector<1x1x32xf32> to vector<1x32xf32>
    %c0_6 = arith.constant 0 : index
    %c0_7 = arith.constant 0 : index
    %c0_8 = arith.constant 0 : index
    %7 = vector.load %arg12[%c0_6, %c0_7, %c0_8] : memref<1x1x32xf32, #tpu.memory_space<vmem>>, vector<1x1x32xf32>
    %8 = vector.shape_cast %7 : vector<1x1x32xf32> to vector<1x32xf32>
    %cst = arith.constant dense<0.000000e+00> : vector<48xf32>
    %9 = vector.multi_reduction <add>, %4, %cst [1] : vector<48x32xf32> to vector<48xf32>
    %10 = vector.shape_cast %9 : vector<48xf32> to vector<48x1xf32>
    %cst_9 = arith.constant 3.200000e+01 : f32
    %11 = vector.broadcast %cst_9 : f32 to vector<48x1xf32>
    %12 = arith.divf %10, %11 : vector<48x1xf32>
    %13 = vector.broadcast %12 : vector<48x1xf32> to vector<48x32xf32>
    %14 = arith.subf %4, %13 : vector<48x32xf32>
    %15 = arith.mulf %14, %14 : vector<48x32xf32>
    %cst_10 = arith.constant dense<0.000000e+00> : vector<48xf32>
    %16 = vector.multi_reduction <add>, %15, %cst_10 [1] : vector<48x32xf32> to vector<48xf32>
    %17 = vector.shape_cast %16 : vector<48xf32> to vector<48x1xf32>
    %cst_11 = arith.constant 3.200000e+01 : f32
    %18 = vector.broadcast %cst_11 : f32 to vector<48x1xf32>
    %19 = arith.divf %17, %18 : vector<48x1xf32>
    %20 = vector.broadcast %12 : vector<48x1xf32> to vector<48x32xf32>
    %21 = arith.subf %4, %20 : vector<48x32xf32>
    %cst_12 = arith.constant 9.99999974E-6 : f32
    %22 = vector.broadcast %cst_12 : f32 to vector<48x1xf32>
    %23 = arith.addf %19, %22 : vector<48x1xf32>
    %24 = math.rsqrt %23 : vector<48x1xf32>
    %25 = vector.broadcast %24 : vector<48x1xf32> to vector<48x32xf32>
    %26 = arith.mulf %21, %25 : vector<48x32xf32>
    %27 = vector.broadcast %6 : vector<1x32xf32> to vector<48x32xf32>
    %28 = arith.mulf %26, %27 : vector<48x32xf32>
    %29 = vector.broadcast %8 : vector<1x32xf32> to vector<48x32xf32>
    %30 = arith.addf %28, %29 : vector<48x32xf32>
    %31 = arith.truncf %30 : vector<48x32xf32> to vector<48x32xbf16>
    %c0_13 = arith.constant 0 : index
    %c0_14 = arith.constant 0 : index
    %c0_15 = arith.constant 0 : index
    %32 = vector.load %arg13[%c0_13, %c0_14, %c0_15] : memref<1x32x96xbf16, #tpu.memory_space<vmem>>, vector<1x32x96xbf16>
    %33 = vector.shape_cast %32 : vector<1x32x96xbf16> to vector<32x96xbf16>
    %cst_16 = arith.constant dense<0.000000e+00> : vector<48x96xf32>
    %34 = tpu.matmul %31, %33, %cst_16 {dimension_numbers = #tpu.dot_dimension_numbers<[1], [0], [0], [1], [0, 0, 1, 1], [], []>} : vector<48x32xbf16>, vector<32x96xbf16>, vector<48x96xf32> -> vector<48x96xf32>
    %35 = vector.shape_cast %34 : vector<48x96xf32> to vector<2x24x96xf32>
    %36 = vector.extract_strided_slice %35 {offsets = [0, 0, 0], sizes = [2, 24, 32], strides = [1, 1, 1]} : vector<2x24x96xf32> to vector<2x24x32xf32>
    %37 = arith.truncf %36 : vector<2x24x32xf32> to vector<2x24x32xbf16>
    %38 = vector.extract_strided_slice %35 {offsets = [0, 0, 32], sizes = [2, 24, 32], strides = [1, 1, 1]} : vector<2x24x96xf32> to vector<2x24x32xf32>
    %39 = arith.truncf %38 : vector<2x24x32xf32> to vector<2x24x32xbf16>
    %40 = vector.extract_strided_slice %35 {offsets = [0, 0, 64], sizes = [2, 24, 32], strides = [1, 1, 1]} : vector<2x24x96xf32> to vector<2x24x32xf32>
    %41 = arith.truncf %40 : vector<2x24x32xf32> to vector<2x24x32xbf16>
    %42 = vector.extract_strided_slice %37 {offsets = [0, 0, 0], sizes = [2, 24, 8], strides = [1, 1, 1]} : vector<2x24x32xbf16> to vector<2x24x8xbf16>
    %43 = vector.extract_strided_slice %39 {offsets = [0, 0, 0], sizes = [2, 24, 8], strides = [1, 1, 1]} : vector<2x24x32xbf16> to vector<2x24x8xbf16>
    %44 = vector.extract_strided_slice %41 {offsets = [0, 0, 0], sizes = [2, 24, 8], strides = [1, 1, 1]} : vector<2x24x32xbf16> to vector<2x24x8xbf16>
    "tpu.trace_start"() <{level = 10 : i32, message = "bqd,bkd->bqk"}> : () -> ()
    %cst_17 = arith.constant dense<0.000000e+00> : vector<2x24x24xf32>
    %45 = tpu.matmul %42, %43, %cst_17 {dimension_numbers = #tpu.dot_dimension_numbers<[2], [2], [1], [1], [0, 0, 0, 1, 1, 1], [0], [0]>} : vector<2x24x8xbf16>, vector<2x24x8xbf16>, vector<2x24x24xf32> -> vector<2x24x24xf32>
    "tpu.trace_stop"() : () -> ()
    %46 = tpu.iota {dimensions = array<i32: 2>} : vector<2x24x24xi32>
    %c17_i32 = arith.constant 17 : i32
    %47 = vector.broadcast %c17_i32 : i32 to vector<2x24x24xi32>
    %48 = arith.cmpi slt, %46, %47 : vector<2x24x24xi32>
    %cst_18 = arith.constant -1.000000e+30 : f32
    %49 = vector.broadcast %cst_18 : f32 to vector<2x24x24xf32>
    %50 = arith.select %48, %45, %49 : vector<2x24x24xi1>, vector<2x24x24xf32>
    %cst_19 = arith.constant dense<0xFF800000> : vector<2x24xf32>
    %51 = vector.multi_reduction <maximumf>, %50, %cst_19 [2] : vector<2x24x24xf32> to vector<2x24xf32>
    %52 = vector.shape_cast %51 : vector<2x24xf32> to vector<2x24x1xf32>
    %53 = vector.broadcast %52 : vector<2x24x1xf32> to vector<2x24x24xf32>
    %54 = arith.subf %50, %53 : vector<2x24x24xf32>
    %55 = math.exp %54 : vector<2x24x24xf32>
    %cst_20 = arith.constant dense<0.000000e+00> : vector<2x24xf32>
    %56 = vector.multi_reduction <add>, %55, %cst_20 [2] : vector<2x24x24xf32> to vector<2x24xf32>
    %57 = vector.shape_cast %56 : vector<2x24xf32> to vector<2x24x1xf32>
    %58 = arith.truncf %55 : vector<2x24x24xf32> to vector<2x24x24xbf16>
    "tpu.trace_start"() <{level = 10 : i32, message = "bqk,bkd->bqd"}> : () -> ()
    %cst_21 = arith.constant dense<0.000000e+00> : vector<2x24x8xf32>
    %59 = tpu.matmul %58, %44, %cst_21 {dimension_numbers = #tpu.dot_dimension_numbers<[2], [1], [1], [2], [0, 0, 0, 1, 1, 2], [0], [0]>} : vector<2x24x24xbf16>, vector<2x24x8xbf16>, vector<2x24x8xf32> -> vector<2x24x8xf32>
    "tpu.trace_stop"() : () -> ()
    %cst_22 = arith.constant 1.000000e+00 : f32
    %60 = vector.broadcast %cst_22 : f32 to vector<2x24x1xf32>
    %61 = arith.divf %60, %57 : vector<2x24x1xf32>
    %62 = vector.broadcast %61 : vector<2x24x1xf32> to vector<2x24x8xf32>
    %63 = arith.mulf %59, %62 : vector<2x24x8xf32>
    %64 = vector.extract_strided_slice %37 {offsets = [0, 0, 8], sizes = [2, 24, 8], strides = [1, 1, 1]} : vector<2x24x32xbf16> to vector<2x24x8xbf16>
    %65 = vector.extract_strided_slice %39 {offsets = [0, 0, 8], sizes = [2, 24, 8], strides = [1, 1, 1]} : vector<2x24x32xbf16> to vector<2x24x8xbf16>
    %66 = vector.extract_strided_slice %41 {offsets = [0, 0, 8], sizes = [2, 24, 8], strides = [1, 1, 1]} : vector<2x24x32xbf16> to vector<2x24x8xbf16>
    "tpu.trace_start"() <{level = 10 : i32, message = "bqd,bkd->bqk"}> : () -> ()
    %cst_23 = arith.constant dense<0.000000e+00> : vector<2x24x24xf32>
    %67 = tpu.matmul %64, %65, %cst_23 {dimension_numbers = #tpu.dot_dimension_numbers<[2], [2], [1], [1], [0, 0, 0, 1, 1, 1], [0], [0]>} : vector<2x24x8xbf16>, vector<2x24x8xbf16>, vector<2x24x24xf32> -> vector<2x24x24xf32>
    "tpu.trace_stop"() : () -> ()
    %68 = tpu.iota {dimensions = array<i32: 2>} : vector<2x24x24xi32>
    %c17_i32_24 = arith.constant 17 : i32
    %69 = vector.broadcast %c17_i32_24 : i32 to vector<2x24x24xi32>
    %70 = arith.cmpi slt, %68, %69 : vector<2x24x24xi32>
    %cst_25 = arith.constant -1.000000e+30 : f32
    %71 = vector.broadcast %cst_25 : f32 to vector<2x24x24xf32>
    %72 = arith.select %70, %67, %71 : vector<2x24x24xi1>, vector<2x24x24xf32>
    %cst_26 = arith.constant dense<0xFF800000> : vector<2x24xf32>
    %73 = vector.multi_reduction <maximumf>, %72, %cst_26 [2] : vector<2x24x24xf32> to vector<2x24xf32>
    %74 = vector.shape_cast %73 : vector<2x24xf32> to vector<2x24x1xf32>
    %75 = vector.broadcast %74 : vector<2x24x1xf32> to vector<2x24x24xf32>
    %76 = arith.subf %72, %75 : vector<2x24x24xf32>
    %77 = math.exp %76 : vector<2x24x24xf32>
    %cst_27 = arith.constant dense<0.000000e+00> : vector<2x24xf32>
    %78 = vector.multi_reduction <add>, %77, %cst_27 [2] : vector<2x24x24xf32> to vector<2x24xf32>
    %79 = vector.shape_cast %78 : vector<2x24xf32> to vector<2x24x1xf32>
    %80 = arith.truncf %77 : vector<2x24x24xf32> to vector<2x24x24xbf16>
    "tpu.trace_start"() <{level = 10 : i32, message = "bqk,bkd->bqd"}> : () -> ()
    %cst_28 = arith.constant dense<0.000000e+00> : vector<2x24x8xf32>
    %81 = tpu.matmul %80, %66, %cst_28 {dimension_numbers = #tpu.dot_dimension_numbers<[2], [1], [1], [2], [0, 0, 0, 1, 1, 2], [0], [0]>} : vector<2x24x24xbf16>, vector<2x24x8xbf16>, vector<2x24x8xf32> -> vector<2x24x8xf32>
    "tpu.trace_stop"() : () -> ()
    %cst_29 = arith.constant 1.000000e+00 : f32
    %82 = vector.broadcast %cst_29 : f32 to vector<2x24x1xf32>
    %83 = arith.divf %82, %79 : vector<2x24x1xf32>
    %84 = vector.broadcast %83 : vector<2x24x1xf32> to vector<2x24x8xf32>
    %85 = arith.mulf %81, %84 : vector<2x24x8xf32>
    %86 = vector.extract_strided_slice %37 {offsets = [0, 0, 16], sizes = [2, 24, 8], strides = [1, 1, 1]} : vector<2x24x32xbf16> to vector<2x24x8xbf16>
    %87 = vector.extract_strided_slice %39 {offsets = [0, 0, 16], sizes = [2, 24, 8], strides = [1, 1, 1]} : vector<2x24x32xbf16> to vector<2x24x8xbf16>
    %88 = vector.extract_strided_slice %41 {offsets = [0, 0, 16], sizes = [2, 24, 8], strides = [1, 1, 1]} : vector<2x24x32xbf16> to vector<2x24x8xbf16>
    "tpu.trace_start"() <{level = 10 : i32, message = "bqd,bkd->bqk"}> : () -> ()
    %cst_30 = arith.constant dense<0.000000e+00> : vector<2x24x24xf32>
    %89 = tpu.matmul %86, %87, %cst_30 {dimension_numbers = #tpu.dot_dimension_numbers<[2], [2], [1], [1], [0, 0, 0, 1, 1, 1], [0], [0]>} : vector<2x24x8xbf16>, vector<2x24x8xbf16>, vector<2x24x24xf32> -> vector<2x24x24xf32>
    "tpu.trace_stop"() : () -> ()
    %90 = tpu.iota {dimensions = array<i32: 2>} : vector<2x24x24xi32>
    %c17_i32_31 = arith.constant 17 : i32
    %91 = vector.broadcast %c17_i32_31 : i32 to vector<2x24x24xi32>
    %92 = arith.cmpi slt, %90, %91 : vector<2x24x24xi32>
    %cst_32 = arith.constant -1.000000e+30 : f32
    %93 = vector.broadcast %cst_32 : f32 to vector<2x24x24xf32>
    %94 = arith.select %92, %89, %93 : vector<2x24x24xi1>, vector<2x24x24xf32>
    %cst_33 = arith.constant dense<0xFF800000> : vector<2x24xf32>
    %95 = vector.multi_reduction <maximumf>, %94, %cst_33 [2] : vector<2x24x24xf32> to vector<2x24xf32>
    %96 = vector.shape_cast %95 : vector<2x24xf32> to vector<2x24x1xf32>
    %97 = vector.broadcast %96 : vector<2x24x1xf32> to vector<2x24x24xf32>
    %98 = arith.subf %94, %97 : vector<2x24x24xf32>
    %99 = math.exp %98 : vector<2x24x24xf32>
    %cst_34 = arith.constant dense<0.000000e+00> : vector<2x24xf32>
    %100 = vector.multi_reduction <add>, %99, %cst_34 [2] : vector<2x24x24xf32> to vector<2x24xf32>
    %101 = vector.shape_cast %100 : vector<2x24xf32> to vector<2x24x1xf32>
    %102 = arith.truncf %99 : vector<2x24x24xf32> to vector<2x24x24xbf16>
    "tpu.trace_start"() <{level = 10 : i32, message = "bqk,bkd->bqd"}> : () -> ()
    %cst_35 = arith.constant dense<0.000000e+00> : vector<2x24x8xf32>
    %103 = tpu.matmul %102, %88, %cst_35 {dimension_numbers = #tpu.dot_dimension_numbers<[2], [1], [1], [2], [0, 0, 0, 1, 1, 2], [0], [0]>} : vector<2x24x24xbf16>, vector<2x24x8xbf16>, vector<2x24x8xf32> -> vector<2x24x8xf32>
    "tpu.trace_stop"() : () -> ()
    %cst_36 = arith.constant 1.000000e+00 : f32
    %104 = vector.broadcast %cst_36 : f32 to vector<2x24x1xf32>
    %105 = arith.divf %104, %101 : vector<2x24x1xf32>
    %106 = vector.broadcast %105 : vector<2x24x1xf32> to vector<2x24x8xf32>
    %107 = arith.mulf %103, %106 : vector<2x24x8xf32>
    %108 = vector.extract_strided_slice %37 {offsets = [0, 0, 24], sizes = [2, 24, 8], strides = [1, 1, 1]} : vector<2x24x32xbf16> to vector<2x24x8xbf16>
    %109 = vector.extract_strided_slice %39 {offsets = [0, 0, 24], sizes = [2, 24, 8], strides = [1, 1, 1]} : vector<2x24x32xbf16> to vector<2x24x8xbf16>
    %110 = vector.extract_strided_slice %41 {offsets = [0, 0, 24], sizes = [2, 24, 8], strides = [1, 1, 1]} : vector<2x24x32xbf16> to vector<2x24x8xbf16>
    "tpu.trace_start"() <{level = 10 : i32, message = "bqd,bkd->bqk"}> : () -> ()
    %cst_37 = arith.constant dense<0.000000e+00> : vector<2x24x24xf32>
    %111 = tpu.matmul %108, %109, %cst_37 {dimension_numbers = #tpu.dot_dimension_numbers<[2], [2], [1], [1], [0, 0, 0, 1, 1, 1], [0], [0]>} : vector<2x24x8xbf16>, vector<2x24x8xbf16>, vector<2x24x24xf32> -> vector<2x24x24xf32>
    "tpu.trace_stop"() : () -> ()
    %112 = tpu.iota {dimensions = array<i32: 2>} : vector<2x24x24xi32>
    %c17_i32_38 = arith.constant 17 : i32
    %113 = vector.broadcast %c17_i32_38 : i32 to vector<2x24x24xi32>
    %114 = arith.cmpi slt, %112, %113 : vector<2x24x24xi32>
    %cst_39 = arith.constant -1.000000e+30 : f32
    %115 = vector.broadcast %cst_39 : f32 to vector<2x24x24xf32>
    %116 = arith.select %114, %111, %115 : vector<2x24x24xi1>, vector<2x24x24xf32>
    %cst_40 = arith.constant dense<0xFF800000> : vector<2x24xf32>
    %117 = vector.multi_reduction <maximumf>, %116, %cst_40 [2] : vector<2x24x24xf32> to vector<2x24xf32>
    %118 = vector.shape_cast %117 : vector<2x24xf32> to vector<2x24x1xf32>
    %119 = vector.broadcast %118 : vector<2x24x1xf32> to vector<2x24x24xf32>
    %120 = arith.subf %116, %119 : vector<2x24x24xf32>
    %121 = math.exp %120 : vector<2x24x24xf32>
    %cst_41 = arith.constant dense<0.000000e+00> : vector<2x24xf32>
    %122 = vector.multi_reduction <add>, %121, %cst_41 [2] : vector<2x24x24xf32> to vector<2x24xf32>
    %123 = vector.shape_cast %122 : vector<2x24xf32> to vector<2x24x1xf32>
    %124 = arith.truncf %121 : vector<2x24x24xf32> to vector<2x24x24xbf16>
    "tpu.trace_start"() <{level = 10 : i32, message = "bqk,bkd->bqd"}> : () -> ()
    %cst_42 = arith.constant dense<0.000000e+00> : vector<2x24x8xf32>
    %125 = tpu.matmul %124, %110, %cst_42 {dimension_numbers = #tpu.dot_dimension_numbers<[2], [1], [1], [2], [0, 0, 0, 1, 1, 2], [0], [0]>} : vector<2x24x24xbf16>, vector<2x24x8xbf16>, vector<2x24x8xf32> -> vector<2x24x8xf32>
    "tpu.trace_stop"() : () -> ()
    %cst_43 = arith.constant 1.000000e+00 : f32
    %126 = vector.broadcast %cst_43 : f32 to vector<2x24x1xf32>
    %127 = arith.divf %126, %123 : vector<2x24x1xf32>
    %128 = vector.broadcast %127 : vector<2x24x1xf32> to vector<2x24x8xf32>
    %129 = arith.mulf %125, %128 : vector<2x24x8xf32>
    %130 = tpu.concatenate %63, %85, %107, %129 in 2 : vector<2x24x8xf32>, vector<2x24x8xf32>, vector<2x24x8xf32>, vector<2x24x8xf32> -> vector<2x24x32xf32>
    %131 = vector.shape_cast %130 : vector<2x24x32xf32> to vector<48x32xf32>
    %132 = arith.truncf %131 : vector<48x32xf32> to vector<48x32xbf16>
    %c0_44 = arith.constant 0 : index
    %c0_45 = arith.constant 0 : index
    %c0_46 = arith.constant 0 : index
    %133 = vector.load %arg14[%c0_44, %c0_45, %c0_46] : memref<1x32x32xbf16, #tpu.memory_space<vmem>>, vector<1x32x32xbf16>
    %134 = vector.shape_cast %133 : vector<1x32x32xbf16> to vector<32x32xbf16>
    %cst_47 = arith.constant dense<0.000000e+00> : vector<48x32xf32>
    %135 = tpu.matmul %132, %134, %cst_47 {dimension_numbers = #tpu.dot_dimension_numbers<[1], [0], [0], [1], [0, 0, 1, 1], [], []>} : vector<48x32xbf16>, vector<32x32xbf16>, vector<48x32xf32> -> vector<48x32xf32>
    %136 = arith.addf %4, %135 : vector<48x32xf32>
    %c0_48 = arith.constant 0 : index
    %c0_49 = arith.constant 0 : index
    %c0_50 = arith.constant 0 : index
    %137 = vector.load %arg15[%c0_48, %c0_49, %c0_50] : memref<1x1x32xf32, #tpu.memory_space<vmem>>, vector<1x1x32xf32>
    %138 = vector.shape_cast %137 : vector<1x1x32xf32> to vector<1x32xf32>
    %139 = vector.broadcast %138 : vector<1x32xf32> to vector<48x32xf32>
    %140 = arith.addf %136, %139 : vector<48x32xf32>
    %c0_51 = arith.constant 0 : index
    %c0_52 = arith.constant 0 : index
    %c0_53 = arith.constant 0 : index
    %141 = vector.load %arg16[%c0_51, %c0_52, %c0_53] : memref<1x1x32xf32, #tpu.memory_space<vmem>>, vector<1x1x32xf32>
    %142 = vector.shape_cast %141 : vector<1x1x32xf32> to vector<1x32xf32>
    %c0_54 = arith.constant 0 : index
    %c0_55 = arith.constant 0 : index
    %c0_56 = arith.constant 0 : index
    %143 = vector.load %arg17[%c0_54, %c0_55, %c0_56] : memref<1x1x32xf32, #tpu.memory_space<vmem>>, vector<1x1x32xf32>
    %144 = vector.shape_cast %143 : vector<1x1x32xf32> to vector<1x32xf32>
    %cst_57 = arith.constant dense<0.000000e+00> : vector<48xf32>
    %145 = vector.multi_reduction <add>, %140, %cst_57 [1] : vector<48x32xf32> to vector<48xf32>
    %146 = vector.shape_cast %145 : vector<48xf32> to vector<48x1xf32>
    %cst_58 = arith.constant 3.200000e+01 : f32
    %147 = vector.broadcast %cst_58 : f32 to vector<48x1xf32>
    %148 = arith.divf %146, %147 : vector<48x1xf32>
    %149 = vector.broadcast %148 : vector<48x1xf32> to vector<48x32xf32>
    %150 = arith.subf %140, %149 : vector<48x32xf32>
    %151 = arith.mulf %150, %150 : vector<48x32xf32>
    %cst_59 = arith.constant dense<0.000000e+00> : vector<48xf32>
    %152 = vector.multi_reduction <add>, %151, %cst_59 [1] : vector<48x32xf32> to vector<48xf32>
    %153 = vector.shape_cast %152 : vector<48xf32> to vector<48x1xf32>
    %cst_60 = arith.constant 3.200000e+01 : f32
    %154 = vector.broadcast %cst_60 : f32 to vector<48x1xf32>
    %155 = arith.divf %153, %154 : vector<48x1xf32>
    %156 = vector.broadcast %148 : vector<48x1xf32> to vector<48x32xf32>
    %157 = arith.subf %140, %156 : vector<48x32xf32>
    %cst_61 = arith.constant 9.99999974E-6 : f32
    %158 = vector.broadcast %cst_61 : f32 to vector<48x1xf32>
    %159 = arith.addf %155, %158 : vector<48x1xf32>
    %160 = math.rsqrt %159 : vector<48x1xf32>
    %161 = vector.broadcast %160 : vector<48x1xf32> to vector<48x32xf32>
    %162 = arith.mulf %157, %161 : vector<48x32xf32>
    %163 = vector.broadcast %142 : vector<1x32xf32> to vector<48x32xf32>
    %164 = arith.mulf %162, %163 : vector<48x32xf32>
    %165 = vector.broadcast %144 : vector<1x32xf32> to vector<48x32xf32>
    %166 = arith.addf %164, %165 : vector<48x32xf32>
    %167 = arith.truncf %166 : vector<48x32xf32> to vector<48x32xbf16>
    %c0_62 = arith.constant 0 : index
    %c0_63 = arith.constant 0 : index
    %c0_64 = arith.constant 0 : index
    %168 = vector.load %arg18[%c0_62, %c0_63, %c0_64] : memref<1x32x64xbf16, #tpu.memory_space<vmem>>, vector<1x32x64xbf16>
    %169 = vector.shape_cast %168 : vector<1x32x64xbf16> to vector<32x64xbf16>
    %cst_65 = arith.constant dense<0.000000e+00> : vector<48x64xf32>
    %170 = tpu.matmul %167, %169, %cst_65 {dimension_numbers = #tpu.dot_dimension_numbers<[1], [0], [0], [1], [0, 0, 1, 1], [], []>} : vector<48x32xbf16>, vector<32x64xbf16>, vector<48x64xf32> -> vector<48x64xf32>
    %c0_66 = arith.constant 0 : index
    %c0_67 = arith.constant 0 : index
    %c0_68 = arith.constant 0 : index
    %171 = vector.load %arg19[%c0_66, %c0_67, %c0_68] : memref<1x1x64xf32, #tpu.memory_space<vmem>>, vector<1x1x64xf32>
    %172 = vector.shape_cast %171 : vector<1x1x64xf32> to vector<1x64xf32>
    %173 = vector.broadcast %172 : vector<1x64xf32> to vector<48x64xf32>
    %174 = arith.addf %170, %173 : vector<48x64xf32>
    %cst_69 = arith.constant 5.000000e-01 : f32
    %175 = vector.broadcast %cst_69 : f32 to vector<48x64xf32>
    %176 = arith.mulf %175, %174 : vector<48x64xf32>
    %177 = arith.mulf %174, %174 : vector<48x64xf32>
    %178 = arith.mulf %177, %174 : vector<48x64xf32>
    %cst_70 = arith.constant 4.471500e-02 : f32
    %179 = vector.broadcast %cst_70 : f32 to vector<48x64xf32>
    %180 = arith.mulf %179, %178 : vector<48x64xf32>
    %181 = arith.addf %174, %180 : vector<48x64xf32>
    %cst_71 = arith.constant 0.797884583 : f32
    %182 = vector.broadcast %cst_71 : f32 to vector<48x64xf32>
    %183 = arith.mulf %182, %181 : vector<48x64xf32>
    %184 = math.tanh %183 : vector<48x64xf32>
    %cst_72 = arith.constant 1.000000e+00 : f32
    %185 = vector.broadcast %cst_72 : f32 to vector<48x64xf32>
    %186 = arith.addf %185, %184 : vector<48x64xf32>
    %187 = arith.mulf %176, %186 : vector<48x64xf32>
    %188 = arith.truncf %187 : vector<48x64xf32> to vector<48x64xbf16>
    %c0_73 = arith.constant 0 : index
    %c0_74 = arith.constant 0 : index
    %c0_75 = arith.constant 0 : index
    %189 = vector.load %arg20[%c0_73, %c0_74, %c0_75] : memref<1x64x32xbf16, #tpu.memory_space<vmem>>, vector<1x64x32xbf16>
    %190 = vector.shape_cast %189 : vector<1x64x32xbf16> to vector<64x32xbf16>
    %cst_76 = arith.constant dense<0.000000e+00> : vector<48x32xf32>
    %191 = tpu.matmul %188, %190, %cst_76 {dimension_numbers = #tpu.dot_dimension_numbers<[1], [0], [0], [1], [0, 0, 1, 1], [], []>} : vector<48x64xbf16>, vector<64x32xbf16>, vector<48x32xf32> -> vector<48x32xf32>
    %c0_77 = arith.constant 0 : index
    %c0_78 = arith.constant 0 : index
    %c0_79 = arith.constant 0 : index
    %192 = vector.load %arg21[%c0_77, %c0_78, %c0_79] : memref<1x1x32xf32, #tpu.memory_space<vmem>>, vector<1x1x32xf32>
    %193 = vector.shape_cast %192 : vector<1x1x32xf32> to vector<1x32xf32>
    %194 = vector.broadcast %193 : vector<1x32xf32> to vector<48x32xf32>
    %195 = arith.addf %191, %194 : vector<48x32xf32>
    %196 = arith.addf %140, %195 : vector<48x32xf32>
    %197 = vector.shape_cast %196 : vector<48x32xf32> to vector<2x24x32xf32>
    %c0_80 = arith.constant 0 : index
    %c0_81 = arith.constant 0 : index
    %c0_82 = arith.constant 0 : index
    %198 = vector.load %arg29[%c0_80, %c0_81, %c0_82] : memref<2x24x32xf32, #tpu.memory_space<vmem>>, vector<2x24x32xf32>
    tpu.vector_store %arg29[%c0_80, %c0_81, %c0_82], %197 {strides = array<i32>} : memref<2x24x32xf32, #tpu.memory_space<vmem>>, vector<2x24x32xf32>,
    %c1_i32 = arith.constant 1 : i32
    %199 = arith.cmpi eq, %arg1, %c1_i32 : i32
    %200 = arith.extui %199 : i1 to i32
    %c0_i32_83 = arith.constant 0 : i32
    %201 = arith.cmpi ne, %200, %c0_i32_83 : i32
    scf.if %201 {
      %202 = vector.shape_cast %196 : vector<48x32xf32> to vector<2x24x32xf32>
      %203 = vector.extract_strided_slice %202 {offsets = [0, 0, 0], sizes = [2, 1, 32], strides = [1, 1, 1]} : vector<2x24x32xf32> to vector<2x1x32xf32>
      %204 = vector.shape_cast %203 : vector<2x1x32xf32> to vector<2x32xf32>
      %c0_84 = arith.constant 0 : index
      %c0_85 = arith.constant 0 : index
      %205 = vector.load %arg22[%c0_84, %c0_85] : memref<1x32xf32, #tpu.memory_space<vmem>>, vector<1x32xf32>
      %c0_86 = arith.constant 0 : index
      %c0_87 = arith.constant 0 : index
      %206 = vector.load %arg23[%c0_86, %c0_87] : memref<1x32xf32, #tpu.memory_space<vmem>>, vector<1x32xf32>
      %cst_88 = arith.constant dense<0.000000e+00> : vector<2xf32>
      %207 = vector.multi_reduction <add>, %204, %cst_88 [1] : vector<2x32xf32> to vector<2xf32>
      %208 = vector.shape_cast %207 : vector<2xf32> to vector<2x1xf32>
      %cst_89 = arith.constant 3.200000e+01 : f32
      %209 = vector.broadcast %cst_89 : f32 to vector<2x1xf32>
      %210 = arith.divf %208, %209 : vector<2x1xf32>
      %211 = vector.broadcast %210 : vector<2x1xf32> to vector<2x32xf32>
      %212 = arith.subf %204, %211 : vector<2x32xf32>
      %213 = arith.mulf %212, %212 : vector<2x32xf32>
      %cst_90 = arith.constant dense<0.000000e+00> : vector<2xf32>
      %214 = vector.multi_reduction <add>, %213, %cst_90 [1] : vector<2x32xf32> to vector<2xf32>
      %215 = vector.shape_cast %214 : vector<2xf32> to vector<2x1xf32>
      %cst_91 = arith.constant 3.200000e+01 : f32
      %216 = vector.broadcast %cst_91 : f32 to vector<2x1xf32>
      %217 = arith.divf %215, %216 : vector<2x1xf32>
      %218 = vector.broadcast %210 : vector<2x1xf32> to vector<2x32xf32>
      %219 = arith.subf %204, %218 : vector<2x32xf32>
      %cst_92 = arith.constant 9.99999974E-6 : f32
      %220 = vector.broadcast %cst_92 : f32 to vector<2x1xf32>
      %221 = arith.addf %217, %220 : vector<2x1xf32>
      %222 = math.rsqrt %221 : vector<2x1xf32>
      %223 = vector.broadcast %222 : vector<2x1xf32> to vector<2x32xf32>
      %224 = arith.mulf %219, %223 : vector<2x32xf32>
      %225 = vector.broadcast %205 : vector<1x32xf32> to vector<2x32xf32>
      %226 = arith.mulf %224, %225 : vector<2x32xf32>
      %227 = vector.broadcast %206 : vector<1x32xf32> to vector<2x32xf32>
      %228 = arith.addf %226, %227 : vector<2x32xf32>
      %229 = arith.truncf %228 : vector<2x32xf32> to vector<2x32xbf16>
      %c0_93 = arith.constant 0 : index
      %c0_94 = arith.constant 0 : index
      %230 = vector.load %arg24[%c0_93, %c0_94] : memref<32x64xbf16, #tpu.memory_space<vmem>>, vector<32x64xbf16>
      %cst_95 = arith.constant dense<0.000000e+00> : vector<2x64xf32>
      %231 = tpu.matmul %229, %230, %cst_95 {dimension_numbers = #tpu.dot_dimension_numbers<[1], [0], [0], [1], [0, 0, 1, 1], [], []>} : vector<2x32xbf16>, vector<32x64xbf16>, vector<2x64xf32> -> vector<2x64xf32>
      %c0_96 = arith.constant 0 : index
      %c0_97 = arith.constant 0 : index
      %232 = vector.load %arg25[%c0_96, %c0_97] : memref<1x64xf32, #tpu.memory_space<vmem>>, vector<1x64xf32>
      %233 = vector.broadcast %232 : vector<1x64xf32> to vector<2x64xf32>
      %234 = arith.addf %231, %233 : vector<2x64xf32>
      %cst_98 = arith.constant 5.000000e-01 : f32
      %235 = vector.broadcast %cst_98 : f32 to vector<2x64xf32>
      %236 = arith.mulf %235, %234 : vector<2x64xf32>
      %237 = arith.mulf %234, %234 : vector<2x64xf32>
      %238 = arith.mulf %237, %234 : vector<2x64xf32>
      %cst_99 = arith.constant 4.471500e-02 : f32
      %239 = vector.broadcast %cst_99 : f32 to vector<2x64xf32>
      %240 = arith.mulf %239, %238 : vector<2x64xf32>
      %241 = arith.addf %234, %240 : vector<2x64xf32>
      %cst_100 = arith.constant 0.797884583 : f32
      %242 = vector.broadcast %cst_100 : f32 to vector<2x64xf32>
      %243 = arith.mulf %242, %241 : vector<2x64xf32>
      %244 = math.tanh %243 : vector<2x64xf32>
      %cst_101 = arith.constant 1.000000e+00 : f32
      %245 = vector.broadcast %cst_101 : f32 to vector<2x64xf32>
      %246 = arith.addf %245, %244 : vector<2x64xf32>
      %247 = arith.mulf %236, %246 : vector<2x64xf32>
      %248 = arith.truncf %247 : vector<2x64xf32> to vector<2x64xbf16>
      %c0_102 = arith.constant 0 : index
      %c0_103 = arith.constant 0 : index
      %249 = vector.load %arg26[%c0_102, %c0_103] : memref<64x10xbf16, #tpu.memory_space<vmem>>, vector<64x10xbf16>
      %cst_104 = arith.constant dense<0.000000e+00> : vector<2x10xf32>
      %250 = tpu.matmul %248, %249, %cst_104 {dimension_numbers = #tpu.dot_dimension_numbers<[1], [0], [0], [1], [0, 0, 1, 1], [], []>} : vector<2x64xbf16>, vector<64x10xbf16>, vector<2x10xf32> -> vector<2x10xf32>
      %c0_105 = arith.constant 0 : index
      %c0_106 = arith.constant 0 : index
      %251 = vector.load %arg27[%c0_105, %c0_106] : memref<1x10xf32, #tpu.memory_space<vmem>>, vector<1x10xf32>
      %252 = vector.broadcast %251 : vector<1x10xf32> to vector<2x10xf32>
      %253 = arith.addf %250, %252 : vector<2x10xf32>
      %254 = vector.shape_cast %253 : vector<2x10xf32> to vector<2x1x10xf32>
      %c0_107 = arith.constant 0 : index
      %c0_108 = arith.constant 0 : index
      %c0_109 = arith.constant 0 : index
      %255 = vector.load %arg28[%c0_107, %c0_108, %c0_109] : memref<2x1x10xf32, #tpu.memory_space<vmem>>, vector<2x1x10xf32>
      tpu.vector_store %arg28[%c0_107, %c0_108, %c0_109], %254 {strides = array<i32>} : memref<2x1x10xf32, #tpu.memory_space<vmem>>, vector<2x1x10xf32>,
    } else {
    }
    return
  }
  func.func @transform_0(%arg0: i32, %arg1: i32) -> (i32, i32, i32) {
    %c0_i32 = arith.constant 0 : i32
    %c0_i32_0 = arith.constant 0 : i32
    %c0_i32_1 = arith.constant 0 : i32
    return %arg0, %c0_i32, %c0_i32_0 : i32, i32, i32
  }
  func.func @transform_1(%arg0: i32, %arg1: i32) -> (i32, i32, i32) {
    %c0_i32 = arith.constant 0 : i32
    %c0_i32_0 = arith.constant 0 : i32
    %c0_i32_1 = arith.constant 0 : i32
    %c0_i32_2 = arith.constant 0 : i32
    return %c0_i32, %c0_i32_0, %c0_i32_1 : i32, i32, i32
  }
  func.func @transform_2(%arg0: i32, %arg1: i32) -> (i32, i32, i32) {
    %c0_i32 = arith.constant 0 : i32
    %c0_i32_0 = arith.constant 0 : i32
    %c0_i32_1 = arith.constant 0 : i32
    %c0_i32_2 = arith.constant 0 : i32
    return %c0_i32, %c0_i32_0, %c0_i32_1 : i32, i32, i32
  }
  func.func @transform_3(%arg0: i32, %arg1: i32) -> (i32, i32) {
    %c0_i32 = arith.constant 0 : i32
    %c0_i32_0 = arith.constant 0 : i32
    %c0_i32_1 = arith.constant 0 : i32
    return %c0_i32, %c0_i32_0 : i32, i32
  }
  func.func @transform_4(%arg0: i32, %arg1: i32) -> (i32, i32) {
    %c0_i32 = arith.constant 0 : i32
    %c0_i32_0 = arith.constant 0 : i32
    %c0_i32_1 = arith.constant 0 : i32
    return %c0_i32, %c0_i32_0 : i32, i32
  }
  func.func @transform_5(%arg0: i32, %arg1: i32) -> (i32, i32) {
    %c0_i32 = arith.constant 0 : i32
    %c0_i32_0 = arith.constant 0 : i32
    %c0_i32_1 = arith.constant 0 : i32
    return %c0_i32, %c0_i32_0 : i32, i32
  }
  func.func @transform_6(%arg0: i32, %arg1: i32) -> (i32, i32) {
    %c0_i32 = arith.constant 0 : i32
    %c0_i32_0 = arith.constant 0 : i32
    %c0_i32_1 = arith.constant 0 : i32
    return %c0_i32, %c0_i32_0 : i32, i32
  }
  func.func @transform_7(%arg0: i32, %arg1: i32) -> (i32, i32) {
    %c0_i32 = arith.constant 0 : i32
    %c0_i32_0 = arith.constant 0 : i32
    %c0_i32_1 = arith.constant 0 : i32
    return %c0_i32, %c0_i32_0 : i32, i32
  }
  func.func @transform_8(%arg0: i32, %arg1: i32) -> (i32, i32) {
    %c0_i32 = arith.constant 0 : i32
    %c0_i32_0 = arith.constant 0 : i32
    %c0_i32_1 = arith.constant 0 : i32
    return %c0_i32, %c0_i32_0 : i32, i32
  }
  func.func @transform_9(%arg0: i32, %arg1: i32) -> (i32, i32, i32) {
    %c0_i32 = arith.constant 0 : i32
    %c0_i32_0 = arith.constant 0 : i32
    %c0_i32_1 = arith.constant 0 : i32
    return %arg1, %c0_i32, %c0_i32_0 : i32, i32, i32
  }
  func.func @transform_10(%arg0: i32, %arg1: i32) -> (i32, i32, i32) {
    %c0_i32 = arith.constant 0 : i32
    %c0_i32_0 = arith.constant 0 : i32
    %c0_i32_1 = arith.constant 0 : i32
    return %arg1, %c0_i32, %c0_i32_0 : i32, i32, i32
  }
  func.func @transform_11(%arg0: i32, %arg1: i32) -> (i32, i32, i32) {
    %c0_i32 = arith.constant 0 : i32
    %c0_i32_0 = arith.constant 0 : i32
    %c0_i32_1 = arith.constant 0 : i32
    return %arg1, %c0_i32, %c0_i32_0 : i32, i32, i32
  }
  func.func @transform_12(%arg0: i32, %arg1: i32) -> (i32, i32, i32) {
    %c0_i32 = arith.constant 0 : i32
    %c0_i32_0 = arith.constant 0 : i32
    %c0_i32_1 = arith.constant 0 : i32
    return %arg1, %c0_i32, %c0_i32_0 : i32, i32, i32
  }
  func.func @transform_13(%arg0: i32, %arg1: i32) -> (i32, i32, i32) {
    %c0_i32 = arith.constant 0 : i32
    %c0_i32_0 = arith.constant 0 : i32
    %c0_i32_1 = arith.constant 0 : i32
    return %arg1, %c0_i32, %c0_i32_0 : i32, i32, i32
  }
  func.func @transform_14(%arg0: i32, %arg1: i32) -> (i32, i32, i32) {
    %c0_i32 = arith.constant 0 : i32
    %c0_i32_0 = arith.constant 0 : i32
    %c0_i32_1 = arith.constant 0 : i32
    return %arg1, %c0_i32, %c0_i32_0 : i32, i32, i32
  }
  func.func @transform_15(%arg0: i32, %arg1: i32) -> (i32, i32, i32) {
    %c0_i32 = arith.constant 0 : i32
    %c0_i32_0 = arith.constant 0 : i32
    %c0_i32_1 = arith.constant 0 : i32
    return %arg1, %c0_i32, %c0_i32_0 : i32, i32, i32
  }
  func.func @transform_16(%arg0: i32, %arg1: i32) -> (i32, i32, i32) {
    %c0_i32 = arith.constant 0 : i32
    %c0_i32_0 = arith.constant 0 : i32
    %c0_i32_1 = arith.constant 0 : i32
    return %arg1, %c0_i32, %c0_i32_0 : i32, i32, i32
  }
  func.func @transform_17(%arg0: i32, %arg1: i32) -> (i32, i32, i32) {
    %c0_i32 = arith.constant 0 : i32
    %c0_i32_0 = arith.constant 0 : i32
    %c0_i32_1 = arith.constant 0 : i32
    return %arg1, %c0_i32, %c0_i32_0 : i32, i32, i32
  }
  func.func @transform_18(%arg0: i32, %arg1: i32) -> (i32, i32, i32) {
    %c0_i32 = arith.constant 0 : i32
    %c0_i32_0 = arith.constant 0 : i32
    %c0_i32_1 = arith.constant 0 : i32
    return %arg1, %c0_i32, %c0_i32_0 : i32, i32, i32
  }
  func.func @transform_19(%arg0: i32, %arg1: i32) -> (i32, i32, i32) {
    %c0_i32 = arith.constant 0 : i32
    %c0_i32_0 = arith.constant 0 : i32
    %c0_i32_1 = arith.constant 0 : i32
    return %arg1, %c0_i32, %c0_i32_0 : i32, i32, i32
  }
  func.func @transform_20(%arg0: i32, %arg1: i32) -> (i32, i32) {
    %c0_i32 = arith.constant 0 : i32
    %c0_i32_0 = arith.constant 0 : i32
    %c0_i32_1 = arith.constant 0 : i32
    return %c0_i32, %c0_i32_0 : i32, i32
  }
  func.func @transform_21(%arg0: i32, %arg1: i32) -> (i32, i32) {
    %c0_i32 = arith.constant 0 : i32
    %c0_i32_0 = arith.constant 0 : i32
    %c0_i32_1 = arith.constant 0 : i32
    return %c0_i32, %c0_i32_0 : i32, i32
  }
  func.func @transform_22(%arg0: i32, %arg1: i32) -> (i32, i32) {
    %c0_i32 = arith.constant 0 : i32
    %c0_i32_0 = arith.constant 0 : i32
    %c0_i32_1 = arith.constant 0 : i32
    return %c0_i32, %c0_i32_0 : i32, i32
  }
  func.func @transform_23(%arg0: i32, %arg1: i32) -> (i32, i32) {
    %c0_i32 = arith.constant 0 : i32
    %c0_i32_0 = arith.constant 0 : i32
    %c0_i32_1 = arith.constant 0 : i32
    return %c0_i32, %c0_i32_0 : i32, i32
  }
  func.func @transform_24(%arg0: i32, %arg1: i32) -> (i32, i32) {
    %c0_i32 = arith.constant 0 : i32
    %c0_i32_0 = arith.constant 0 : i32
    %c0_i32_1 = arith.constant 0 : i32
    return %c0_i32, %c0_i32_0 : i32, i32
  }
  func.func @transform_25(%arg0: i32, %arg1: i32) -> (i32, i32) {
    %c0_i32 = arith.constant 0 : i32
    %c0_i32_0 = arith.constant 0 : i32
    %c0_i32_1 = arith.constant 0 : i32
    return %c0_i32, %c0_i32_0 : i32, i32
  }
  func.func @transform_26(%arg0: i32, %arg1: i32) -> (i32, i32, i32) {
    %c0_i32 = arith.constant 0 : i32
    %c0_i32_0 = arith.constant 0 : i32
    %c0_i32_1 = arith.constant 0 : i32
    return %arg0, %c0_i32, %c0_i32_0 : i32, i32, i32
  }
}

</mosaic_0001>

<bundles_post_ra>
// kernel: vit_forward.1
= control target key start
LH: loop header
LB: loop body
LE: loop exit
PB: predicated region body
PF: predicated region fallthrough
CT: control target
= control target key end

     0   :  { %s5598_s0 = inlined_call_operand.vmem [shape: f32[2,16,48], index: 0, kind: input, shape index: {}]   ;;  %s5599_s1 = inlined_call_operand.vmem [shape: f32[1,1,32], index: 1, kind: input, shape index: {}]   ;;  %s5600_s2 = inlined_call_operand.vmem [shape: f32[1,24,32], index: 2, kind: input, shape index: {}]   ;;  %s5601_s3 = inlined_call_operand.vmem [shape: f32[1,48], index: 3, kind: input, shape index: {}]   ;;  %s5602_s4 = inlined_call_operand.vmem [shape: f32[1,48], index: 4, kind: input, shape index: {}]   ;;  %s5603_s5 = inlined_call_operand.vmem [shape: bf16[48,32], index: 5, kind: input, shape index: {}]   ;;  %s5604_s6 = inlined_call_operand.vmem [shape: f32[1,32], index: 6, kind: input, shape index: {}]   ;;  %s5605_s7 = inlined_call_operand.vmem [shape: f32[1,32], index: 7, kind: input, shape index: {}]   ;;  %s5606_s8 = inlined_call_operand.vmem [shape: f32[1,32], index: 8, kind: input, shape index: {}]   ;;  %s5607_s9 = inlined_call_operand.vmem [shape: f32[2,1,32], index: 9, kind: input, shape index: {}]   ;;  %s5608_s10 = inlined_call_operand.vmem [shape: f32[2,1,32], index: 10, kind: input, shape index: {}]   ;;  %s5609_s11 = inlined_call_operand.vmem [shape: bf16[2,32,96], index: 11, kind: input, shape index: {}]   ;;  %s5610_s12 = inlined_call_operand.vmem [shape: bf16[2,32,32], index: 12, kind: input, shape index: {}]   ;;  %s5611_s13 = inlined_call_operand.vmem [shape: f32[2,1,32], index: 13, kind: input, shape index: {}]   ;;  %s5612_s14 = inlined_call_operand.vmem [shape: f32[2,1,32], index: 14, kind: input, shape index: {}]   ;;  %s5613_s15 = inlined_call_operand.vmem [shape: f32[2,1,32], index: 15, kind: input, shape index: {}]   ;;  %s5614_s16 = inlined_call_operand.vmem [shape: bf16[2,32,64], index: 16, kind: input, shape index: {}]   ;;  %s5615_s17 = inlined_call_operand.vmem [shape: f32[2,1,64], index: 17, kind: input, shape index: {}]   ;;  %s5616_s18 = inlined_call_operand.vmem [shape: bf16[2,64,32], index: 18, kind: input, shape index: {}]   ;;  %s5617_s19 = inlined_call_operand.vmem [shape: f32[2,1,32], index: 19, kind: input, shape index: {}]   ;;  %s5618_s20 = inlined_call_operand.vmem [shape: f32[1,32], index: 20, kind: input, shape index: {}]   ;;  %s5619_s21 = inlined_call_operand.vmem [shape: f32[1,32], index: 21, kind: input, shape index: {}]   ;;  %s5620_s22 = inlined_call_operand.vmem [shape: bf16[32,64], index: 22, kind: input, shape index: {}]   ;;  %s5621_s23 = inlined_call_operand.vmem [shape: f32[1,64], index: 23, kind: input, shape index: {}]   ;;  %s5622_s24 = inlined_call_operand.vmem [shape: bf16[64,10], index: 24, kind: input, shape index: {}]   ;;  %s5623_s25 = inlined_call_operand.vmem [shape: f32[1,10], index: 25, kind: input, shape index: {}]   ;;  %s5624_s26 = inlined_call_operand.hbm [shape: f32[2,1,10], index: 26, kind: output, shape index: {}]  }
   0x1   :  { %5631 = sst [smem:[#allocation9_spill]] %s5598_s0 }
   0x2   :  { %5632 = sst [smem:[#allocation10_spill]] %s5599_s1 }
   0x3   :  { %5633 = sst [smem:[#allocation11_spill]] %s5600_s2 }
   0x4   :  { %5634 = sst [smem:[#allocation12_spill]] %s5601_s3 }
   0x5   :  { %5635 = sst [smem:[#allocation13_spill]] %s5602_s4 }
   0x6   :  { %5636 = sst [smem:[#allocation14_spill]] %s5603_s5 }
   0x7   :  { %5637 = sst [smem:[#allocation15_spill]] %s5604_s6 }
   0x8   :  { %5638 = sst [smem:[#allocation16_spill]] %s5605_s7 }
   0x9   :  { %5639 = sst [smem:[#allocation17_spill]] %s5606_s8 }
   0xa   :  { %5640 = sst [smem:[#allocation18_spill]] %s5607_s9 }
   0xb   :  { %5641 = sst [smem:[#allocation19_spill]] %s5608_s10 }
   0xc   :  { %5642 = sst [smem:[#allocation20_spill]] %s5609_s11 }
   0xd   :  { %5643 = sst [smem:[#allocation21_spill]] %s5610_s12 }
   0xe   :  { %5644 = sst [smem:[#allocation22_spill]] %s5621_s23 }
   0xf   :  { %5645 = sst [smem:[#allocation23_spill]] %s5622_s24 }
  0x10   :  { %5646 = sst [smem:[#allocation24_spill]] %s5623_s25 }
  0x11   :  { %5647 = sst [smem:[#allocation25_spill]] %s5624_s26 }
  0x12   :  { %31 = vsyncpa [#allocation4], 0  ;;  %s4761_s27 = smov 0   ;;  %s4763_s3 = smov 0  }
  0x13   :  { %s4765_s7 = smov 0  }
  0x14 LB: > { %5648 = sst [smem:[#allocation6_spill]] %s4598_s3  ;;  %s46_s8 = sadd.s32 1, %s4598_s3  ;;  %s4602_s7 = sphi %s4765_s7, %s37_s7   ;;  %s4598_s3 = sphi %s4763_s3, %s5683_s3   ;;  %s4594_s27 = sphi %s4761_s27, %s5682_s27  }
  0x15   : > { %5649 = sst [smem:[#allocation7_spill]] %s4602_s7  ;;  %p47_p0 = scmp.ge.s32.totalorder %s46_s8, 2 }
  0x16   : > { %p3827_p1 = scmp.ge.s32.totalorder %s4602_s7, 1  ;;  %p823_p2 = scmp.lt.s32.totalorder %s4602_s7, 3 }
  0x17   : > { %s5685_s8 = smov (%p47_p0, %s46_s8), 0 }
  0x18   : > { %5650 = sst [smem:[#allocation8_spill]] %s5685_s8  ;;  %p824_p3 = pnand %p3827_p1, %p823_p2 }
  0x19   : > { %p937_p4 = scmp.lt.s32.totalorder (!%p824_p3), %s4594_s27, 1  ;;  %s5653_s11 = sld [smem:[#allocation20_spill]] (!%p824_p3) }
  0x1a   : > { %827 = sbr.rel (%p824_p3) target bundleno = 5133 (0x140d), region = 124  ;;  %s5654_s12 = sld [smem:[#allocation21_spill]] (!%p824_p3) }
  0x1b   : > { %p3836_p5 = scmp.ne.s32.totalorder (!%p824_p3), %s4594_s27, 0 }
  0x1f   : > { %s4784_s4 = scalar_select %p937_p4, %s4594_s27, 1 }
  0x20   : > { %983 = sbr.rel (%p3836_p5) target bundleno = 873 (0x369), region = 128  ;;  %s5655_s10 = sld [smem:[#allocation9_spill]] (!%p3836_p5) }
  0x21   : > { %s3925_s1 = sshll.u32 %s4784_s4, 4  ;;  %s961_s6 = scalar_lea.vmem %s5613_s15, %s4784_s4 }
  0x22   : > { %s4802_s0 = scalar_lea.vmem %s5653_s11, %s3925_s1  ;;  %s4807_s23 = scalar_lea.vmem %s5654_s12, %s3925_s1 }
  0x23   : > { %s4820_s3 = scalar_lea.vmem %s5614_s16, %s3925_s1  ;;  %s3928_s25 = sshll.u32 %s4784_s4, 5 }
  0x24   : > { %s4834_s2 = scalar_lea.vmem %s5616_s18, %s3928_s25  ;;  %s5656_s9 = sld [smem:[#allocation14_spill]] (!%p3836_p5) }
  0x25   : > { %vm990_vm0 = vcmask 392192   ;;  %s5657_s29 = sld [smem:[#allocation12_spill]]  ;;  %vm1154_vm1 = vcmask 261120   ;;  %vm1251_vm2 = vcmask 253952   ;;  %vm1254_vm3 = vcmask 260096  }
  0x26   : > { %v984_v0 = vld [vmem:[%s5655_s10] sm:$0xff]  ;;  %v986_v1 = vld [vmem:[%s5655_s10 + $0x10] sm:$0xff]  ;;  %v985_v2 = vld [vmem:[%s5655_s10 + $0x8] sm:$0xff]  ;;  %s5658_s30 = sld [smem:[#allocation13_spill]]  ;;  %vm1234_vm4 = vcmask 1046528  }
  0x27   : > { %v991_v3 = vsel %vm990_vm0, %v984_v0, 0.0  ;;  %v997_v4 = vsel %vm990_vm0, %v986_v1, 0.0  ;;  %v987_v5 = vld [vmem:[%s5655_s10 + $0x18] sm:$0xff]  ;;  %v994_v6 = vsel %vm990_vm0, %v985_v2, 0.0  ;;  %s5659_s28 = sld [smem:[#allocation15_spill]] }
  0x28   : > { %992 = vadd.xlane.f32.xlu0 %v991_v3  ;;  %998 = vadd.xlane.f32.xlu1 %v997_v4  ;;  %v1000_v7 = vsel %vm990_vm0, %v987_v5, 0.0  ;;  %s5660_s12 = sld [smem:[#allocation10_spill]] }
  0x29   : > { %s5661_s7 = sld [smem:[#allocation11_spill]] }
  0x2a   : > { %v4330_v28 = vld [vmem:[%s5656_s9 + $0x10] sm:$0xff]   ;;  %v4331_v29 = vld [vmem:[%s5656_s9 + $0x8] sm:$0xff]   ;;  %v4332_v30 = vld [vmem:[%s5656_s9] sm:$0xff]   ;;  %s5663_s26 = sld [smem:[#allocation16_spill]] }
  0x2b   : > { %4028 = vmatprep.subr.bf16.mxu0 %v4330_v28  ;;  %v3837_v45 = vld [vmem:[%s5657_s29] ss:$0 sm:$0xff]  ;;  %s5664_s25 = sld [smem:[#allocation17_spill]] }
  0x2c   : > { %995 = vadd.xlane.f32.xlu0 %v994_v6  ;;  %1001 = vadd.xlane.f32.xlu1 %v1000_v7  ;;  %v3838_v50 = vld [vmem:[%s5658_s30] ss:$0 sm:$0xff] }
  0x2d   : > { %4029 = vmatpush3.bf16.msra.mxu0 %v4330_v28 }
  0x2e   : > { %4030 = vmatprep.subr.bf16.mxu0 %v4331_v29 }
  0x2f   : > { %s5662_s30 = smov %s5661_s7 }
  0x31   : > { %4031 = vmatpush3.bf16.msra.mxu0 %v4331_v29 }
  0x32   : > { %4032 = vmatprep.subr.bf16.mxu0 %v4332_v30 }
  0x35   : > { %4033 = vmatpush3.bf16.msra.mxu0 %v4332_v30 }
  0xb1   : > { %v993_v8 = vpop.xlane.xlu0 %992  ;;  %v999_v9 = vpop.xlane.xlu1 %998 }
  0xb2   : > { %v1004_v10 = vmul.f32 0.020833334, %v993_v8  ;;  %v1006_v11 = vmul.f32 0.020833334, %v999_v9 }
  0xb4   : > { %v1008_v12 = vsub.f32 %v984_v0, %v1004_v10  ;;  %v1010_v13 = vsub.f32 %v986_v1, %v1006_v11  ;;  %v3839_v0 = vld [vmem:[%s5659_s28] ss:$0 sm:$0xff] }
  0xb5   : > { %v996_v14 = vpop.xlane.xlu0 %995  ;;  %v1002_v15 = vpop.xlane.xlu1 %1001 }
  0xb6   : > { %v1005_v16 = vmul.f32 0.020833334, %v996_v14  ;;  %v1007_v17 = vmul.f32 0.020833334, %v1002_v15  ;;  %v1012_v18 = vmul.f32 %v1008_v12, %v1008_v12  ;;  %v1014_v19 = vmul.f32 %v1010_v13, %v1010_v13 }
  0xb8   : > { %v1009_v20 = vsub.f32 %v985_v2, %v1005_v16  ;;  %v1011_v21 = vsub.f32 %v987_v5, %v1007_v17  ;;  %v1016_v22 = vsel %vm990_vm0, %v1012_v18, 0.0  ;;  %v1022_v23 = vsel %vm990_vm0, %v1014_v19, 0.0 }
  0xb9   : > { %1017 = vadd.xlane.f32.xlu0 %v1016_v22 }
  0xba   : > { %v1013_v24 = vmul.f32 %v1009_v20, %v1009_v20  ;;  %v1015_v25 = vmul.f32 %v1011_v21, %v1011_v21 }
  0xbc   : > { %v1019_v26 = vsel %vm990_vm0, %v1013_v24, 0.0  ;;  %v1025_v27 = vsel %vm990_vm0, %v1015_v25, 0.0 }
  0xbd   : > { %1023 = vadd.xlane.f32.xlu0 %v1022_v23  ;;  %1020 = vadd.xlane.f32.xlu1 %v1019_v26 }
  0xc1   : > { %1026 = vadd.xlane.f32.xlu1 %v1025_v27 }
 0x142   : > { %v1018_v31 = vpop.xlane.xlu0 %1017 }
 0x143   : > { %v1028_v32 = vmul.f32 0.020833334, %v1018_v31 }
 0x145   : > { %v1032_v33 = vadd.f32 1e-05, %v1028_v32  ;;  %v1250_v32 = vld [vmem:[%s5660_s12] sm:$0x1] }
 0x146   : > { %v1021_v34 = vpop.xlane.xlu1 %1020  ;;  %v1024_v35 = vpop.xlane.xlu0 %1023  ;;  %1252 = vst.msk [vmem:[#allocation2] sm:$0x1] %vm1251_vm2, %v1250_v32  ;;  %1253 = vst.msk [vmem:[#allocation2 + $0x18] sm:$0x1] %vm1251_vm2, %v1250_v32 }
 0x147   : > { %4333 = vrsqrt.f32 %v1032_v33  ;;  %v1029_v36 = vmul.f32 0.020833334, %v1021_v34  ;;  %v1030_v37 = vmul.f32 0.020833334, %v1024_v35  ;;  %v4604_v33 = vmov 0.0  }
 0x148   : > { %1255 = vst.msk [vmem:[#allocation2 + $0x11] sm:$0x7f] %vm1254_vm3, %v4604_v33  ;;  %1256 = vst.msk [vmem:[#allocation2 + $0x29] sm:$0x7f] %vm1254_vm3, %v4604_v33 }
 0x149   : > { %v1033_v38 = vadd.f32 1e-05, %v1029_v36  ;;  %v1034_v39 = vadd.f32 1e-05, %v1030_v37 }
 0x14a   : > { %v1027_v40 = vpop.xlane.xlu1 %1026 }
 0x14b   : > { %4335 = vrsqrt.f32 %v1033_v38  ;;  %v1031_v41 = vmul.f32 0.020833334, %v1027_v40 }
 0x14c   : > { %4337 = vrsqrt.f32 %v1034_v39 }
 0x14d   : > { %v1035_v42 = vadd.f32 1e-05, %v1031_v41 }
 0x14f   : > { %4339 = vrsqrt.f32 %v1035_v42 }
 0x154   : > { %v4334_v43 = vpop.eup %4333 }
 0x155   : > { %v1040_v44 = vmul.f32 %v4334_v43, %v1008_v12 }
 0x157   : > { %v1050_v49 = vmul.f32 %v3837_v45, %v1040_v44 }
 0x158   : > { %v4336_v46 = vpop.eup %4335 }
 0x159   : > { %v4338_v47 = vpop.eup %4337  ;;  %v1041_v48 = vmul.f32 %v4336_v46, %v1009_v20  ;;  %v1060_v54 = vadd.f32 %v3838_v50, %v1050_v49  ;;  %v1228_v46 = vld [vmem:[%s5661_s7] sm:$0xff] }
 0x15a   : > { %v1042_v51 = vmul.f32 %v4338_v47, %v1010_v13  ;;  %v1229_v47 = vld [vmem:[%s5662_s30 + $0x8] sm:$0xff]  ;;  %v3845_v49 = vld [vmem:[%s5663_s26] ss:$0 sm:$0xff] }
 0x15b   : > { %v1051_v52 = vmul.f32 %v3837_v45, %v1041_v48 }
 0x15c   : > { %v4340_v53 = vpop.eup %4339  ;;  %v1052_v57 = vmul.f32 %v3837_v45, %v1042_v51  ;;  %v1236_v51 = vrot.slane %v1229_v47, 1 }
 0x15d   : > { %v1061_v55 = vadd.f32 %v3838_v50, %v1051_v52  ;;  %v1043_v56 = vmul.f32 %v4340_v53, %v1011_v21  ;;  %v1230_v53 = vld [vmem:[%s5662_s30 + $0x10] sm:$0xff] }
 0x15e   : > { %v1062_v60 = vadd.f32 %v3838_v50, %v1052_v57 }
 0x15f   : > { %v1064_v58 = vpack.c.bf16 %v1061_v55, %v1060_v54  ;;  %v1053_v59 = vmul.f32 %v3837_v45, %v1043_v56  ;;  %v3846_v54 = vld [vmem:[%s5664_s25] ss:$0 sm:$0xff] }
 0x161   : > { %4034 = vmatprep.mubr.msk.bf16.mxu0 %vm990_vm0, %v1064_v58  ;;  %v1063_v61 = vadd.f32 %v3838_v50, %v1053_v59  ;;  %v1235_v50 = vrot.slane %v1228_v46, 1  ;;  %v1238_v58 = vrot.slane %v1230_v53, 1 }
 0x163   : > { %v1065_v62 = vpack.c.bf16 %v1063_v61, %v1062_v60  ;;  %v1237_v57 = vsel %vm1234_vm4, %v1235_v50, %v1236_v51 }
 0x165   : > { %4035 = vmatmul.mubr.msk.bf16.vlgmr.msra.gmra.mxu0 %vm990_vm0, %v1065_v62 }
 0x225   : > { %v4036_v63 = vpop.f32.mrf.mxu0 }
 0x226   : > { %v1146_v4 = vadd.f32 %v4036_v63, %v3839_v0 }
 0x227   : > { %v1137_v1 = vpop.f32.mrf.mxu0 }
 0x228   : > { %v1138_v2 = vadd.f32 %v3839_v0, %v1137_v1  ;;  %v1161_v10 = vsel %vm1154_vm1, %v1146_v4, 0.0 }
 0x229   : > { %v4037_v3 = vpop.f32.mrf.mxu0 }
 0x22a   : > { %v1155_v5 = vsel %vm1154_vm1, %v1138_v2, 0.0  ;;  %v1149_v8 = vadd.f32 %v4037_v3, %v3839_v0 }
 0x22b   : > { %v1140_v6 = vpop.f32.mrf.mxu0  ;;  %1156 = vadd.xlane.f32.xlu0 %v1155_v5 }
 0x22c   : > { %v1141_v7 = vadd.f32 %v3839_v0, %v1140_v6  ;;  %v1164_v11 = vsel %vm1154_vm1, %v1149_v8, 0.0 }
 0x22e   : > { %v1158_v9 = vsel %vm1154_vm1, %v1141_v7, 0.0 }
 0x22f   : > { %1159 = vadd.xlane.f32.xlu1 %v1158_v9  ;;  %1162 = vadd.xlane.f32.xlu0 %v1161_v10 }
 0x233   : > { %1165 = vadd.xlane.f32.xlu1 %v1164_v11 }
 0x2b4   : > { %v1157_v12 = vpop.xlane.xlu0 %1156 }
 0x2b5   : > { %v1168_v13 = vmul.f32 0.03125, %v1157_v12 }
 0x2b7   : > { %v1172_v14 = vsub.f32 %v1138_v2, %v1168_v13  ;;  %v1239_v2 = vsel %vm1234_vm4, %v1236_v51, %v1238_v58 }
 0x2b8   : > { %v1160_v15 = vpop.xlane.xlu1 %1159  ;;  %v1163_v16 = vpop.xlane.xlu0 %1162 }
 0x2b9   : > { %v1169_v17 = vmul.f32 0.03125, %v1160_v15  ;;  %v1170_v18 = vmul.f32 0.03125, %v1163_v16  ;;  %v1176_v19 = vmul.f32 %v1172_v14, %v1172_v14 }
 0x2bb   : > { %v1173_v20 = vsub.f32 %v1141_v7, %v1169_v17  ;;  %v1174_v21 = vsub.f32 %v1146_v4, %v1170_v18  ;;  %v1180_v22 = vsel %vm1154_vm1, %v1176_v19, 0.0 }
 0x2bc   : > { %v1166_v23 = vpop.xlane.xlu1 %1165  ;;  %1181 = vadd.xlane.f32.xlu0 %v1180_v22 }
 0x2bd   : > { %v1171_v24 = vmul.f32 0.03125, %v1166_v23  ;;  %v1177_v25 = vmul.f32 %v1173_v20, %v1173_v20  ;;  %v1178_v26 = vmul.f32 %v1174_v21, %v1174_v21 }
 0x2bf   : > { %v1175_v27 = vsub.f32 %v1149_v8, %v1171_v24  ;;  %v1183_v28 = vsel %vm1154_vm1, %v1177_v25, 0.0  ;;  %v1186_v29 = vsel %vm1154_vm1, %v1178_v26, 0.0 }
 0x2c0   : > { %1184 = vadd.xlane.f32.xlu1 %v1183_v28  ;;  %1187 = vadd.xlane.f32.xlu0 %v1186_v29 }
 0x2c1   : > { %v1179_v30 = vmul.f32 %v1175_v27, %v1175_v27 }
 0x2c3   : > { %v1189_v31 = vsel %vm1154_vm1, %v1179_v30, 0.0 }
 0x2c4   : > { %1190 = vadd.xlane.f32.xlu1 %v1189_v31 }
 0x345   : > { %v1182_v34 = vpop.xlane.xlu0 %1181 }
 0x346   : > { %v1192_v35 = vmul.f32 0.03125, %v1182_v34 }
 0x348   : > { %v1196_v36 = vadd.f32 1e-05, %v1192_v35 }
 0x349   : > { %v1185_v37 = vpop.xlane.xlu1 %1184  ;;  %v1188_v38 = vpop.xlane.xlu0 %1187 }
 0x34a   : > { %4341 = vrsqrt.f32 %v1196_v36  ;;  %v1193_v39 = vmul.f32 0.03125, %v1185_v37  ;;  %v1194_v40 = vmul.f32 0.03125, %v1188_v38 }
 0x34c   : > { %v1197_v41 = vadd.f32 1e-05, %v1193_v39  ;;  %v1198_v42 = vadd.f32 1e-05, %v1194_v40 }
 0x34d   : > { %v1191_v43 = vpop.xlane.xlu1 %1190 }
 0x34e   : > { %4343 = vrsqrt.f32 %v1197_v41  ;;  %v1195_v44 = vmul.f32 0.03125, %v1191_v43 }
 0x34f   : > { %4345 = vrsqrt.f32 %v1198_v42 }
 0x350   : > { %v1199_v45 = vadd.f32 1e-05, %v1195_v44 }
 0x352   : > { %4347 = vrsqrt.f32 %v1199_v45 }
 0x357   : > { %v4342_v48 = vpop.eup %4341 }
 0x358   : > { %v1204_v52 = vmul.f32 %v4342_v48, %v1172_v14 }
 0x35a   : > { %v1214_v55 = vmul.f32 %v3845_v49, %v1204_v52 }
 0x35b   : > { %v4344_v56 = vpop.eup %4343 }
 0x35c   : > { %v4346_v59 = vpop.eup %4345  ;;  %v1224_v60 = vadd.f32 %v3846_v54, %v1214_v55  ;;  %v1205_v61 = vmul.f32 %v4344_v56, %v1173_v20 }
 0x35d   : > { %v1206_v62 = vmul.f32 %v4346_v59, %v1174_v21 }
 0x35e   : > { %v1242_v63 = vadd.f32 %v1237_v57, %v1224_v60  ;;  %v1215_v0 = vmul.f32 %v3845_v49, %v1205_v61 }
 0x35f   : > { %v4348_v1 = vpop.eup %4347  ;;  %v1216_v3 = vmul.f32 %v3845_v49, %v1206_v62 }
 0x360   : > { %1246 = vst.msk [vmem:[#allocation2 + $0x1] sm:$0xff] %vm1154_vm1, %v1242_v63  ;;  %v1225_v4 = vadd.f32 %v3846_v54, %v1215_v0  ;;  %v1207_v5 = vmul.f32 %v4348_v1, %v1175_v27 }
 0x361   : > { %v1226_v6 = vadd.f32 %v3846_v54, %v1216_v3 }
 0x362   : > { %v1243_v7 = vadd.f32 %v1239_v2, %v1225_v4  ;;  %v1217_v8 = vmul.f32 %v3845_v49, %v1207_v5 }
 0x363   : > { %v1244_v9 = vadd.f32 %v1237_v57, %v1226_v6 }
 0x364   : > { %1247 = vst.msk [vmem:[#allocation2 + $0x9] sm:$0xff] %vm1154_vm1, %v1243_v7  ;;  %v1227_v10 = vadd.f32 %v3846_v54, %v1217_v8 }
 0x365   : > { %1248 = vst.msk [vmem:[#allocation2 + $0x19] sm:$0xff] %vm1154_vm1, %v1244_v9 }
 0x366   : > { %v1245_v11 = vadd.f32 %v1239_v2, %v1227_v10 }
 0x368   : > { %1249 = vst.msk [vmem:[#allocation2 + $0x21] sm:$0xff] %vm1154_vm1, %v1245_v11 }
 0x369 PF: > { %v1257_v12 = vld [vmem:[#allocation2] sm:$0xff]  ;;  %vm1265_vm5 = vcmask 261120   ;;  %v4394_v54 = vld [vmem:[%s4802_s0 + $0x8] sm:$0xff]   ;;  %v4605_v55 = vmov 0.0   ;;  %vm4606_vm6 = vmmov 0   ;;  %s5667_s28 = sld [smem:[#allocation19_spill]] }
 0x36a   : > { %v1266_v15 = vsel %vm1265_vm5, %v1257_v12, 0.0  ;;  %4038 = vmatprep.subr.bf16.mxu1 %v4605_v55  ;;  %4042 = vmatprep.mubr.msk.bf16.mxu1 %vm4606_vm6, %v4605_v55  ;;  %v4395_v56 = vld [vmem:[%s4802_s0] sm:$0xff]   ;;  %s5665_s0 = sld [smem:[#allocation18_spill]]  ;;  %vm1464_vm7 = vcmask 64512   ;;  %s4607_s26 = smov 96   ;;  %vm1670_vm8 = vcmask 1043456  }
 0x36b   : > { %v1259_v13 = vld [vmem:[#allocation2 + $0x10] sm:$0xff]  ;;  %v1258_v14 = vld [vmem:[#allocation2 + $0x8] sm:$0xff]  ;;  %1267 = vadd.xlane.f32.xlu0 %v1266_v15  ;;  %4039 = vmatpush3.bf16.msra.mxu1 %v4394_v54  ;;  %s4608_s12 = smov 64   ;;  %s4609_s29 = smov 88   ;;  %vm1600_vm10 = vcmask 195584   ;;  %vm2906_vm11 = vcmask 130048  }
 0x36c   : > { %v1272_v16 = vsel %vm1265_vm5, %v1259_v13, 0.0  ;;  %v1260_v17 = vld [vmem:[#allocation2 + $0x18] sm:$0xff]  ;;  %v1269_v20 = vsel %vm1265_vm5, %v1258_v14, 0.0  ;;  %4040 = vmatprep.subr.bf16.mxu1 %v4605_v55  ;;  %s4610_s25 = smov 120   ;;  %s4611_s11 = smov 56   ;;  %vm3315_vm12 = vcmask 523264  }
 0x36d   : > { %1273 = vadd.xlane.f32.xlu1 %v1272_v16  ;;  %v1275_v21 = vsel %vm1265_vm5, %v1260_v17, 0.0  ;;  %s4612_s24 = smov 80   ;;  %s4615_s5 = smov 72  }
 0x36e   : > { %s4616_s1 = smov 104   ;;  %p3908_p6 = scmp.ne.s32.totalorder %s4594_s27, 1 }
 0x36f   : > { %v1261_v18 = vld [vmem:[#allocation2 + $0x20] sm:$0xff]  ;;  %v1262_v19 = vld [vmem:[#allocation2 + $0x28] sm:$0xff]  ;;  %1270 = vadd.xlane.f32.xlu0 %v1269_v20  ;;  %4041 = vmatpush3.bf16.msra.mxu1 %v4395_v56  ;;  %s5668_s8 = scalar_lea.vmem %s5667_s28, %s4784_s4  ;;  %s4617_s28 = smov 40  }
 0x370   : > { %v1278_v22 = vsel %vm1265_vm5, %v1261_v18, 0.0  ;;  %v1281_v23 = vsel %vm1265_vm5, %v1262_v19, 0.0  ;;  %s5666_s7 = scalar_lea.vmem %s5665_s0, %s4784_s4  ;;  %s4613_s0 = smov 112  }
 0x371   : > { %1276 = vadd.xlane.f32.xlu1 %v1275_v21 }
 0x373   : > { %1279 = vadd.xlane.f32.xlu0 %v1278_v22 }
 0x375   : > { %1282 = vadd.xlane.f32.xlu1 %v1281_v23 }
 0x3f4   : > { %v1268_v24 = vpop.xlane.xlu0 %1267 }
 0x3f5   : > { %v1285_v26 = vmul.f32 0.03125, %v1268_v24 }
 0x3f6   : > { %v1274_v25 = vpop.xlane.xlu1 %1273 }
 0x3f7   : > { %v1287_v27 = vmul.f32 0.03125, %v1274_v25  ;;  %v4913_v28 = vsub.f32 %v1257_v12, %v1285_v26 }
 0x3f8   : > { %v1271_v30 = vpop.xlane.xlu0 %1270 }
 0x3f9   : > { %v4915_v29 = vsub.f32 %v1259_v13, %v1287_v27  ;;  %v1286_v32 = vmul.f32 0.03125, %v1271_v30  ;;  %v1297_v34 = vmul.f32 %v4913_v28, %v4913_v28  ;;  %v3847_v13 = vld [vmem:[%s5666_s7] ss:$0 sm:$0xff]  ;;  %s4614_s7 = smov 48  }
 0x3fa   : > { %v1277_v31 = vpop.xlane.xlu1 %1276 }
 0x3fb   : > { %v1288_v33 = vmul.f32 0.03125, %v1277_v31  ;;  %v1299_v35 = vmul.f32 %v4915_v29, %v4915_v29  ;;  %v1292_v36 = vsub.f32 %v1258_v14, %v1286_v32  ;;  %v1303_v38 = vsel %vm1265_vm5, %v1297_v34, 0.0 }
 0x3fc   : > { %1304 = vadd.xlane.f32.xlu0 %v1303_v38  ;;  %v1280_v39 = vpop.xlane.xlu0 %1279 }
 0x3fd   : > { %v4921_v37 = vsub.f32 %v1260_v17, %v1288_v33  ;;  %v1309_v41 = vsel %vm1265_vm5, %v1299_v35, 0.0  ;;  %v1289_v42 = vmul.f32 0.03125, %v1280_v39  ;;  %v1298_v44 = vmul.f32 %v1292_v36, %v1292_v36 }
 0x3fe   : > { %v1283_v40 = vpop.xlane.xlu1 %1282 }
 0x3ff   : > { %v1290_v43 = vmul.f32 0.03125, %v1283_v40  ;;  %v1300_v45 = vmul.f32 %v4921_v37, %v4921_v37  ;;  %v4927_v46 = vsub.f32 %v1261_v18, %v1289_v42  ;;  %v1306_v48 = vsel %vm1265_vm5, %v1298_v44, 0.0  ;;  %v3848_v18 = vld [vmem:[%s5668_s8] ss:$0 sm:$0xff]  ;;  %s4618_s8 = smov 8  }
 0x400   : > { %1310 = vadd.xlane.f32.xlu0 %v1309_v41  ;;  %1307 = vadd.xlane.f32.xlu1 %v1306_v48 }
 0x401   : > { %v4929_v47 = vsub.f32 %v1262_v19, %v1290_v43  ;;  %v1312_v49 = vsel %vm1265_vm5, %v1300_v45, 0.0  ;;  %v1301_v50 = vmul.f32 %v4927_v46, %v4927_v46 }
 0x403   : > { %v1302_v51 = vmul.f32 %v4929_v47, %v4929_v47  ;;  %v1315_v52 = vsel %vm1265_vm5, %v1301_v50, 0.0 }
 0x404   : > { %1313 = vadd.xlane.f32.xlu1 %v1312_v49  ;;  %1316 = vadd.xlane.f32.xlu0 %v1315_v52 }
 0x405   : > { %v1318_v53 = vsel %vm1265_vm5, %v1302_v51, 0.0 }
 0x408   : > { %1319 = vadd.xlane.f32.xlu1 %v1318_v53 }
 0x485   : > { %v1305_v57 = vpop.xlane.xlu0 %1304 }
 0x486   : > { %v1321_v58 = vmul.f32 0.03125, %v1305_v57 }
 0x488   : > { %v1327_v59 = vadd.f32 1e-05, %v1321_v58 }
 0x489   : > { %v1308_v60 = vpop.xlane.xlu1 %1307  ;;  %v1311_v61 = vpop.xlane.xlu0 %1310 }
 0x48a   : > { %4404 = vrsqrt.f32 %v1327_v59  ;;  %v1322_v62 = vmul.f32 0.03125, %v1308_v60  ;;  %v1323_v63 = vmul.f32 0.03125, %v1311_v61 }
 0x48c   : > { %v1328_v0 = vadd.f32 1e-05, %v1322_v62  ;;  %v1329_v1 = vadd.f32 1e-05, %v1323_v63 }
 0x48d   : > { %v1314_v2 = vpop.xlane.xlu1 %1313  ;;  %v1317_v3 = vpop.xlane.xlu0 %1316 }
 0x48e   : > { %4406 = vrsqrt.f32 %v1328_v0  ;;  %v1324_v4 = vmul.f32 0.03125, %v1314_v2  ;;  %v1325_v6 = vmul.f32 0.03125, %v1317_v3 }
 0x48f   : > { %4408 = vrsqrt.f32 %v1329_v1 }
 0x490   : > { %v1330_v5 = vadd.f32 1e-05, %v1324_v4  ;;  %v1331_v9 = vadd.f32 1e-05, %v1325_v6 }
 0x491   : > { %v1320_v7 = vpop.xlane.xlu1 %1319 }
 0x492   : > { %4410 = vrsqrt.f32 %v1330_v5  ;;  %v1326_v8 = vmul.f32 0.03125, %v1320_v7  ;;  %v1591_v7 = vlaneseq }
 0x494   : > { %v1332_v10 = vadd.f32 1e-05, %v1326_v8  ;;  %v5012_v8 = vand.u32 127, %v1591_v7 }
 0x496   : > { %4412 = vrsqrt.f32 %v1332_v10  ;;  %vm1593_vm9 = vcmp.lt.s32.totalorder %v5012_v8, 17 }
 0x497   : > { %v4405_v11 = vpop.eup %4404  ;;  %4414 = vrsqrt.f32 %v1331_v9 }
 0x498   : > { %v1339_v12 = vmul.f32 %v4405_v11, %v4913_v28 }
 0x49a   : > { %v1351_v16 = vmul.f32 %v3847_v13, %v1339_v12 }
 0x49b   : > { %v4407_v14 = vpop.eup %4406 }
 0x49c   : > { %v1340_v15 = vmul.f32 %v4407_v14, %v1292_v36  ;;  %v4409_v17 = vpop.eup %4408  ;;  %v1363_v21 = vadd.f32 %v3848_v18, %v1351_v16 }
 0x49d   : > { %v1341_v23 = vmul.f32 %v4409_v17, %v4915_v29 }
 0x49e   : > { %v1352_v19 = vmul.f32 %v3847_v13, %v1340_v15 }
 0x49f   : > { %v4411_v20 = vpop.eup %4410  ;;  %v1353_v28 = vmul.f32 %v3847_v13, %v1341_v23 }
 0x4a0   : > { %v1364_v22 = vadd.f32 %v3848_v18, %v1352_v19  ;;  %v1342_v24 = vmul.f32 %v4411_v20, %v4921_v37 }
 0x4a1   : > { %v1365_v33 = vadd.f32 %v3848_v18, %v1353_v28 }
 0x4a2   : > { %v1369_v25 = vpack.c.bf16 %v1364_v22, %v1363_v21  ;;  %v1354_v26 = vmul.f32 %v3847_v13, %v1342_v24 }
 0x4a3   : > { %v4413_v27 = vpop.eup %4412 }
 0x4a4   : > { %4043 = vmatmul.mubr.msk.bf16.vlgmr.msra.gmra.mxu1 %vm1265_vm5, %v1369_v25  ;;  %v4415_v30 = vpop.eup %4414  ;;  %v1366_v31 = vadd.f32 %v3848_v18, %v1354_v26  ;;  %v1344_v32 = vmul.f32 %v4413_v27, %v4929_v47 }
 0x4a5   : > { %4046 = vmatprep.mubr.msk.bf16.mxu1 %vm4606_vm6, %v4605_v55  ;;  %v1343_v34 = vmul.f32 %v4415_v30, %v4927_v46 }
 0x4a6   : > { %v1370_v35 = vpack.c.bf16 %v1366_v31, %v1365_v33  ;;  %v1356_v29 = vmul.f32 %v3847_v13, %v1344_v32 }
 0x4a7   : > { %v1355_v36 = vmul.f32 %v3847_v13, %v1343_v34 }
 0x4a8   : > { %v1368_v37 = vadd.f32 %v3848_v18, %v1356_v29 }
 0x4a9   : > { %v1367_v38 = vadd.f32 %v3848_v18, %v1355_v36 }
 0x4ab   : > { %v1371_v39 = vpack.c.bf16 %v1368_v37, %v1367_v38 }
 0x4ac   : > { %4047 = vmatmul.mubr.msk.bf16.gmra.mxu1 %vm1265_vm5, %v1370_v35 }
 0x4ad   : > { %4050 = vmatprep.mubr.msk.bf16.mxu1 %vm4606_vm6, %v4605_v55 }
 0x4b4   : > { %4051 = vmatmul.mubr.msk.bf16.gmra.mxu1 %vm1265_vm5, %v1371_v39 }
 0x564   : > { %v1431_v40 = vpop.f32.mrf.mxu1 }
 0x566   : > { %v4044_v41 = vpop.f32.mrf.mxu1 }
 0x568   : > { %v1434_v42 = vpop.f32.mrf.mxu1 }
 0x569   : > { %v4967_v43 = vpack.c.bf16 %v1434_v42, %v1431_v40 }
 0x56a   : > { %v4045_v44 = vpop.f32.mrf.mxu1 }
 0x56b   : > { %1460 = vrot.lane.b32.xlu1 %v4967_v43, %s4607_s26  ;;  %4058 = vmatprep.mubr.msk.bf16.mxu1 %vm1464_vm7, %v4967_v43 }
 0x56c   : > { %v1439_v45 = vpop.f32.mrf.mxu1 }
 0x56d   : > { %v4972_v46 = vpack.c.bf16 %v1439_v45, %v1439_v45 }
 0x56e   : > { %v4048_v47 = vpop.f32.mrf.mxu1 }
 0x56f   : > { %1462 = vrot.lane.b32.xlu0 %v4972_v46, %s4607_s26 }
 0x570   : > { %v1442_v48 = vpop.f32.mrf.mxu1 }
 0x572   : > { %v4049_v49 = vpop.f32.mrf.mxu1 }
 0x573   : > { %1661 = vrot.lane.b32.xlu0 %v4972_v46, %s4608_s12 }
 0x574   : > { %v1447_v50 = vpop.f32.mrf.mxu1 }
 0x575   : > { %v4977_v51 = vpack.c.bf16 %v1447_v50, %v1442_v48 }
 0x576   : > { %v4052_v52 = vpop.f32.mrf.mxu1 }
 0x577   : > { %4066 = vmatprep.mubr.msk.bf16.mxu0 %vm1464_vm7, %v4977_v51 }
 0x578   : > { %v1450_v53 = vpop.f32.mrf.mxu1 }
 0x579   : > { %v4981_v54 = vpack.c.bf16 %v1450_v53, %v1450_v53 }
 0x57a   : > { %v4053_v56 = vpop.f32.mrf.mxu1 }
 0x57b   : > { %1529 = vrot.lane.b32.xlu1 %v4981_v54, %s4607_s26 }
 0x57f   : > { %1527 = vrot.lane.b32.xlu1 %v4977_v51, %s4607_s26  ;;  %s4619_s26 = smov 16  }
 0x583   : > { %1659 = vrot.lane.b32.xlu1 %v4967_v43, %s4608_s12 }
 0x587   : > { %1808 = vrot.lane.b32.xlu1 %v4972_v46, %s4609_s29 }
 0x58b   : > { %1724 = vrot.lane.b32.xlu1 %v4981_v54, %s4608_s12 }
 0x5dd   : > { %v1461_v59 = vpop.permute.xlu1 %1460 }
 0x5de   : > { %v1472_v60 = vsel %vm1464_vm7, %v1461_v59, 0 }
 0x5e1   : > { %v1463_v57 = vpop.permute.xlu0 %1462 }
 0x5e2   : > { %4254 = vmatprep.subr.msk.bf16.mxu1 %vm1464_vm7, %v1463_v57  ;;  %v1475_v58 = vsel %vm1464_vm7, %v1463_v57, 0 }
 0x5e3   : > { %4055 = vmatpush3.bf16.xpose.msra.mxu1 %v1475_v58 }
 0x5e4   : > { %4255 = vmatprep.subr.msk.bf16.mxu1 %vm1464_vm7, %v1461_v59 }
 0x5e5   : > { %v1662_v61 = vpop.permute.xlu0 %1661 }
 0x5e6   : > { %v1672_v1 = vsel %vm1670_vm8, %v1662_v61, 0 }
 0x5eb   : > { %4057 = vmatpush3.bf16.xpose.msra.mxu1 %v1472_v60 }
 0x5ec   : > { %4258 = vmatprep.subr.msk.bf16.mxu1 %vm1670_vm8, %v1662_v61 }
 0x5ed   : > { %v1530_v62 = vpop.permute.xlu1 %1529 }
 0x5ee   : > { %4256 = vmatprep.subr.msk.bf16.mxu0 %vm1464_vm7, %v1530_v62  ;;  %v1541_v63 = vsel %vm1464_vm7, %v1530_v62, 0 }
 0x5ef   : > { %4063 = vmatpush3.bf16.xpose.msra.mxu0 %v1541_v63 }
 0x5f1   : > { %v1528_v0 = vpop.permute.xlu1 %1527 }
 0x5f2   : > { %4059 = vmatmul.mubr.msk.bf16.vlgmr.msra.gmra.mxu1 %vm1464_vm7, %v4972_v46  ;;  %4257 = vmatprep.subr.msk.bf16.mxu0 %vm1464_vm7, %v1528_v0  ;;  %v1538_v3 = vsel %vm1464_vm7, %v1528_v0, 0 }
 0x5f3   : > { %4071 = vmatpush3.bf16.msra.mxu1 %v1672_v1 }
 0x5f5   : > { %v1660_v2 = vpop.permute.xlu1 %1659 }
 0x5f6   : > { %4072 = vmatprep.subr.bf16.mxu1 %v1660_v2 }
 0x5f7   : > { %4065 = vmatpush3.bf16.xpose.msra.mxu0 %v1538_v3  ;;  %4073 = vmatpush3.bf16.msra.mxu1 %v1660_v2 }
 0x5f9   : > { %v1809_v4 = vpop.permute.xlu1 %1808 }
 0x5fa   : > { %4260 = vmatprep.subr.msk.bf16.mxu0 %vm1464_vm7, %v1809_v4  ;;  %v1820_v6 = vsel %vm1464_vm7, %v1809_v4, 0 }
 0x5fd   : > { %v5004_v5 = vpop.permute.xlu1 %1724 }
 0x5fe   : > { %4067 = vmatmul.mubr.msk.bf16.vlgmr.msra.gmra.mxu0 %vm1464_vm7, %v4981_v54  ;;  %4259 = vmatprep.subr.msk.bf16.mxu1 %vm1670_vm8, %v5004_v5  ;;  %v1734_v63 = vsel %vm1670_vm8, %v5004_v5, 0 }
 0x5ff   : > { %4087 = vmatpush3.bf16.xpose.msra.mxu0 %v1820_v6 }
 0x6b2   : > { %v4060_v9 = vpop.f32.mrf.mxu1 }
 0x6b3   : > { %v1596_v10 = vsel %vm1593_vm9, %v4060_v9, -1e+30 }
 0x6b4   : > { %v1511_v11 = vpop.f32.mrf.mxu1  ;;  %v1607_v12 = vsel %vm1600_vm10, %v1596_v10, -inf }
 0x6b5   : > { %v1594_v13 = vsel %vm1593_vm9, %v1511_v11, -1e+30  ;;  %1608 = vmax.xlane.f32.xlu0 %v1607_v12 }
 0x6b6   : > { %v4061_v14 = vpop.f32.mrf.mxu1  ;;  %v1601_v16 = vsel %vm1600_vm10, %v1594_v13, -inf }
 0x6b8   : > { %v1514_v15 = vpop.f32.mrf.mxu1 }
 0x6b9   : > { %v1595_v17 = vsel %vm1593_vm9, %v1514_v15, -1e+30  ;;  %1602 = vmax.xlane.f32.xlu0 %v1601_v16 }
 0x6ba   : > { %v1604_v18 = vsel %vm1600_vm10, %v1595_v17, -inf }
 0x6bb   : > { %1605 = vmax.xlane.f32.xlu1 %v1604_v18 }
 0x6be   : > { %v4068_v19 = vpop.f32.mrf.mxu0 }
 0x6bf   : > { %v1599_v20 = vsel %vm1593_vm9, %v4068_v19, -1e+30 }
 0x6c0   : > { %v1577_v21 = vpop.f32.mrf.mxu0  ;;  %v1616_v22 = vsel %vm1600_vm10, %v1599_v20, -inf }
 0x6c1   : > { %v1597_v23 = vsel %vm1593_vm9, %v1577_v21, -1e+30  ;;  %1617 = vmax.xlane.f32.xlu1 %v1616_v22 }
 0x6c2   : > { %v4069_v24 = vpop.f32.mrf.mxu0  ;;  %v1610_v25 = vsel %vm1600_vm10, %v1597_v23, -inf }
 0x6c3   : > { %1611 = vmax.xlane.f32.xlu0 %v1610_v25 }
 0x6c4   : > { %v1580_v26 = vpop.f32.mrf.mxu0 }
 0x6c5   : > { %v1598_v27 = vsel %vm1593_vm9, %v1580_v26, -1e+30 }
 0x6c6   : > { %v1613_v28 = vsel %vm1600_vm10, %v1598_v27, -inf }
 0x6c7   : > { %1614 = vmax.xlane.f32.xlu0 %v1613_v28 }
 0x6d2   : > { %1806 = vrot.lane.b32.xlu1 %v4967_v43, %s4609_s29 }
 0x6d6   : > { %1802 = vrot.lane.b32.xlu1 %v4967_v43, %s4610_s25 }
 0x6da   : > { %1874 = vrot.lane.b32.xlu1 %v4977_v51, %s4609_s29 }
 0x6dd   : > { %1722 = vrot.lane.b32.xlu0 %v4977_v51, %s4608_s12  ;;  %s5675_s12 = sld [smem:[#allocation22_spill]] (!%p3908_p6) }
 0x6de   : > { %1872 = vrot.lane.b32.xlu1 %v4981_v54, %s4610_s25 }
 0x6e1   : > { %1876 = vrot.lane.b32.xlu0 %v4981_v54, %s4609_s29 }
 0x6e2   : > { %2002 = vrot.lane.b32.xlu1 %v4967_v43, %s4611_s11 }
 0x6e5   : > { %1804 = vrot.lane.b32.xlu0 %v4972_v46, %s4610_s25 }
 0x6e6   : > { %2150 = vrot.lane.b32.xlu1 %v4972_v46, %s4612_s24 }
 0x6e9   : > { %1870 = vrot.lane.b32.xlu0 %v4977_v51, %s4610_s25  ;;  %s5669_s25 = scalar_lea.vmem %s5611_s13, %s4784_s4 }
 0x6ea   : > { %2066 = vrot.lane.b32.xlu1 %v4981_v54, %s4611_s11 }
 0x73e   : > { %v1609_v30 = vpop.xlane.xlu0 %1608 }
 0x73f   : > { %v1621_v31 = vsub.f32 %v1596_v10, %v1609_v30 }
 0x741   : > { %v1629_v33 = vmul.f32 1.442695, %v1621_v31 }
 0x742   : > { %v1603_v32 = vpop.xlane.xlu0 %1602 }
 0x743   : > { %v1619_v34 = vsub.f32 %v1594_v13, %v1603_v32  ;;  %4416 = vpow2.f32 %v1629_v33 }
 0x744   : > { %v1606_v35 = vpop.xlane.xlu1 %1605 }
 0x745   : > { %v1625_v29 = vmul.f32 1.442695, %v1619_v34  ;;  %v1620_v36 = vsub.f32 %v1595_v17, %v1606_v35 }
 0x747   : > { %v1627_v37 = vmul.f32 1.442695, %v1620_v36  ;;  %4418 = vpow2.f32 %v1625_v29 }
 0x749   : > { %4420 = vpow2.f32 %v1627_v37 }
 0x74a   : > { %v1618_v38 = vpop.xlane.xlu1 %1617 }
 0x74b   : > { %v1624_v39 = vsub.f32 %v1599_v20, %v1618_v38 }
 0x74c   : > { %v1612_v40 = vpop.xlane.xlu0 %1611 }
 0x74d   : > { %v1622_v41 = vsub.f32 %v1597_v23, %v1612_v40  ;;  %v1635_v44 = vmul.f32 1.442695, %v1624_v39 }
 0x74e   : > { %v1807_v42 = vpop.permute.xlu1 %1806 }
 0x74f   : > { %v1817_v45 = vsel %vm1464_vm7, %v1807_v42, 0  ;;  %4261 = vmatprep.subr.msk.bf16.mxu0 %vm1464_vm7, %v1807_v42  ;;  %v1631_v47 = vmul.f32 1.442695, %v1622_v41  ;;  %4422 = vpow2.f32 %v1635_v44 }
 0x750   : > { %4089 = vmatpush3.bf16.xpose.msra.mxu0 %v1817_v45  ;;  %v1615_v48 = vpop.xlane.xlu0 %1614  ;;  %v5054_v53 = vpop.eup %4416 }
 0x751   : > { %v1623_v49 = vsub.f32 %v1598_v27, %v1615_v48  ;;  %4424 = vpow2.f32 %v1631_v47  ;;  %v1656_v62 = vpack.c.bf16 %v5054_v53, %v5054_v53 }
 0x752   : > { %v1803_v50 = vpop.permute.xlu1 %1802 }
 0x753   : > { %v1633_v52 = vmul.f32 1.442695, %v1623_v49  ;;  %4090 = vmatprep.mubr.msk.bf16.mxu0 %vm1464_vm7, %v1803_v50 }
 0x754   : > { %v1723_v56 = vpop.permute.xlu0 %1722  ;;  %v5056_v57 = vpop.eup %4418 }
 0x755   : > { %4426 = vpow2.f32 %v1633_v52 }
 0x756   : > { %v5058_v58 = vpop.eup %4420  ;;  %v1875_v59 = vpop.permute.xlu1 %1874 }
 0x757   : > { %v1655_v60 = vpack.c.bf16 %v5058_v58, %v5056_v57  ;;  %v1885_v13 = vsel %vm1464_vm7, %v1875_v59, 0 }
 0x758   : > { %v1877_v61 = vpop.permute.xlu0 %1876 }
 0x759   : > { %4074 = vmatprep.mubr.msk.bf16.mxu1 %vm1600_vm10, %v1655_v60  ;;  %v1888_v11 = vsel %vm1464_vm7, %v1877_v61, 0 }
 0x75a   : > { %4075 = vmatmul.mubr.msk.bf16.vlgmr.msra.gmra.mxu1 %vm1600_vm10, %v1656_v62  ;;  %v1873_v1 = vpop.permute.xlu1 %1872 }
 0x75b   : > { %4079 = vmatpush3.bf16.msra.mxu1 %v1734_v63 }
 0x75c   : > { %4080 = vmatprep.subr.bf16.mxu1 %v1723_v56  ;;  %v1805_v0 = vpop.permute.xlu0 %1804  ;;  %v5069_v2 = vpop.eup %4422 }
 0x75d   : > { %4091 = vmatmul.mubr.msk.bf16.vlgmr.msra.gmra.mxu0 %vm1464_vm7, %v1805_v0  ;;  %v1658_v9 = vpack.c.bf16 %v5069_v2, %v5069_v2 }
 0x75e   : > { %v5072_v3 = vpop.eup %4424  ;;  %v5076_v6 = vpop.permute.xlu1 %2002 }
 0x75f   : > { %4081 = vmatpush3.bf16.msra.mxu1 %v1723_v56 }
 0x760   : > { %4262 = vmatprep.subr.msk.bf16.mxu1 %vm1464_vm7, %v1877_v61  ;;  %v1871_v10 = vpop.permute.xlu0 %1870 }
 0x762   : > { %v5074_v4 = vpop.eup %4426  ;;  %v5087_v12 = vpop.permute.xlu1 %2150 }
 0x763   : > { %v1657_v5 = vpack.c.bf16 %v5074_v4, %v5072_v3 }
 0x765   : > { %4082 = vmatprep.mubr.msk.bf16.mxu1 %vm1600_vm10, %v1657_v5 }
 0x766   : > { %4083 = vmatmul.mubr.msk.bf16.vlgmr.msra.gmra.mxu1 %vm1600_vm10, %v1658_v9  ;;  %v2067_v14 = vpop.permute.xlu1 %2066 }
 0x767   : > { %4095 = vmatpush3.bf16.xpose.msra.mxu1 %v1888_v11  ;;  %4098 = vmatprep.mubr.msk.bf16.mxu1 %vm1464_vm7, %v1871_v10  ;;  %v2076_v15 = vsel %vm1670_vm8, %v2067_v14, 0 }
 0x768   : > { %4263 = vmatprep.subr.msk.bf16.mxu1 %vm1464_vm7, %v1875_v59 }
 0x76f   : > { %4097 = vmatpush3.bf16.xpose.msra.mxu1 %v1885_v13 }
 0x770   : > { %4265 = vmatprep.subr.msk.bf16.mxu1 %vm1670_vm8, %v2067_v14 }
 0x776   : > { %4099 = vmatmul.mubr.msk.bf16.vlgmr.msra.gmra.mxu1 %vm1464_vm7, %v1873_v1 }
 0x777   : > { %4111 = vmatpush3.bf16.msra.mxu1 %v2076_v15 }
 0x81a   : > { %v5093_v16 = vpop.f32.mrf.mxu1 }
 0x81c   : > { %v5095_v17 = vpop.f32.mrf.mxu1 }
 0x81d   : > { %v4092_v18 = vpop.f32.mrf.mxu0 }
 0x81e   : > { %v1940_v19 = vsel %vm1593_vm9, %v4092_v18, -1e+30  ;;  %v4077_v20 = vpop.f32.mrf.mxu1 }
 0x81f   : > { %v1856_v21 = vpop.f32.mrf.mxu0  ;;  %v1950_v22 = vsel %vm1600_vm10, %v1940_v19, -inf }
 0x820   : > { %v1938_v23 = vsel %vm1593_vm9, %v1856_v21, -1e+30  ;;  %1951 = vmax.xlane.f32.xlu0 %v1950_v22  ;;  %v5103_v27 = vpop.f32.mrf.mxu1 }
 0x821   : > { %v4093_v24 = vpop.f32.mrf.mxu0  ;;  %v1944_v26 = vsel %vm1600_vm10, %v1938_v23, -inf }
 0x823   : > { %v1859_v25 = vpop.f32.mrf.mxu0 }
 0x824   : > { %v1939_v28 = vsel %vm1593_vm9, %v1859_v25, -1e+30  ;;  %1945 = vmax.xlane.f32.xlu0 %v1944_v26 }
 0x825   : > { %v1947_v30 = vsel %vm1600_vm10, %v1939_v28, -inf }
 0x826   : > { %v5108_v31 = vpop.f32.mrf.mxu1  ;;  %1948 = vmax.xlane.f32.xlu1 %v1947_v30 }
 0x828   : > { %v5110_v32 = vpop.f32.mrf.mxu1 }
 0x82a   : > { %v4085_v33 = vpop.f32.mrf.mxu1 }
 0x82c   : > { %v5112_v34 = vpop.f32.mrf.mxu1 }
 0x836   : > { %v4100_v35 = vpop.f32.mrf.mxu1 }
 0x837   : > { %v5116_v29 = vsel %vm1593_vm9, %v4100_v35, -1e+30 }
 0x838   : > { %v1924_v36 = vpop.f32.mrf.mxu1  ;;  %v1959_v37 = vsel %vm1600_vm10, %v5116_v29, -inf }
 0x839   : > { %1960 = vmax.xlane.f32.xlu1 %v1959_v37  ;;  %v1941_v39 = vsel %vm1593_vm9, %v1924_v36, -1e+30 }
 0x83a   : > { %v4101_v38 = vpop.f32.mrf.mxu1  ;;  %2004 = vrot.lane.b32.xlu0 %v4972_v46, %s4611_s11  ;;  %v1953_v41 = vsel %vm1600_vm10, %v1941_v39, -inf }
 0x83c   : > { %v1927_v40 = vpop.f32.mrf.mxu1 }
 0x83d   : > { %v1942_v42 = vsel %vm1593_vm9, %v1927_v40, -1e+30 }
 0x83e   : > { %v1956_v44 = vsel %vm1600_vm10, %v1942_v42, -inf }
 0x84a   : > { %2148 = vrot.lane.b32.xlu1 %v4967_v43, %s4612_s24 }
 0x84e   : > { %2144 = vrot.lane.b32.xlu1 %v4967_v43, %s4613_s0 }
 0x852   : > { %2216 = vrot.lane.b32.xlu1 %v4977_v51, %s4612_s24 }
 0x856   : > { %2214 = vrot.lane.b32.xlu1 %v4981_v54, %s4613_s0 }
 0x859   : > { %1954 = vmax.xlane.f32.xlu0 %v1953_v41 }
 0x85a   : > { %2344 = vrot.lane.b32.xlu1 %v4967_v43, %s4614_s7 }
 0x85d   : > { %1957 = vmax.xlane.f32.xlu0 %v1956_v44 }
 0x85e   : > { %2492 = vrot.lane.b32.xlu1 %v4972_v46, %s4615_s5 }
 0x862   : > { %2408 = vrot.lane.b32.xlu1 %v4981_v54, %s4614_s7 }
 0x873   : > { %2064 = vrot.lane.b32.xlu0 %v4977_v51, %s4611_s11 }
 0x877   : > { %2218 = vrot.lane.b32.xlu0 %v4981_v54, %s4612_s24  ;;  %s5670_s24 = scalar_lea.vmem %s5612_s14, %s4784_s4 }
 0x87b   : > { %2146 = vrot.lane.b32.xlu0 %v4972_v46, %s4613_s0 }
 0x87f   : > { %2212 = vrot.lane.b32.xlu0 %v4977_v51, %s4613_s0 }
 0x8a9   : > { %v1952_v45 = vpop.xlane.xlu0 %1951 }
 0x8aa   : > { %v1964_v47 = vsub.f32 %v1940_v19, %v1952_v45 }
 0x8ac   : > { %v1972_v49 = vmul.f32 1.442695, %v1964_v47 }
 0x8ad   : > { %v1946_v48 = vpop.xlane.xlu0 %1945 }
 0x8ae   : > { %v1962_v50 = vsub.f32 %v1938_v23, %v1946_v48  ;;  %4428 = vpow2.f32 %v1972_v49 }
 0x8af   : > { %v1949_v52 = vpop.xlane.xlu1 %1948 }
 0x8b0   : > { %v1968_v56 = vmul.f32 1.442695, %v1962_v50  ;;  %v1963_v59 = vsub.f32 %v1939_v28, %v1949_v52 }
 0x8b1   : > { %v2005_v60 = vpop.permute.xlu0 %2004 }
 0x8b2   : > { %v1970_v61 = vmul.f32 1.442695, %v1963_v59  ;;  %v2014_v62 = vsel %vm1670_vm8, %v2005_v60, 0  ;;  %4264 = vmatprep.subr.msk.bf16.mxu0 %vm1670_vm8, %v2005_v60  ;;  %4430 = vpow2.f32 %v1968_v56 }
 0x8b3   : > { %4103 = vmatpush3.bf16.msra.mxu0 %v2014_v62 }
 0x8b4   : > { %4432 = vpow2.f32 %v1970_v61  ;;  %4104 = vmatprep.subr.bf16.mxu0 %v5076_v6 }
 0x8b7   : > { %4105 = vmatpush3.bf16.msra.mxu0 %v5076_v6  ;;  %v2162_v6 = vsel %vm1464_vm7, %v5087_v12, 0 }
 0x8b8   : > { %4266 = vmatprep.subr.msk.bf16.mxu0 %vm1464_vm7, %v5087_v12 }
 0x8bb   : > { %v5152_v63 = vpop.eup %4428 }
 0x8bc   : > { %v1999_v10 = vpack.c.bf16 %v5152_v63, %v5152_v63 }
 0x8bf   : > { %v5154_v0 = vpop.eup %4430 }
 0x8c1   : > { %v5156_v1 = vpop.eup %4432 }
 0x8c2   : > { %v1961_v5 = vpop.xlane.xlu1 %1960  ;;  %v1998_v9 = vpack.c.bf16 %v5156_v1, %v5154_v0  ;;  %v1983_v8 = vsel %vm1600_vm10, %v5156_v1, 0.0 }
 0x8c3   : > { %v1967_v15 = vsub.f32 %v5116_v29, %v1961_v5 }
 0x8c4   : > { %4106 = vmatprep.mubr.msk.bf16.mxu0 %vm1600_vm10, %v1998_v9 }
 0x8c5   : > { %4107 = vmatmul.mubr.msk.bf16.vlgmr.msra.gmra.mxu0 %vm1600_vm10, %v1999_v10  ;;  %v1978_v20 = vmul.f32 1.442695, %v1967_v15 }
 0x8c6   : > { %v2149_v11 = vpop.permute.xlu1 %2148  ;;  %4119 = vmatpush3.bf16.xpose.msra.mxu0 %v2162_v6 }
 0x8c7   : > { %4267 = vmatprep.subr.msk.bf16.mxu0 %vm1464_vm7, %v2149_v11  ;;  %v2159_v14 = vsel %vm1464_vm7, %v2149_v11, 0  ;;  %4434 = vpow2.f32 %v1978_v20 }
 0x8ca   : > { %v2145_v13 = vpop.permute.xlu1 %2144 }
 0x8cb   : > { %4122 = vmatprep.mubr.msk.bf16.mxu0 %vm1464_vm7, %v2145_v13 }
 0x8ce   : > { %4121 = vmatpush3.bf16.xpose.msra.mxu0 %v2159_v14  ;;  %v2217_v25 = vpop.permute.xlu1 %2216 }
 0x8d2   : > { %v2215_v30 = vpop.permute.xlu1 %2214 }
 0x8d4   : > { %v5172_v33 = vpop.eup %4434 }
 0x8d5   : > { %v2001_v38 = vpack.c.bf16 %v5172_v33, %v5172_v33 }
 0x8d6   : > { %v5178_v36 = vpop.permute.xlu1 %2344 }
 0x8da   : > { %v5189_v41 = vpop.permute.xlu1 %2492 }
 0x8de   : > { %v2409_v44 = vpop.permute.xlu1 %2408 }
 0x8df   : > { %v2418_v45 = vsel %vm1670_vm8, %v2409_v44, 0 }
 0x8e2   : > { %v1955_v18 = vpop.xlane.xlu0 %1954 }
 0x8e3   : > { %v1965_v19 = vsub.f32 %v1941_v39, %v1955_v18 }
 0x8e5   : > { %v1974_v21 = vmul.f32 1.442695, %v1965_v19 }
 0x8e6   : > { %v1958_v22 = vpop.xlane.xlu0 %1957 }
 0x8e7   : > { %v1966_v12 = vsub.f32 %v1942_v42, %v1958_v22  ;;  %4436 = vpow2.f32 %v1974_v21  ;;  %v2227_v42 = vsel %vm1464_vm7, %v2217_v25, 0 }
 0x8e9   : > { %v1976_v23 = vmul.f32 1.442695, %v1966_v12 }
 0x8ea   : > { %v2065_v24 = vpop.permute.xlu0 %2064 }
 0x8eb   : > { %4438 = vpow2.f32 %v1976_v23  ;;  %4112 = vmatprep.subr.bf16.mxu1 %v2065_v24 }
 0x8ec   : > { %4113 = vmatpush3.bf16.msra.mxu1 %v2065_v24 }
 0x8ee   : > { %v2219_v26 = vpop.permute.xlu0 %2218 }
 0x8ef   : > { %4268 = vmatprep.subr.msk.bf16.mxu1 %vm1464_vm7, %v2219_v26  ;;  %v2230_v39 = vsel %vm1464_vm7, %v2219_v26, 0 }
 0x8f2   : > { %v2147_v28 = vpop.permute.xlu0 %2146 }
 0x8f3   : > { %4123 = vmatmul.mubr.msk.bf16.vlgmr.msra.gmra.mxu0 %vm1464_vm7, %v2147_v28 }
 0x8f4   : > { %v5174_v35 = vpop.eup %4436 }
 0x8f6   : > { %v2213_v40 = vpop.permute.xlu0 %2212 }
 0x8f8   : > { %v5176_v29 = vpop.eup %4438 }
 0x8f9   : > { %v2000_v37 = vpack.c.bf16 %v5176_v29, %v5174_v35 }
 0x8fb   : > { %4114 = vmatprep.mubr.msk.bf16.mxu1 %vm1600_vm10, %v2000_v37 }
 0x8fc   : > { %4115 = vmatmul.mubr.msk.bf16.vlgmr.msra.gmra.mxu1 %vm1600_vm10, %v2001_v38 }
 0x8fd   : > { %4127 = vmatpush3.bf16.xpose.msra.mxu1 %v2230_v39  ;;  %4130 = vmatprep.mubr.msk.bf16.mxu1 %vm1464_vm7, %v2213_v40 }
 0x8fe   : > { %4269 = vmatprep.subr.msk.bf16.mxu1 %vm1464_vm7, %v2217_v25 }
 0x905   : > { %4129 = vmatpush3.bf16.xpose.msra.mxu1 %v2227_v42 }
 0x906   : > { %4271 = vmatprep.subr.msk.bf16.mxu1 %vm1670_vm8, %v2409_v44 }
 0x90c   : > { %4131 = vmatmul.mubr.msk.bf16.vlgmr.msra.gmra.mxu1 %vm1464_vm7, %v2215_v30 }
 0x90d   : > { %4143 = vmatpush3.bf16.msra.mxu1 %v2418_v45 }
 0x985   : > { %v5195_v47 = vpop.f32.mrf.mxu0 }
 0x987   : > { %v5197_v48 = vpop.f32.mrf.mxu0 }
 0x989   : > { %v4109_v49 = vpop.f32.mrf.mxu0 }
 0x98b   : > { %v5199_v50 = vpop.f32.mrf.mxu0 }
 0x9b3   : > { %v4124_v52 = vpop.f32.mrf.mxu0 }
 0x9b4   : > { %v2282_v56 = vsel %vm1593_vm9, %v4124_v52, -1e+30 }
 0x9b5   : > { %v2198_v59 = vpop.f32.mrf.mxu0  ;;  %v2292_v60 = vsel %vm1600_vm10, %v2282_v56, -inf }
 0x9b6   : > { %v2280_v61 = vsel %vm1593_vm9, %v2198_v59, -1e+30  ;;  %2293 = vmax.xlane.f32.xlu0 %v2292_v60 }
 0x9b7   : > { %v4125_v62 = vpop.f32.mrf.mxu0  ;;  %v2286_v9 = vsel %vm1600_vm10, %v2280_v61, -inf }
 0x9b9   : > { %v2201_v5 = vpop.f32.mrf.mxu0 }
 0x9ba   : > { %v2281_v10 = vsel %vm1593_vm9, %v2201_v5, -1e+30  ;;  %2287 = vmax.xlane.f32.xlu0 %v2286_v9 }
 0x9bb   : > { %v2289_v6 = vsel %vm1600_vm10, %v2281_v10, -inf }
 0x9bc   : > { %v5210_v11 = vpop.f32.mrf.mxu1  ;;  %2290 = vmax.xlane.f32.xlu1 %v2289_v6 }
 0x9be   : > { %v5212_v13 = vpop.f32.mrf.mxu1 }
 0x9c0   : > { %v4117_v14 = vpop.f32.mrf.mxu1 }
 0x9c2   : > { %v5214_v15 = vpop.f32.mrf.mxu1 }
 0x9cc   : > { %v4132_v18 = vpop.f32.mrf.mxu1 }
 0x9cd   : > { %v2285_v19 = vsel %vm1593_vm9, %v4132_v18, -1e+30 }
 0x9ce   : > { %v2266_v20 = vpop.f32.mrf.mxu1  ;;  %v2301_v21 = vsel %vm1600_vm10, %v2285_v19, -inf }
 0x9cf   : > { %2302 = vmax.xlane.f32.xlu1 %v2301_v21  ;;  %v2283_v12 = vsel %vm1593_vm9, %v2266_v20, -1e+30 }
 0x9d0   : > { %v4133_v22 = vpop.f32.mrf.mxu1  ;;  %2346 = vrot.lane.b32.xlu0 %v4972_v46, %s4614_s7  ;;  %v2295_v24 = vsel %vm1600_vm10, %v2283_v12, -inf }
 0x9d2   : > { %v2269_v23 = vpop.f32.mrf.mxu1 }
 0x9d3   : > { %v2284_v25 = vsel %vm1593_vm9, %v2269_v23, -1e+30 }
 0x9d4   : > { %v2298_v26 = vsel %vm1600_vm10, %v2284_v25, -inf }
 0x9e0   : > { %2490 = vrot.lane.b32.xlu1 %v4967_v43, %s4615_s5 }
 0x9e4   : > { %2486 = vrot.lane.b32.xlu1 %v4967_v43, %s4616_s1 }
 0x9e8   : > { %2558 = vrot.lane.b32.xlu1 %v4977_v51, %s4615_s5 }
 0x9ec   : > { %2556 = vrot.lane.b32.xlu1 %v4981_v54, %s4616_s1 }
 0x9ef   : > { %2296 = vmax.xlane.f32.xlu0 %v2295_v24 }
 0x9f3   : > { %2299 = vmax.xlane.f32.xlu0 %v2298_v26 }
 0xa09   : > { %2406 = vrot.lane.b32.xlu0 %v4977_v51, %s4614_s7  ;;  %s5673_s7 = sld [smem:[#allocation23_spill]] (!%p3908_p6) }
 0xa0d   : > { %2560 = vrot.lane.b32.xlu0 %v4981_v54, %s4615_s5 }
 0xa11   : > { %2488 = vrot.lane.b32.xlu0 %v4972_v46, %s4616_s1 }
 0xa15   : > { %2554 = vrot.lane.b32.xlu0 %v4977_v51, %s4616_s1  ;;  %s5671_s1 = scalar_lea.vmem %s5615_s17, %s4784_s4 }
 0xa3f   : > { %v2294_v28 = vpop.xlane.xlu0 %2293 }
 0xa40   : > { %v2306_v30 = vsub.f32 %v2282_v56, %v2294_v28 }
 0xa42   : > { %v2314_v38 = vmul.f32 1.442695, %v2306_v30 }
 0xa43   : > { %v2288_v37 = vpop.xlane.xlu0 %2287 }
 0xa44   : > { %v2304_v39 = vsub.f32 %v2280_v61, %v2288_v37  ;;  %4440 = vpow2.f32 %v2314_v38 }
 0xa45   : > { %v2291_v40 = vpop.xlane.xlu1 %2290 }
 0xa46   : > { %v2310_v42 = vmul.f32 1.442695, %v2304_v39  ;;  %v2305_v44 = vsub.f32 %v2281_v10, %v2291_v40 }
 0xa47   : > { %v2347_v45 = vpop.permute.xlu0 %2346 }
 0xa48   : > { %v2312_v49 = vmul.f32 1.442695, %v2305_v44  ;;  %v2356_v52 = vsel %vm1670_vm8, %v2347_v45, 0  ;;  %4270 = vmatprep.subr.msk.bf16.mxu0 %vm1670_vm8, %v2347_v45  ;;  %4442 = vpow2.f32 %v2310_v42 }
 0xa49   : > { %4135 = vmatpush3.bf16.msra.mxu0 %v2356_v52 }
 0xa4a   : > { %4444 = vpow2.f32 %v2312_v49  ;;  %4136 = vmatprep.subr.bf16.mxu0 %v5178_v36 }
 0xa4d   : > { %4137 = vmatpush3.bf16.msra.mxu0 %v5178_v36  ;;  %v2504_v36 = vsel %vm1464_vm7, %v5189_v41, 0 }
 0xa4e   : > { %4272 = vmatprep.subr.msk.bf16.mxu0 %vm1464_vm7, %v5189_v41 }
 0xa51   : > { %v5245_v56 = vpop.eup %4440 }
 0xa52   : > { %v2341_v5 = vpack.c.bf16 %v5245_v56, %v5245_v56 }
 0xa55   : > { %v5247_v59 = vpop.eup %4442 }
 0xa57   : > { %v5249_v60 = vpop.eup %4444 }
 0xa58   : > { %v2303_v61 = vpop.xlane.xlu1 %2302  ;;  %v2340_v62 = vpack.c.bf16 %v5249_v60, %v5247_v59 }
 0xa59   : > { %v2309_v14 = vsub.f32 %v2285_v19, %v2303_v61 }
 0xa5a   : > { %4138 = vmatprep.mubr.msk.bf16.mxu0 %vm1600_vm10, %v2340_v62 }
 0xa5b   : > { %4139 = vmatmul.mubr.msk.bf16.vlgmr.msra.gmra.mxu0 %vm1600_vm10, %v2341_v5  ;;  %v2320_v21 = vmul.f32 1.442695, %v2309_v14 }
 0xa5c   : > { %v2491_v9 = vpop.permute.xlu1 %2490  ;;  %4151 = vmatpush3.bf16.xpose.msra.mxu0 %v2504_v36 }
 0xa5d   : > { %4273 = vmatprep.subr.msk.bf16.mxu0 %vm1464_vm7, %v2491_v9  ;;  %v2501_v6 = vsel %vm1464_vm7, %v2491_v9, 0  ;;  %4446 = vpow2.f32 %v2320_v21 }
 0xa60   : > { %v2487_v10 = vpop.permute.xlu1 %2486 }
 0xa61   : > { %4154 = vmatprep.mubr.msk.bf16.mxu0 %vm1464_vm7, %v2487_v10 }
 0xa64   : > { %4153 = vmatpush3.bf16.xpose.msra.mxu0 %v2501_v6  ;;  %v2559_v42 = vpop.permute.xlu1 %2558 }
 0xa65   : > { %v2569_v44 = vsel %vm1464_vm7, %v2559_v42, 0 }
 0xa68   : > { %v2557_v45 = vpop.permute.xlu1 %2556 }
 0xa6a   : > { %v5264_v19 = vpop.eup %4446 }
 0xa6b   : > { %v2343_v38 = vpack.c.bf16 %v5264_v19, %v5264_v19 }
 0xa78   : > { %v2297_v18 = vpop.xlane.xlu0 %2296 }
 0xa79   : > { %v2307_v20 = vsub.f32 %v2283_v12, %v2297_v18 }
 0xa7b   : > { %v2316_v22 = vmul.f32 1.442695, %v2307_v20 }
 0xa7c   : > { %v2300_v23 = vpop.xlane.xlu0 %2299 }
 0xa7d   : > { %v2308_v24 = vsub.f32 %v2284_v25, %v2300_v23  ;;  %4448 = vpow2.f32 %v2316_v22 }
 0xa7f   : > { %v2318_v41 = vmul.f32 1.442695, %v2308_v24 }
 0xa80   : > { %v2407_v26 = vpop.permute.xlu0 %2406 }
 0xa81   : > { %4450 = vpow2.f32 %v2318_v41  ;;  %4144 = vmatprep.subr.bf16.mxu1 %v2407_v26 }
 0xa82   : > { %4145 = vmatpush3.bf16.msra.mxu1 %v2407_v26 }
 0xa84   : > { %v2561_v28 = vpop.permute.xlu0 %2560 }
 0xa85   : > { %4274 = vmatprep.subr.msk.bf16.mxu1 %vm1464_vm7, %v2561_v28  ;;  %v2572_v39 = vsel %vm1464_vm7, %v2561_v28, 0 }
 0xa88   : > { %v2489_v30 = vpop.permute.xlu0 %2488 }
 0xa89   : > { %4155 = vmatmul.mubr.msk.bf16.vlgmr.msra.gmra.mxu0 %vm1464_vm7, %v2489_v30 }
 0xa8a   : > { %v5266_v12 = vpop.eup %4448 }
 0xa8c   : > { %v2555_v40 = vpop.permute.xlu0 %2554 }
 0xa8e   : > { %v5268_v37 = vpop.eup %4450 }
 0xa8f   : > { %v2342_v25 = vpack.c.bf16 %v5268_v37, %v5266_v12 }
 0xa91   : > { %4146 = vmatprep.mubr.msk.bf16.mxu1 %vm1600_vm10, %v2342_v25 }
 0xa92   : > { %4147 = vmatmul.mubr.msk.bf16.vlgmr.msra.gmra.mxu1 %vm1600_vm10, %v2343_v38 }
 0xa93   : > { %4159 = vmatpush3.bf16.xpose.msra.mxu1 %v2572_v39  ;;  %4162 = vmatprep.mubr.msk.bf16.mxu1 %vm1464_vm7, %v2555_v40 }
 0xa94   : > { %4275 = vmatprep.subr.msk.bf16.mxu1 %vm1464_vm7, %v2559_v42 }
 0xa9b   : > { %4161 = vmatpush3.bf16.xpose.msra.mxu1 %v2569_v44 }
 0xaa2   : > { %4163 = vmatmul.mubr.msk.bf16.vlgmr.msra.gmra.mxu1 %vm1464_vm7, %v2557_v45 }
 0xb1b   : > { %v5281_v49 = vpop.f32.mrf.mxu0 }
 0xb1d   : > { %v5283_v52 = vpop.f32.mrf.mxu0 }
 0xb1f   : > { %v4141_v61 = vpop.f32.mrf.mxu0 }
 0xb21   : > { %v5285_v62 = vpop.f32.mrf.mxu0 }
 0xb49   : > { %v4156_v5 = vpop.f32.mrf.mxu0 }
 0xb4a   : > { %v2624_v36 = vsel %vm1593_vm9, %v4156_v5, -1e+30  ;;  %v1980_v5 = vsel %vm1600_vm10, %v5154_v0, 0.0 }
 0xb4b   : > { %v2540_v9 = vpop.f32.mrf.mxu0  ;;  %v2634_v10 = vsel %vm1600_vm10, %v2624_v36, -inf }
 0xb4c   : > { %v2622_v6 = vsel %vm1593_vm9, %v2540_v9, -1e+30  ;;  %2635 = vmax.xlane.f32.xlu0 %v2634_v10  ;;  %v2322_v9 = vsel %vm1600_vm10, %v5247_v59, 0.0 }
 0xb4d   : > { %v4157_v14 = vpop.f32.mrf.mxu0  ;;  %v2628_v20 = vsel %vm1600_vm10, %v2622_v6, -inf }
 0xb4f   : > { %v2543_v18 = vpop.f32.mrf.mxu0 }
 0xb50   : > { %v2623_v21 = vsel %vm1593_vm9, %v2543_v18, -1e+30  ;;  %2629 = vmax.xlane.f32.xlu0 %v2628_v20 }
 0xb51   : > { %v2631_v22 = vsel %vm1600_vm10, %v2623_v21, -inf }
 0xb52   : > { %v5296_v23 = vpop.f32.mrf.mxu1  ;;  %2632 = vmax.xlane.f32.xlu1 %v2631_v22 }
 0xb54   : > { %v5298_v24 = vpop.f32.mrf.mxu1 }
 0xb56   : > { %v4149_v41 = vpop.f32.mrf.mxu1 }
 0xb58   : > { %v5300_v26 = vpop.f32.mrf.mxu1 }
 0xb62   : > { %v4164_v28 = vpop.f32.mrf.mxu1 }
 0xb63   : > { %v2627_v30 = vsel %vm1593_vm9, %v4164_v28, -1e+30 }
 0xb64   : > { %v2608_v25 = vpop.f32.mrf.mxu1  ;;  %v2643_v38 = vsel %vm1600_vm10, %v2627_v30, -inf }
 0xb65   : > { %v2625_v39 = vsel %vm1593_vm9, %v2608_v25, -1e+30  ;;  %2644 = vmax.xlane.f32.xlu1 %v2643_v38 }
 0xb66   : > { %v4165_v40 = vpop.f32.mrf.mxu1  ;;  %v2637_v42 = vsel %vm1600_vm10, %v2625_v39, -inf }
 0xb67   : > { %2638 = vmax.xlane.f32.xlu0 %v2637_v42  ;;  %v1989_v42 = vsel %vm1600_vm10, %v5174_v35, 0.0 }
 0xb68   : > { %v2611_v44 = vpop.f32.mrf.mxu1 }
 0xb69   : > { %v2626_v45 = vsel %vm1593_vm9, %v2611_v44, -1e+30 }
 0xb6a   : > { %v2640_v61 = vsel %vm1600_vm10, %v2626_v45, -inf }
 0xb6b   : > { %2641 = vmax.xlane.f32.xlu0 %v2640_v61 }
 0xb76   : > { %2686 = vrot.lane.b32.xlu1 %v4967_v43, %s4617_s28  ;;  %v2325_v43 = vsel %vm1600_vm10, %v5249_v60, 0.0 }
 0xb7a   : > { %2750 = vrot.lane.b32.xlu1 %v4981_v54, %s4617_s28 }
 0xb7e   : > { %2748 = vrot.lane.b32.xlu1 %v4977_v51, %s4617_s28 }
 0xb81   : > { %2688 = vrot.lane.b32.xlu0 %v4972_v46, %s4617_s28 }
 0xba0   : > { %1981 = vadd.xlane.f32.xlu0 %v1980_v5 }
 0xba2   : > { %1984 = vadd.xlane.f32.xlu1 %v1983_v8  ;;  %v2328_v8 = vsel %vm1600_vm10, %v5245_v56, 0.0 }
 0xba4   : > { %2323 = vadd.xlane.f32.xlu0 %v2322_v9 }
 0xba8   : > { %2326 = vadd.xlane.f32.xlu0 %v2325_v43 }
 0xbd5   : > { %v2636_v54 = vpop.xlane.xlu0 %2635 }
 0xbd6   : > { %v2648_v20 = vsub.f32 %v2624_v36, %v2636_v54  ;;  %v1986_v36 = vsel %vm1600_vm10, %v5152_v63, 0.0  ;;  %v2331_v63 = vsel %vm1600_vm10, %v5266_v12, 0.0  ;;  %v1995_v12 = vsel %vm1600_vm10, %v5172_v33, 0.0 }
 0xbd8   : > { %v2656_v1 = vmul.f32 1.442695, %v2648_v20  ;;  %v2337_v20 = vsel %vm1600_vm10, %v5264_v19, 0.0  ;;  %v1640_v19 = vsel %vm1600_vm10, %v5058_v58, 0.0 }
 0xbd9   : > { %v2630_v51 = vpop.xlane.xlu0 %2629 }
 0xbda   : > { %v2646_v10 = vsub.f32 %v2622_v6, %v2630_v51 }
 0xbdb   : > { %v2633_v46 = vpop.xlane.xlu1 %2632 }
 0xbdc   : > { %v2652_v14 = vmul.f32 1.442695, %v2646_v10  ;;  %v2647_v18 = vsub.f32 %v2623_v21, %v2633_v46  ;;  %v1992_v10 = vsel %vm1600_vm10, %v5176_v29, 0.0 }
 0xbde   : > { %4452 = vpow2.f32 %v2652_v14  ;;  %v2654_v0 = vmul.f32 1.442695, %v2647_v18  ;;  %v2334_v14 = vsel %vm1600_vm10, %v5268_v37, 0.0 }
 0xbe0   : > { %4454 = vpow2.f32 %v2654_v0 }
 0xbe1   : > { %4456 = vpow2.f32 %v2656_v1 }
 0xbeb   : > { %v4453_v22 = vpop.eup %4452 }
 0xbec   : > { %v2664_v59 = vsel %vm1600_vm10, %v4453_v22, 0.0 }
 0xbed   : > { %v4455_v41 = vpop.eup %4454  ;;  %2665 = vadd.xlane.f32.xlu0 %v2664_v59 }
 0xbee   : > { %v2645_v28 = vpop.xlane.xlu1 %2644  ;;  %v2667_v60 = vsel %vm1600_vm10, %v4455_v41, 0.0  ;;  %v2682_v25 = vpack.c.bf16 %v4455_v41, %v4453_v22  ;;  %v1637_v41 = vsel %vm1600_vm10, %v5056_v57, 0.0  ;;  %v1652_v57 = vsel %vm1600_vm10, %v5069_v2, 0.0 }
 0xbef   : > { %2668 = vadd.xlane.f32.xlu1 %v2667_v60  ;;  %v2651_v6 = vsub.f32 %v2627_v30, %v2645_v28  ;;  %v4457_v30 = vpop.eup %4456  ;;  %v1643_v28 = vsel %vm1600_vm10, %v5054_v53, 0.0  ;;  %v1646_v60 = vsel %vm1600_vm10, %v5072_v3, 0.0 }
 0xbf0   : > { %v2639_v38 = vpop.xlane.xlu0 %2638  ;;  %4170 = vmatprep.mubr.msk.bf16.mxu0 %vm1600_vm10, %v2682_v25  ;;  %v2670_v51 = vsel %vm1600_vm10, %v4457_v30, 0.0  ;;  %v2683_v46 = vpack.c.bf16 %v4457_v30, %v4457_v30  ;;  %v1649_v25 = vsel %vm1600_vm10, %v5074_v4, 0.0 }
 0xbf1   : > { %v2649_v21 = vsub.f32 %v2625_v39, %v2639_v38  ;;  %1987 = vadd.xlane.f32.xlu0 %v1986_v36  ;;  %v2662_v61 = vmul.f32 1.442695, %v2651_v6 }
 0xbf2   : > { %v2687_v40 = vpop.permute.xlu1 %2686 }
 0xbf3   : > { %v2658_v44 = vmul.f32 1.442695, %v2649_v21  ;;  %1990 = vadd.xlane.f32.xlu1 %v1989_v42 }
 0xbf4   : > { %v2642_v5 = vpop.xlane.xlu0 %2641 }
 0xbf5   : > { %4458 = vpow2.f32 %v2658_v44  ;;  %v2650_v9 = vsub.f32 %v2626_v45, %v2642_v5  ;;  %2329 = vadd.xlane.f32.xlu0 %v2328_v8 }
 0xbf6   : > { %v2751_v43 = vpop.permute.xlu1 %2750  ;;  %4460 = vpow2.f32 %v2662_v61 }
 0xbf7   : > { %v2660_v39 = vmul.f32 1.442695, %v2650_v9  ;;  %v2760_v54 = vsel %vm1670_vm8, %v2751_v43, 0  ;;  %4277 = vmatprep.subr.msk.bf16.mxu1 %vm1670_vm8, %v2751_v43  ;;  %2332 = vadd.xlane.f32.xlu1 %v2331_v63 }
 0xbf8   : > { %4175 = vmatpush3.bf16.msra.mxu1 %v2760_v54  ;;  %v2689_v35 = vpop.permute.xlu0 %2688 }
 0xbf9   : > { %4462 = vpow2.f32 %v2660_v39  ;;  %v2698_v56 = vsel %vm1670_vm8, %v2689_v35, 0  ;;  %4276 = vmatprep.subr.msk.bf16.mxu0 %vm1670_vm8, %v2689_v35  ;;  %2671 = vadd.xlane.f32.xlu0 %v2670_v51 }
 0xbfa   : > { %v2749_v45 = vpop.permute.xlu1 %2748  ;;  %4167 = vmatpush3.bf16.msra.mxu0 %v2698_v56 }
 0xbfb   : > { %4168 = vmatprep.subr.bf16.mxu0 %v2687_v40  ;;  %4176 = vmatprep.subr.bf16.mxu1 %v2749_v45 }
 0xbfc   : > { %1996 = vadd.xlane.f32.xlu1 %v1995_v12  ;;  %4177 = vmatpush3.bf16.msra.mxu1 %v2749_v45 }
 0xbfd   : > { %1993 = vadd.xlane.f32.xlu0 %v1992_v10  ;;  %4198 = vmatprep.subr.bf16.mxu1 %v4605_v55  ;;  %v4396_v10 = vld [vmem:[%s4807_s23 + $0x8] sm:$0xff]  }
 0xbfe   : > { %4169 = vmatpush3.bf16.msra.mxu0 %v2687_v40 }
 0xbff   : > { %4182 = vmatprep.subr.bf16.mxu0 %v4605_v55 }
 0xc01   : > { %4171 = vmatmul.mubr.msk.bf16.vlgmr.msra.gmra.mxu0 %vm1600_vm10, %v2683_v46  ;;  %2335 = vadd.xlane.f32.xlu0 %v2334_v14 }
 0xc02   : > { %v4459_v18 = vpop.eup %4458  ;;  %4186 = vmatprep.mubr.msk.bf16.mxu0 %vm4606_vm6, %v4605_v55  ;;  %4183 = vmatpush3.bf16.msra.mxu0 %v4396_v10 }
 0xc03   : > { %v2673_v33 = vsel %vm1600_vm10, %v4459_v18, 0.0  ;;  %v4461_v29 = vpop.eup %4460  ;;  %4184 = vmatprep.subr.bf16.mxu0 %v4605_v55 }
 0xc04   : > { %2674 = vadd.xlane.f32.xlu1 %v2673_v33  ;;  %v2685_v37 = vpack.c.bf16 %v4461_v29, %v4461_v29  ;;  %v2679_v59 = vsel %vm1600_vm10, %v4461_v29, 0.0 }
 0xc06   : > { %v4463_v0 = vpop.eup %4462 }
 0xc07   : > { %v2676_v1 = vsel %vm1600_vm10, %v4463_v0, 0.0  ;;  %v2684_v22 = vpack.c.bf16 %v4463_v0, %v4459_v18 }
 0xc08   : > { %2338 = vadd.xlane.f32.xlu1 %v2337_v20  ;;  %2677 = vadd.xlane.f32.xlu0 %v2676_v1 }
 0xc09   : > { %4178 = vmatprep.mubr.msk.bf16.mxu1 %vm1600_vm10, %v2684_v22 }
 0xc0a   : > { %4179 = vmatmul.mubr.msk.bf16.vlgmr.msra.gmra.mxu1 %vm1600_vm10, %v2685_v37  ;;  %v4397_v37 = vld [vmem:[%s4807_s23] sm:$0xff]   ;;  %s4620_s23 = smov 24  }
 0xc0b   : > { %4202 = vmatprep.mubr.msk.bf16.mxu1 %vm4606_vm6, %v4605_v55  ;;  %4185 = vmatpush3.bf16.msra.mxu0 %v4397_v37 }
 0xc0c   : > { %2680 = vadd.xlane.f32.xlu1 %v2679_v59  ;;  %1638 = vadd.xlane.f32.xlu0 %v1637_v41 }
 0xc0d   : > { %4214 = vmatprep.subr.bf16.mxu0 %v4605_v55 }
 0xc10   : > { %1641 = vadd.xlane.f32.xlu1 %v1640_v19  ;;  %1644 = vadd.xlane.f32.xlu0 %v1643_v28 }
 0xc14   : > { %1647 = vadd.xlane.f32.xlu1 %v1646_v60  ;;  %1650 = vadd.xlane.f32.xlu0 %v1649_v25 }
 0xc18   : > { %1653 = vadd.xlane.f32.xlu1 %v1652_v57 }
 0xc29   : > { %v1982_v6 = vpop.xlane.xlu0 %1981 }
 0xc2a   : > { %4464 = vrcp.f32 %v1982_v6 }
 0xc2b   : > { %v1985_v58 = vpop.xlane.xlu1 %1984 }
 0xc2c   : > { %4466 = vrcp.f32 %v1985_v58 }
 0xc2d   : > { %v2324_v38 = vpop.xlane.xlu0 %2323 }
 0xc2e   : > { %4468 = vrcp.f32 %v2324_v38 }
 0xc31   : > { %v2327_v53 = vpop.xlane.xlu0 %2326 }
 0xc32   : > { %4470 = vrcp.f32 %v2327_v53 }
 0xc37   : > { %v4465_v36 = vpop.eup %4464 }
 0xc38   : > { %v2138_v3 = vmul.f32 %v4465_v36, %v5197_v48 }
 0xc39   : > { %v4467_v21 = vpop.eup %4466 }
 0xc3a   : > { %v2139_v4 = vmul.f32 %v4467_v21, %v5199_v50 }
 0xc3b   : > { %v4469_v42 = vpop.eup %4468 }
 0xc3c   : > { %v4349_v40 = vpack.i.bf16 %v2139_v4, %v2138_v3  ;;  %v2480_v44 = vmul.f32 %v4469_v42, %v5283_v52 }
 0xc3e   : > { %4350 = vrot.lane.b32.xlu0 %v4349_v40, %s4618_s8 }
 0xc3f   : > { %v4471_v2 = vpop.eup %4470 }
 0xc40   : > { %v2481_v61 = vmul.f32 %v4471_v2, %v5285_v62 }
 0xc42   : > { %v4354_v5 = vpack.i.bf16 %v2481_v61, %v2480_v44 }
 0xc44   : > { %4355 = vrot.lane.b32.xlu1 %v4354_v5, %s4619_s26 }
 0xc76   : > { %v2666_v8 = vpop.xlane.xlu0 %2665 }
 0xc78   : > { %v2669_v30 = vpop.xlane.xlu1 %2668 }
 0xc7a   : > { %v1988_v9 = vpop.xlane.xlu0 %1987 }
 0xc7b   : > { %4472 = vrcp.f32 %v1988_v9 }
 0xc7c   : > { %v1991_v48 = vpop.xlane.xlu1 %1990 }
 0xc7d   : > { %4474 = vrcp.f32 %v1991_v48 }
 0xc7e   : > { %v2330_v50 = vpop.xlane.xlu0 %2329 }
 0xc7f   : > { %4476 = vrcp.f32 %v2330_v50 }
 0xc80   : > { %v2333_v43 = vpop.xlane.xlu1 %2332 }
 0xc81   : > { %4478 = vrcp.f32 %v2333_v43 }
 0xc82   : > { %v2672_v63 = vpop.xlane.xlu0 %2671 }
 0xc85   : > { %v1997_v39 = vpop.xlane.xlu1 %1996 }
 0xc86   : > { %4480 = vrcp.f32 %v1997_v39  ;;  %v1994_v52 = vpop.xlane.xlu0 %1993 }
 0xc87   : > { %4482 = vrcp.f32 %v1994_v52 }
 0xc88   : > { %v4473_v62 = vpop.eup %4472  ;;  %4484 = vrcp.f32 %v2666_v8 }
 0xc89   : > { %v2140_v35 = vmul.f32 %v4473_v62, %v5195_v47  ;;  %4486 = vrcp.f32 %v2669_v30 }
 0xc8a   : > { %v4475_v54 = vpop.eup %4474  ;;  %4488 = vrcp.f32 %v2672_v63 }
 0xc8b   : > { %v2141_v51 = vmul.f32 %v4475_v54, %v5212_v13 }
 0xc8c   : > { %v4477_v56 = vpop.eup %4476 }
 0xc8d   : > { %v4364_v45 = vpack.i.bf16 %v2141_v51, %v2140_v35  ;;  %v2482_v46 = vmul.f32 %v4477_v56, %v5281_v49  ;;  %v2675_v20 = vpop.xlane.xlu1 %2674 }
 0xc8e   : > { %v4479_v12 = vpop.eup %4478  ;;  %4490 = vrcp.f32 %v2675_v20 }
 0xc8f   : > { %v2483_v14 = vmul.f32 %v4479_v12, %v5298_v24  ;;  %v2336_v24 = vpop.xlane.xlu0 %2335 }
 0xc91   : > { %v4369_v18 = vpack.i.bf16 %v2483_v14, %v2482_v46  ;;  %v2339_v49 = vpop.xlane.xlu1 %2338 }
 0xc92   : > { %4492 = vrcp.f32 %v2339_v49 }
 0xc93   : > { %v4481_v33 = vpop.eup %4480  ;;  %4370 = vrot.lane.b32.xlu0 %v4369_v18, %s4619_s26  ;;  %v2678_v1 = vpop.xlane.xlu0 %2677 }
 0xc94   : > { %v4483_v29 = vpop.eup %4482  ;;  %v2143_v13 = vmul.f32 %v4481_v33, %v5210_v11  ;;  %4494 = vrcp.f32 %v2678_v1 }
 0xc95   : > { %v2142_v47 = vmul.f32 %v4483_v29, %v5214_v15  ;;  %v2681_v22 = vpop.xlane.xlu1 %2680  ;;  %v4485_v41 = vpop.eup %4484 }
 0xc96   : > { %4496 = vrcp.f32 %v2681_v22  ;;  %v4487_v19 = vpop.eup %4486 }
 0xc97   : > { %v4379_v0 = vpack.i.bf16 %v2143_v13, %v2142_v47  ;;  %4498 = vrcp.f32 %v2336_v24  ;;  %v4489_v58 = vpop.eup %4488  ;;  %v1639_v43 = vpop.xlane.xlu0 %1638 }
 0xc98   : > { %4500 = vrcp.f32 %v1639_v43 }
 0xc99   : > { %4380 = vrot.lane.b32.xlu0 %v4379_v0, %s4618_s8  ;;  %v1642_v63 = vpop.xlane.xlu1 %1641 }
 0xc9a   : > { %4502 = vrcp.f32 %v1642_v63 }
 0xc9b   : > { %v4491_v53 = vpop.eup %4490  ;;  %v1645_v39 = vpop.xlane.xlu0 %1644 }
 0xc9c   : > { %4504 = vrcp.f32 %v1645_v39 }
 0xc9d   : > { %v1648_v52 = vpop.xlane.xlu1 %1647 }
 0xc9e   : > { %4506 = vrcp.f32 %v1648_v52 }
 0xc9f   : > { %v4493_v36 = vpop.eup %4492  ;;  %v1651_v62 = vpop.xlane.xlu0 %1650 }
 0xca0   : > { %v2485_v30 = vmul.f32 %v4493_v36, %v5296_v23  ;;  %4508 = vrcp.f32 %v1651_v62 }
 0xca1   : > { %v4495_v4 = vpop.eup %4494  ;;  %v1654_v54 = vpop.xlane.xlu1 %1653 }
 0xca2   : > { %4510 = vrcp.f32 %v1654_v54  ;;  %v3891_v54 = vld [vmem:[%s5669_s25] ss:$0 sm:$0xff] }
 0xca3   : > { %v4497_v40 = vpop.eup %4496 }
 0xca4   : > { %v4499_v44 = vpop.eup %4498 }
 0xca5   : > { %v2484_v48 = vmul.f32 %v4499_v44, %v5300_v26  ;;  %v4501_v23 = vpop.eup %4500 }
 0xca6   : > { %v1796_v46 = vmul.f32 %v4501_v23, %v5095_v17 }
 0xca7   : > { %v4384_v50 = vpack.i.bf16 %v2485_v30, %v2484_v48  ;;  %v4503_v56 = vpop.eup %4502 }
 0xca8   : > { %v1797_v14 = vmul.f32 %v4503_v56, %v5103_v27 }
 0xca9   : > { %v4505_v33 = vpop.eup %4504 }
 0xcab   : > { %v4507_v20 = vpop.eup %4506 }
 0xcb0   : > { %v4351_v35 = vpop.permute.xlu0 %4350 }
 0xcb1   : > { %v4353_v26 = vunpack.i.h.bf16 %v4351_v35 }
 0xcb3   : > { %v2901_v29 = vsel %vm1464_vm7, %v1797_v14, %v4353_v26 }
 0xcb6   : > { %v4356_v51 = vpop.permute.xlu1 %4355 }
 0xcb7   : > { %v4358_v12 = vunpack.i.h.bf16 %v4356_v51  ;;  %v4357_v10 = vunpack.i.l.bf16 %v4356_v51 }
 0xcb9   : > { %v2908_v24 = vsel %vm2906_vm11, %v2901_v29, %v4358_v12 }
 0xcc1   : > { %v4172_v59 = vpop.f32.mrf.mxu0 }
 0xcc2   : > { %v2824_v42 = vmul.f32 %v4489_v58, %v4172_v59  ;;  %v1799_v59 = vmul.f32 %v4507_v20, %v5110_v32 }
 0xcc3   : > { %v2734_v15 = vpop.f32.mrf.mxu0 }
 0xcc4   : > { %v2822_v60 = vmul.f32 %v4485_v41, %v2734_v15  ;;  %v1798_v41 = vmul.f32 %v4505_v33, %v5093_v16  ;;  %v4538_v33 = vld [vmem:[#allocation2 + $0x10] sm:$0xff] }
 0xcc5   : > { %v4173_v11 = vpop.f32.mrf.mxu0 }
 0xcc7   : > { %v2737_v28 = vpop.f32.mrf.mxu0 }
 0xcc8   : > { %v2823_v25 = vmul.f32 %v4487_v19, %v2737_v28 }
 0xcca   : > { %v4359_v57 = vpack.i.bf16 %v2823_v25, %v2822_v60  ;;  %v4180_v6 = vpop.f32.mrf.mxu1  ;;  %v4509_v25 = vpop.eup %4508 }
 0xccb   : > { %v2827_v61 = vmul.f32 %v4497_v40, %v4180_v6 }
 0xccc   : > { %v2796_v38 = vpop.f32.mrf.mxu1  ;;  %4360 = vrot.lane.b32.xlu1 %v4359_v57, %s4620_s23 }
 0xccd   : > { %v2825_v21 = vmul.f32 %v4491_v53, %v2796_v38  ;;  %v4511_v38 = vpop.eup %4510 }
 0xcce   : > { %v4181_v3 = vpop.f32.mrf.mxu1 }
 0xccf   : > { %v4374_v8 = vpack.i.bf16 %v2825_v21, %v2824_v42  ;;  %v1800_v42 = vmul.f32 %v4509_v25, %v5112_v34 }
 0xcd0   : > { %v2799_v2 = vpop.f32.mrf.mxu1  ;;  %4365 = vrot.lane.b32.xlu1 %v4364_v45, %s4618_s8  ;;  %v4352_v45 = vunpack.i.l.bf16 %v4351_v35  ;;  %v4536_v35 = vld [vmem:[#allocation2] sm:$0xff]  ;;  %s5672_s8 = scalar_lea.vmem %s5617_s19, %s4784_s4 }
 0xcd1   : > { %v2826_v5 = vmul.f32 %v4495_v4, %v2799_v2  ;;  %v1801_v2 = vmul.f32 %v4511_v38, %v5108_v31 }
 0xcd2   : > { %v2900_v47 = vsel %vm1464_vm7, %v1796_v46, %v4352_v45  ;;  %v4537_v45 = vld [vmem:[#allocation2 + $0x8] sm:$0xff] }
 0xcd3   : > { %v4389_v9 = vpack.i.bf16 %v2827_v61, %v2826_v5  ;;  %v2907_v49 = vsel %vm2906_vm11, %v2900_v47, %v4357_v10 }
 0xcd4   : > { %4375 = vrot.lane.b32.xlu1 %v4374_v8, %s4620_s23 }
 0xcd5   : > { %4390 = vrot.lane.b32.xlu0 %v4389_v9, %s4620_s23 }
 0xcd8   : > { %4385 = vrot.lane.b32.xlu1 %v4384_v50, %s4619_s26 }
 0xd05   : > { %v4371_v1 = vpop.permute.xlu0 %4370 }
 0xd06   : > { %v4373_v57 = vunpack.i.h.bf16 %v4371_v1  ;;  %v4372_v6 = vunpack.i.l.bf16 %v4371_v1 }
 0xd0b   : > { %v4381_v19 = vpop.permute.xlu0 %4380 }
 0xd0c   : > { %v4383_v36 = vunpack.i.h.bf16 %v4381_v19  ;;  %v4382_v21 = vunpack.i.l.bf16 %v4381_v19 }
 0xd0e   : > { %v2905_v9 = vsel %vm1464_vm7, %v1801_v2, %v4383_v36  ;;  %v2904_v48 = vsel %vm1464_vm7, %v1800_v42, %v4382_v21 }
 0xd3e   : > { %v4361_v18 = vpop.permute.xlu1 %4360 }
 0xd3f   : > { %v4363_v13 = vunpack.i.h.bf16 %v4361_v18  ;;  %v4362_v0 = vunpack.i.l.bf16 %v4361_v18 }
 0xd41   : > { %v2913_v22 = vsel %vm1600_vm10, %v2907_v49, %v4362_v0  ;;  %v2914_v17 = vsel %vm1600_vm10, %v2908_v24, %v4363_v13  ;;  %v4539_v49 = vld [vmem:[#allocation2 + $0x18] sm:$0xff] }
 0xd42   : > { %v2919_v27 = vpack.c.bf16 %v2914_v17, %v2913_v22  ;;  %v4366_v37 = vpop.permute.xlu1 %4365 }
 0xd43   : > { %v4368_v15 = vunpack.i.h.bf16 %v4366_v37  ;;  %v4367_v11 = vunpack.i.l.bf16 %v4366_v37  ;;  %v4540_v37 = vld [vmem:[#allocation2 + $0x20] sm:$0xff] }
 0xd44   : > { %4187 = vmatmul.mubr.msk.bf16.vlgmr.msra.gmra.mxu0 %vm1265_vm5, %v2919_v27 }
 0xd45   : > { %v2903_v28 = vsel %vm1464_vm7, %v1799_v59, %v4368_v15  ;;  %v2902_v60 = vsel %vm1464_vm7, %v1798_v41, %v4367_v11  ;;  %4190 = vmatprep.mubr.msk.bf16.mxu0 %vm4606_vm6, %v4605_v55 }
 0xd46   : > { %v4376_v58 = vpop.permute.xlu1 %4375  ;;  %v2909_v16 = vsel %vm2906_vm11, %v2902_v60, %v4372_v6  ;;  %v2910_v3 = vsel %vm2906_vm11, %v2903_v28, %v4373_v57  ;;  %v4541_v28 = vld [vmem:[#allocation2 + $0x28] sm:$0xff] }
 0xd47   : > { %v4378_v32 = vunpack.i.h.bf16 %v4376_v58  ;;  %v4377_v53 = vunpack.i.l.bf16 %v4376_v58  ;;  %v4391_v61 = vpop.permute.xlu0 %4390 }
 0xd48   : > { %v4393_v50 = vunpack.i.h.bf16 %v4391_v61  ;;  %v4392_v43 = vunpack.i.l.bf16 %v4391_v61 }
 0xd49   : > { %v2915_v4 = vsel %vm1600_vm10, %v2909_v16, %v4377_v53  ;;  %v2916_v40 = vsel %vm1600_vm10, %v2910_v3, %v4378_v32 }
 0xd4a   : > { %v2920_v44 = vpack.c.bf16 %v2916_v40, %v2915_v4  ;;  %v4386_v5 = vpop.permute.xlu1 %4385 }
 0xd4b   : > { %v4388_v8 = vunpack.i.h.bf16 %v4386_v5  ;;  %v4387_v30 = vunpack.i.l.bf16 %v4386_v5 }
 0xd4c   : > { %4191 = vmatmul.mubr.msk.bf16.gmra.mxu0 %vm1265_vm5, %v2920_v44 }
 0xd4d   : > { %v2911_v63 = vsel %vm2906_vm11, %v2904_v48, %v4387_v30  ;;  %v2912_v34 = vsel %vm2906_vm11, %v2905_v9, %v4388_v8  ;;  %4194 = vmatprep.mubr.msk.bf16.mxu0 %vm4606_vm6, %v4605_v55 }
 0xd4e   : > { %v2917_v31 = vsel %vm1600_vm10, %v2911_v63, %v4392_v43  ;;  %v2918_v39 = vsel %vm1600_vm10, %v2912_v34, %v4393_v50 }
 0xd4f   : > { %v2921_v52 = vpack.c.bf16 %v2918_v39, %v2917_v31 }
 0xd54   : > { %4195 = vmatmul.mubr.msk.bf16.gmra.mxu0 %vm1265_vm5, %v2921_v52 }
 0xd55   : > { %4222 = vmatprep.mubr.msk.bf16.mxu0 %vm4606_vm6, %v4605_v55 }
 0xe04   : > { %v2981_v62 = vpop.f32.mrf.mxu0 }
 0xe05   : > { %v3004_v23 = vadd.f32 %v4536_v35, %v2981_v62 }
 0xe06   : > { %v4188_v51 = vpop.f32.mrf.mxu0 }
 0xe07   : > { %v5431_v56 = vadd.f32 %v3891_v54, %v3004_v23 }
 0xe08   : > { %v2984_v26 = vpop.f32.mrf.mxu0 }
 0xe09   : > { %v3005_v12 = vadd.f32 %v4537_v45, %v2984_v26  ;;  %v3025_v10 = vsel %vm1265_vm5, %v5431_v56, 0.0  ;;  %v4398_v26 = vld [vmem:[%s4820_s3 + $0x8] sm:$0xff]   ;;  %v4399_v45 = vld [vmem:[%s4820_s3] sm:$0xff]   ;;  %s5676_s3 = sld [smem:[#allocation24_spill]] (!%p3908_p6) }
 0xe0a   : > { %3026 = vadd.xlane.f32.xlu1 %v3025_v10  ;;  %v4189_v46 = vpop.f32.mrf.mxu0  ;;  %4199 = vmatpush3.bf16.msra.mxu1 %v4398_v26 }
 0xe0b   : > { %v5435_v14 = vadd.f32 %v3891_v54, %v3005_v12  ;;  %4200 = vmatprep.subr.bf16.mxu1 %v4605_v55 }
 0xe0c   : > { %v2989_v18 = vpop.f32.mrf.mxu0 }
 0xe0d   : > { %v3006_v29 = vadd.f32 %v4538_v33, %v2989_v18  ;;  %v3028_v47 = vsel %vm1265_vm5, %v5435_v14, 0.0 }
 0xe0e   : > { %3029 = vadd.xlane.f32.xlu0 %v3028_v47  ;;  %v4192_v13 = vpop.f32.mrf.mxu0  ;;  %4201 = vmatpush3.bf16.msra.mxu1 %v4399_v45 }
 0xe0f   : > { %v5439_v0 = vadd.f32 %v3891_v54, %v3006_v29 }
 0xe10   : > { %v2992_v20 = vpop.f32.mrf.mxu0 }
 0xe11   : > { %v3007_v24 = vadd.f32 %v4539_v49, %v2992_v20  ;;  %v3031_v1 = vsel %vm1265_vm5, %v5439_v0, 0.0 }
 0xe12   : > { %3032 = vadd.xlane.f32.xlu0 %v3031_v1  ;;  %v4193_v22 = vpop.f32.mrf.mxu0 }
 0xe13   : > { %v5443_v17 = vadd.f32 %v3891_v54, %v3007_v24 }
 0xe14   : > { %v2997_v27 = vpop.f32.mrf.mxu0 }
 0xe15   : > { %v3008_v59 = vadd.f32 %v4540_v37, %v2997_v27  ;;  %v3034_v15 = vsel %vm1265_vm5, %v5443_v17, 0.0 }
 0xe16   : > { %3035 = vadd.xlane.f32.xlu0 %v3034_v15  ;;  %v4196_v11 = vpop.f32.mrf.mxu0 }
 0xe17   : > { %v5447_v41 = vadd.f32 %v3891_v54, %v3008_v59 }
 0xe18   : > { %v3000_v19 = vpop.f32.mrf.mxu0 }
 0xe19   : > { %v3009_v60 = vadd.f32 %v4541_v28, %v3000_v19  ;;  %v3037_v25 = vsel %vm1265_vm5, %v5447_v41, 0.0  ;;  %v3892_v19 = vld [vmem:[%s5670_s24] ss:$0 sm:$0xff] }
 0xe1a   : > { %3038 = vadd.xlane.f32.xlu1 %v3037_v25  ;;  %v4197_v57 = vpop.f32.mrf.mxu0 }
 0xe1b   : > { %v5451_v6 = vadd.f32 %v3891_v54, %v3009_v60 }
 0xe1d   : > { %v3040_v58 = vsel %vm1265_vm5, %v5451_v6, 0.0 }
 0xe1e   : > { %3041 = vadd.xlane.f32.xlu0 %v3040_v58 }
 0xe93   : > { %v3027_v38 = vpop.xlane.xlu1 %3026 }
 0xe94   : > { %v3043_v32 = vmul.f32 0.03125, %v3027_v38  ;;  %v3893_v38 = vld [vmem:[%s961_s6] ss:$0 sm:$0xff]  ;;  %s5674_s6 = smov (!%p3908_p6), %s5673_s7 }
 0xe96   : > { %v3049_v53 = vsub.f32 %v5431_v56, %v3043_v32 }
 0xe97   : > { %v3030_v36 = vpop.xlane.xlu0 %3029 }
 0xe98   : > { %v3044_v21 = vmul.f32 0.03125, %v3030_v36  ;;  %v3055_v16 = vmul.f32 %v3049_v53, %v3049_v53 }
 0xe9a   : > { %v3050_v3 = vsub.f32 %v5435_v14, %v3044_v21  ;;  %v3061_v4 = vsel %vm1265_vm5, %v3055_v16, 0.0 }
 0xe9b   : > { %v3033_v40 = vpop.xlane.xlu0 %3032  ;;  %3062 = vadd.xlane.f32.xlu1 %v3061_v4 }
 0xe9c   : > { %v3045_v42 = vmul.f32 0.03125, %v3033_v40  ;;  %v3056_v2 = vmul.f32 %v3050_v3, %v3050_v3 }
 0xe9e   : > { %v5459_v44 = vsub.f32 %v5439_v0, %v3045_v42  ;;  %v3064_v61 = vsel %vm1265_vm5, %v3056_v2, 0.0 }
 0xe9f   : > { %v3036_v5 = vpop.xlane.xlu0 %3035  ;;  %3065 = vadd.xlane.f32.xlu0 %v3064_v61 }
 0xea0   : > { %v3046_v8 = vmul.f32 0.03125, %v3036_v5  ;;  %v3057_v30 = vmul.f32 %v5459_v44, %v5459_v44 }
 0xea2   : > { %v3052_v9 = vsub.f32 %v5443_v17, %v3046_v8  ;;  %v3067_v48 = vsel %vm1265_vm5, %v3057_v30, 0.0 }
 0xea3   : > { %3068 = vadd.xlane.f32.xlu1 %v3067_v48  ;;  %v3039_v50 = vpop.xlane.xlu1 %3038 }
 0xea4   : > { %v3047_v43 = vmul.f32 0.03125, %v3039_v50  ;;  %v3058_v63 = vmul.f32 %v3052_v9, %v3052_v9 }
 0xea6   : > { %v5467_v34 = vsub.f32 %v5447_v41, %v3047_v43  ;;  %v3070_v31 = vsel %vm1265_vm5, %v3058_v63, 0.0 }
 0xea7   : > { %3071 = vadd.xlane.f32.xlu0 %v3070_v31  ;;  %v3042_v39 = vpop.xlane.xlu0 %3041 }
 0xea8   : > { %v3048_v52 = vmul.f32 0.03125, %v3042_v39  ;;  %v3059_v62 = vmul.f32 %v5467_v34, %v5467_v34 }
 0xeaa   : > { %v3054_v54 = vsub.f32 %v5451_v6, %v3048_v52  ;;  %v3073_v35 = vsel %vm1265_vm5, %v3059_v62, 0.0  ;;  %v4400_v52 = vld [vmem:[%s4834_s2 + $0x18] sm:$0xff]   ;;  %v4402_v62 = vld [vmem:[%s4834_s2 + $0x8] sm:$0xff]  }
 0xeab   : > { %3074 = vadd.xlane.f32.xlu1 %v3073_v35  ;;  %4215 = vmatpush3.bf16.msra.mxu0 %v4400_v52  ;;  %v3894_v35 = vld [vmem:[%s5671_s1] ss:$0 sm:$0xff] }
 0xeac   : > { %v3060_v23 = vmul.f32 %v3054_v54, %v3054_v54  ;;  %4216 = vmatprep.subr.bf16.mxu0 %v4605_v55 }
 0xeae   : > { %v3076_v51 = vsel %vm1265_vm5, %v3060_v23, 0.0 }
 0xeaf   : > { %3077 = vadd.xlane.f32.xlu0 %v3076_v51 }
 0xf24   : > { %v3063_v12 = vpop.xlane.xlu1 %3062 }
 0xf25   : > { %v3079_v10 = vmul.f32 0.03125, %v3063_v12 }
 0xf27   : > { %v3085_v46 = vadd.f32 1e-05, %v3079_v10 }
 0xf28   : > { %v3066_v18 = vpop.xlane.xlu0 %3065 }
 0xf29   : > { %4512 = vrsqrt.f32 %v3085_v46  ;;  %v3080_v33 = vmul.f32 0.03125, %v3066_v18 }
 0xf2b   : > { %v3086_v29 = vadd.f32 1e-05, %v3080_v33 }
 0xf2c   : > { %v3069_v47 = vpop.xlane.xlu1 %3068 }
 0xf2d   : > { %4514 = vrsqrt.f32 %v3086_v29  ;;  %v3081_v13 = vmul.f32 0.03125, %v3069_v47 }
 0xf2f   : > { %v3087_v20 = vadd.f32 1e-05, %v3081_v13 }
 0xf30   : > { %v3072_v49 = vpop.xlane.xlu0 %3071 }
 0xf31   : > { %4516 = vrsqrt.f32 %v3087_v20  ;;  %v3082_v24 = vmul.f32 0.03125, %v3072_v49 }
 0xf33   : > { %v3088_v1 = vadd.f32 1e-05, %v3082_v24 }
 0xf34   : > { %v3075_v22 = vpop.xlane.xlu1 %3074 }
 0xf35   : > { %4518 = vrsqrt.f32 %v3088_v1  ;;  %v3083_v27 = vmul.f32 0.03125, %v3075_v22 }
 0xf36   : > { %v4513_v37 = vpop.eup %4512 }
 0xf37   : > { %v3097_v59 = vmul.f32 %v4513_v37, %v3049_v53  ;;  %v3089_v15 = vadd.f32 1e-05, %v3083_v27 }
 0xf38   : > { %v3078_v11 = vpop.xlane.xlu0 %3077 }
 0xf39   : > { %4520 = vrsqrt.f32 %v3089_v15  ;;  %v3084_v28 = vmul.f32 0.03125, %v3078_v11  ;;  %v3109_v58 = vmul.f32 %v3892_v19, %v3097_v59 }
 0xf3a   : > { %v4515_v60 = vpop.eup %4514 }
 0xf3b   : > { %v3098_v25 = vmul.f32 %v4515_v60, %v3050_v3  ;;  %v3090_v57 = vadd.f32 1e-05, %v3084_v28  ;;  %v3121_v36 = vadd.f32 %v3893_v38, %v3109_v58 }
 0xf3d   : > { %4522 = vrsqrt.f32 %v3090_v57  ;;  %v3110_v32 = vmul.f32 %v3892_v19, %v3098_v25 }
 0xf3e   : > { %v4517_v53 = vpop.eup %4516 }
 0xf3f   : > { %v3122_v21 = vadd.f32 %v3893_v38, %v3110_v32  ;;  %v3099_v16 = vmul.f32 %v4517_v53, %v5459_v44 }
 0xf41   : > { %v3127_v4 = vpack.c.bf16 %v3122_v21, %v3121_v36  ;;  %v3111_v3 = vmul.f32 %v3892_v19, %v3099_v16 }
 0xf42   : > { %v4519_v40 = vpop.eup %4518 }
 0xf43   : > { %4203 = vmatmul.mubr.msk.bf16.vlgmr.msra.gmra.mxu1 %vm1265_vm5, %v3127_v4  ;;  %v3100_v42 = vmul.f32 %v4519_v40, %v3052_v9  ;;  %v3123_v5 = vadd.f32 %v3893_v38, %v3111_v3 }
 0xf44   : > { %4206 = vmatprep.mubr.msk.bf16.mxu1 %vm4606_vm6, %v4605_v55 }
 0xf45   : > { %v3112_v2 = vmul.f32 %v3892_v19, %v3100_v42 }
 0xf46   : > { %v4521_v61 = vpop.eup %4520 }
 0xf47   : > { %v3124_v8 = vadd.f32 %v3893_v38, %v3112_v2  ;;  %v3101_v30 = vmul.f32 %v4521_v61, %v5467_v34  ;;  %v4401_v34 = vld [vmem:[%s4834_s2 + $0x10] sm:$0xff]  }
 0xf48   : > { %4217 = vmatpush3.bf16.msra.mxu0 %v4401_v34 }
 0xf49   : > { %v3128_v48 = vpack.c.bf16 %v3124_v8, %v3123_v5  ;;  %v3113_v43 = vmul.f32 %v3892_v19, %v3101_v30  ;;  %4218 = vmatprep.subr.bf16.mxu0 %v4605_v55 }
 0xf4a   : > { %v4523_v50 = vpop.eup %4522 }
 0xf4b   : > { %4207 = vmatmul.mubr.msk.bf16.gmra.mxu1 %vm1265_vm5, %v3128_v48  ;;  %v3102_v44 = vmul.f32 %v4523_v50, %v3054_v54  ;;  %v3125_v63 = vadd.f32 %v3893_v38, %v3113_v43  ;;  %v4403_v54 = vld [vmem:[%s4834_s2] sm:$0xff]  }
 0xf4c   : > { %4210 = vmatprep.mubr.msk.bf16.mxu1 %vm4606_vm6, %v4605_v55  ;;  %4219 = vmatpush3.bf16.msra.mxu0 %v4402_v62 }
 0xf4d   : > { %v3114_v9 = vmul.f32 %v3892_v19, %v3102_v44  ;;  %4220 = vmatprep.subr.bf16.mxu0 %v4605_v55 }
 0xf4f   : > { %v3126_v31 = vadd.f32 %v3893_v38, %v3114_v9 }
 0xf50   : > { %4221 = vmatpush3.bf16.msra.mxu0 %v4403_v54 }
 0xf51   : > { %v3129_v39 = vpack.c.bf16 %v3126_v31, %v3125_v63 }
 0xf53   : > { %4211 = vmatmul.mubr.msk.bf16.gmra.mxu1 %vm1265_vm5, %v3129_v39 }
0x1003   : > { %v3196_v23 = vpop.f32.mrf.mxu1 }
0x1004   : > { %v3197_v51 = vadd.f32 %v3894_v35, %v3196_v23 }
0x1005   : > { %v4204_v26 = vpop.f32.mrf.mxu1 }
0x1006   : > { %v3225_v45 = vmul.f32 %v3197_v51, %v3197_v51  ;;  %v3219_v39 = vmul.f32 0.5, %v3197_v51 }
0x1007   : > { %v3199_v12 = vpop.f32.mrf.mxu1 }
0x1008   : > { %v3231_v10 = vmul.f32 %v3225_v45, %v3197_v51  ;;  %v3200_v46 = vadd.f32 %v3894_v35, %v3199_v12 }
0x1009   : > { %v4205_v18 = vpop.f32.mrf.mxu1 }
0x100a   : > { %v3237_v33 = vmul.f32 0.044715, %v3231_v10  ;;  %v3226_v29 = vmul.f32 %v3200_v46, %v3200_v46  ;;  %v3220_v52 = vmul.f32 0.5, %v3200_v46 }
0x100b   : > { %v3204_v47 = vpop.f32.mrf.mxu1 }
0x100c   : > { %v3243_v13 = vadd.f32 %v3237_v33, %v3197_v51  ;;  %v3232_v20 = vmul.f32 %v3226_v29, %v3200_v46  ;;  %v3205_v49 = vadd.f32 %v3894_v35, %v3204_v47 }
0x100d   : > { %v4208_v24 = vpop.f32.mrf.mxu1 }
0x100e   : > { %v3249_v1 = vmul.f32 0.7978846, %v3243_v13  ;;  %v3238_v22 = vmul.f32 0.044715, %v3232_v20  ;;  %v3227_v27 = vmul.f32 %v3205_v49, %v3205_v49  ;;  %v3221_v10 = vmul.f32 0.5, %v3205_v49 }
0x100f   : > { %v3207_v37 = vpop.f32.mrf.mxu1 }
0x1010   : > { %4524 = vtanh.f32 %v3249_v1  ;;  %v3244_v59 = vadd.f32 %v3238_v22, %v3200_v46  ;;  %v3233_v15 = vmul.f32 %v3227_v27, %v3205_v49  ;;  %v3208_v11 = vadd.f32 %v3894_v35, %v3207_v37 }
0x1011   : > { %v4209_v19 = vpop.f32.mrf.mxu1 }
0x1012   : > { %v3250_v28 = vmul.f32 0.7978846, %v3244_v59  ;;  %v3239_v60 = vmul.f32 0.044715, %v3233_v15  ;;  %v3228_v25 = vmul.f32 %v3208_v11, %v3208_v11  ;;  %v3222_v18 = vmul.f32 0.5, %v3208_v11 }
0x1013   : > { %v3212_v57 = vpop.f32.mrf.mxu1  ;;  %v3900_v59 = vld [vmem:[%s5672_s8] ss:$0 sm:$0xff] }
0x1014   : > { %4526 = vtanh.f32 %v3250_v28  ;;  %v3245_v58 = vadd.f32 %v3239_v60, %v3205_v49  ;;  %v3234_v38 = vmul.f32 %v3228_v25, %v3208_v11  ;;  %v3213_v32 = vadd.f32 %v3894_v35, %v3212_v57 }
0x1015   : > { %v4212_v53 = vpop.f32.mrf.mxu1 }
0x1016   : > { %v3251_v36 = vmul.f32 0.7978846, %v3245_v58  ;;  %v3240_v21 = vmul.f32 0.044715, %v3234_v38  ;;  %v3229_v16 = vmul.f32 %v3213_v32, %v3213_v32  ;;  %v3223_v24 = vmul.f32 0.5, %v3213_v32 }
0x1017   : > { %v3215_v4 = vpop.f32.mrf.mxu1 }
0x1018   : > { %4528 = vtanh.f32 %v3251_v36  ;;  %v3246_v40 = vadd.f32 %v3240_v21, %v3208_v11  ;;  %v3235_v42 = vmul.f32 %v3229_v16, %v3213_v32  ;;  %v3216_v3 = vadd.f32 %v3894_v35, %v3215_v4 }
0x1019   : > { %v4213_v2 = vpop.f32.mrf.mxu1 }
0x101a   : > { %v3252_v61 = vmul.f32 0.7978846, %v3246_v40  ;;  %v3241_v5 = vmul.f32 0.044715, %v3235_v42  ;;  %v3230_v8 = vmul.f32 %v3216_v3, %v3216_v3  ;;  %v3224_v1 = vmul.f32 0.5, %v3216_v3 }
0x101c   : > { %4530 = vtanh.f32 %v3252_v61  ;;  %v3247_v30 = vadd.f32 %v3241_v5, %v3213_v32  ;;  %v3236_v48 = vmul.f32 %v3230_v8, %v3216_v3 }
0x101d   : > { %v4525_v50 = vpop.eup %4524 }
0x101e   : > { %v3253_v44 = vmul.f32 0.7978846, %v3247_v30  ;;  %v3242_v43 = vmul.f32 0.044715, %v3236_v48  ;;  %v3261_v9 = vadd.f32 1.0, %v4525_v50 }
0x1020   : > { %4532 = vtanh.f32 %v3253_v44  ;;  %v3248_v63 = vadd.f32 %v3242_v43, %v3216_v3  ;;  %v3267_v54 = vmul.f32 %v3261_v9, %v3219_v39 }
0x1021   : > { %v4527_v31 = vpop.eup %4526 }
0x1022   : > { %v3262_v34 = vadd.f32 1.0, %v4527_v31  ;;  %v3254_v62 = vmul.f32 0.7978846, %v3248_v63 }
0x1024   : > { %v3268_v35 = vmul.f32 %v3262_v34, %v3220_v52  ;;  %4534 = vtanh.f32 %v3254_v62 }
0x1025   : > { %v4529_v23 = vpop.eup %4528 }
0x1026   : > { %v3273_v26 = vpack.c.bf16 %v3268_v35, %v3267_v54  ;;  %v3263_v45 = vadd.f32 1.0, %v4529_v23 }
0x1028   : > { %4223 = vmatmul.mubr.msk.bf16.vlgmr.msra.gmra.mxu0 %vm3315_vm12, %v3273_v26  ;;  %v3269_v51 = vmul.f32 %v3263_v45, %v3221_v10 }
0x1029   : > { %v4531_v12 = vpop.eup %4530  ;;  %4226 = vmatprep.mubr.msk.bf16.mxu0 %vm4606_vm6, %v4605_v55 }
0x102a   : > { %v3264_v33 = vadd.f32 1.0, %v4531_v12 }
0x102c   : > { %v3270_v46 = vmul.f32 %v3264_v33, %v3222_v18 }
0x102d   : > { %v4533_v29 = vpop.eup %4532 }
0x102e   : > { %v3274_v47 = vpack.c.bf16 %v3270_v46, %v3269_v51  ;;  %v3265_v13 = vadd.f32 1.0, %v4533_v29 }
0x1030   : > { %4227 = vmatmul.mubr.msk.bf16.gmra.mxu0 %vm3315_vm12, %v3274_v47  ;;  %v3271_v27 = vmul.f32 %v3265_v13, %v3223_v24 }
0x1031   : > { %v4535_v20 = vpop.eup %4534  ;;  %4230 = vmatprep.mubr.msk.bf16.mxu0 %vm4606_vm6, %v4605_v55 }
0x1032   : > { %v3266_v22 = vadd.f32 1.0, %v4535_v20 }
0x1034   : > { %v3272_v37 = vmul.f32 %v3266_v22, %v3224_v1 }
0x1036   : > { %v3275_v49 = vpack.c.bf16 %v3272_v37, %v3271_v27 }
0x1038   : > { %4231 = vmatmul.mubr.msk.bf16.gmra.mxu0 %vm3315_vm12, %v3275_v49 }
0x10e8   : > { %v3359_v15 = vpop.f32.mrf.mxu0 }
0x10e9   : > { %v3360_v11 = vadd.f32 %v3900_v59, %v3359_v15 }
0x10ea   : > { %v4224_v19 = vpop.f32.mrf.mxu0 }
0x10eb   : > { %v3382_v28 = vadd.f32 %v3360_v11, %v5431_v56 }
0x10ec   : > { %v3362_v60 = vpop.f32.mrf.mxu0 }
0x10ed   : > { %3388 = vst.msk [vmem:[#allocation2] sm:$0xff] %vm1265_vm5, %v3382_v28  ;;  %v3363_v55 = vadd.f32 %v3900_v59, %v3362_v60 }
0x10ee   : > { %v4225_v25 = vpop.f32.mrf.mxu0 }
0x10ef   : > { %v3383_v57 = vadd.f32 %v3363_v55, %v5435_v14 }
0x10f0   : > { %v3367_v58 = vpop.f32.mrf.mxu0 }
0x10f1   : > { %3389 = vst.msk [vmem:[#allocation2 + $0x8] sm:$0xff] %vm1265_vm5, %v3383_v57  ;;  %v3368_v38 = vadd.f32 %v3900_v59, %v3367_v58 }
0x10f2   : > { %v4228_v32 = vpop.f32.mrf.mxu0 }
0x10f3   : > { %v3384_v53 = vadd.f32 %v3368_v38, %v5439_v0 }
0x10f4   : > { %v3370_v36 = vpop.f32.mrf.mxu0 }
0x10f5   : > { %3390 = vst.msk [vmem:[#allocation2 + $0x10] sm:$0xff] %vm1265_vm5, %v3384_v53  ;;  %v3371_v21 = vadd.f32 %v3900_v59, %v3370_v36 }
0x10f6   : > { %v4229_v16 = vpop.f32.mrf.mxu0 }
0x10f7   : > { %v3385_v56 = vadd.f32 %v3371_v21, %v5443_v17 }
0x10f8   : > { %v3375_v4 = vpop.f32.mrf.mxu0 }
0x10f9   : > { %3391 = vst.msk [vmem:[#allocation2 + $0x18] sm:$0xff] %vm1265_vm5, %v3385_v56  ;;  %v3376_v40 = vadd.f32 %v3900_v59, %v3375_v4 }
0x10fa   : > { %v4232_v42 = vpop.f32.mrf.mxu0 }
0x10fb   : > { %v3386_v14 = vadd.f32 %v3376_v40, %v5447_v41 }
0x10fc   : > { %v3378_v3 = vpop.f32.mrf.mxu0 }
0x10fd   : > { %3392 = vst.msk [vmem:[#allocation2 + $0x20] sm:$0xff] %vm1265_vm5, %v3386_v14  ;;  %v3379_v2 = vadd.f32 %v3900_v59, %v3378_v3  ;;  %3397 = sbr.rel (%p3908_p6) target bundleno = 5108 (0x13f4), region = 132 }
0x10fe   : > { %v4233_v61 = vpop.f32.mrf.mxu0 }
0x10ff   : > { %v3387_v0 = vadd.f32 %v3379_v2, %v5451_v6 }
0x1101   : > { %3393 = vst.msk [vmem:[#allocation2 + $0x28] sm:$0xff] %vm1265_vm5, %v3387_v0 }
0x1102   : > { %v3402_v17 = vrot.slane %v3385_v56, 7  ;;  %vm3403_vm13 = vcmask 1041409   ;;  %vm3406_vm14 = vcmask 254976   ;;  %v4542_v39 = vld [vmem:[%s5620_s22 + $0x8] sm:$0xff]   ;;  %v4621_v52 = vmov 0.0   ;;  %v4543_v34 = vld [vmem:[%s5620_s22] sm:$0xff]  }
0x1103   : > { %4234 = vmatprep.subr.bf16.mxu0 %v4621_v52  ;;  %vm4622_vm15 = vmmov 0   ;;  %4242 = vmatprep.subr.bf16.mxu1 %v4621_v52  ;;  %v3909_v26 = vld [vmem:[%s5618_s20] ss:$0 sm:$0xff]  ;;  %v4544_v37 = vld [vmem:[%s5673_s7 + $0x18] sm:$0xff]   ;;  %v4545_v49 = vld [vmem:[%s5674_s6 + $0x10] sm:$0xff]   ;;  %v3624_v3 = vshrl.u32 %v1591_v7, 7 }
0x1104   : > { %v3404_v5 = vsel %vm3403_vm13, %v3402_v17, %v3382_v28  ;;  %4238 = vmatprep.mubr.msk.bf16.mxu0 %vm4622_vm15, %v4621_v52  ;;  %4235 = vmatpush3.bf16.msra.mxu0 %v4542_v39  ;;  %v3910_v10 = vld [vmem:[%s5619_s21] ss:$0 sm:$0xff]  ;;  %v4546_v59 = vld [vmem:[%s5674_s6 + $0x8] sm:$0xff]   ;;  %v4623_v40 = vmov 1966171168   ;;  %vm3644_vm0 = vcmask 73728  }
0x1105   : > { %v3407_v8 = vsel %vm3406_vm14, %v3404_v5, 0.0  ;;  %4236 = vmatprep.subr.bf16.mxu0 %v4621_v52  ;;  %4250 = vmatprep.mubr.msk.bf16.mxu1 %vm4622_vm15, %v4621_v52  ;;  %v4547_v15 = vld [vmem:[%s5674_s6] sm:$0xff]   ;;  %v3621_v42 = vunpack.c.l.s4 %v4623_v40 }
0x1106   : > { %3408 = vadd.xlane.f32.xlu0 %v3407_v8  ;;  %4243 = vmatpush3.bf16.msra.mxu1 %v4544_v37  ;;  %v3911_v11 = vld [vmem:[%s5675_s12] ss:$0 sm:$0xff] }
0x1107   : > { %4244 = vmatprep.subr.bf16.mxu1 %v4621_v52  ;;  %v3622_v14 = vunpack.c.0.s8 %v3621_v42  ;;  %v3915_v2 = vld [vmem:[%s5676_s3] ss:$0 sm:$0xff] }
0x1108   : > { %4237 = vmatpush3.bf16.msra.mxu0 %v4543_v34 }
0x1109   : > { %v3625_v61 = vsub.s32 %v3622_v14, %v3624_v3 }
0x110a   : > { %4245 = vmatpush3.bf16.msra.mxu1 %v4545_v49 }
0x110b   : > { %4246 = vmatprep.subr.bf16.mxu1 %v4621_v52 }
0x110e   : > { %4247 = vmatpush3.bf16.msra.mxu1 %v4546_v59 }
0x110f   : > { %4248 = vmatprep.subr.bf16.mxu1 %v4621_v52 }
0x1112   : > { %4249 = vmatpush3.bf16.msra.mxu1 %v4547_v15 }
0x118f   : > { %v3409_v41 = vpop.xlane.xlu0 %3408 }
0x1190   : > { %v3410_v30 = vmul.f32 0.03125, %v3409_v41 }
0x1192   : > { %v3412_v48 = vrot.slane %v3410_v30, 1  ;;  %v3415_v50 = vsub.f32 %v3382_v28, %v3410_v30 }
0x1194   : > { %v3416_v44 = vsub.f32 %v3385_v56, %v3412_v48  ;;  %v3417_v9 = vmul.f32 %v3415_v50, %v3415_v50 }
0x1196   : > { %v3418_v43 = vmul.f32 %v3416_v44, %v3416_v44 }
0x1198   : > { %v3421_v6 = vrot.slane %v3418_v43, 7 }
0x119a   : > { %v3422_v63 = vsel %vm3403_vm13, %v3421_v6, %v3417_v9 }
0x119b   : > { %v3424_v31 = vsel %vm3406_vm14, %v3422_v63, 0.0 }
0x119c   : > { %3425 = vadd.xlane.f32.xlu0 %v3424_v31 }
0x1225   : > { %v3426_v62 = vpop.xlane.xlu0 %3425 }
0x1226   : > { %v3427_v54 = vmul.f32 0.03125, %v3426_v62 }
0x1228   : > { %v3428_v35 = vadd.f32 1e-05, %v3427_v54 }
0x122a   : > { %4548 = vrsqrt.f32 %v3428_v35 }
0x1237   : > { %v4549_v23 = vpop.eup %4548 }
0x1238   : > { %v3431_v45 = vrot.slane %v4549_v23, 1  ;;  %v3434_v12 = vmul.f32 %v4549_v23, %v3415_v50 }
0x123a   : > { %v3435_v18 = vmul.f32 %v3431_v45, %v3416_v44  ;;  %v3442_v33 = vmul.f32 %v3909_v26, %v3434_v12 }
0x123c   : > { %v3443_v51 = vmul.f32 %v3909_v26, %v3435_v18  ;;  %v3450_v46 = vadd.f32 %v3910_v10, %v3442_v33 }
0x123e   : > { %v3451_v29 = vadd.f32 %v3910_v10, %v3443_v51  ;;  %v3452_v47 = vpack.c.bf16 %v3450_v46, %v3450_v46 }
0x1240   : > { %v3453_v13 = vpack.c.bf16 %v3451_v29, %v3451_v29  ;;  %v3467_v24 = vunpack.c.l.b16 %v3452_v47 }
0x1242   : > { %v3468_v20 = vunpack.c.l.b16 %v3453_v13 }
0x1244   : > { %v3469_v1 = vrot.slane %v3468_v20, 7 }
0x1246   : > { %v3470_v22 = vsel %vm3403_vm13, %v3469_v1, %v3467_v24 }
0x1247   : > { %v3471_v27 = vpack.c.b16 %v3470_v22, %v3470_v22 }
0x1249   : > { %4239 = vmatmul.mubr.msk.bf16.vlgmr.msra.gmra.mxu0 %vm1265_vm5, %v3471_v27 }
0x1309   : > { %v3521_v19 = vpop.f32.mrf.mxu0 }
0x130a   : > { %v3522_v28 = vadd.f32 %v3911_v11, %v3521_v19 }
0x130b   : > { %v4240_v60 = vpop.f32.mrf.mxu0 }
0x130c   : > { %v3528_v55 = vmul.f32 %v3522_v28, %v3522_v28  ;;  %v3527_v21 = vmul.f32 0.5, %v3522_v28 }
0x130d   : > { %v3524_v25 = vpop.f32.mrf.mxu0 }
0x130e   : > { %v3529_v57 = vmul.f32 %v3528_v55, %v3522_v28 }
0x130f   : > { %v4241_v58 = vpop.f32.mrf.mxu0 }
0x1310   : > { %v3530_v38 = vmul.f32 0.044715, %v3529_v57 }
0x1312   : > { %v3531_v32 = vadd.f32 %v3530_v38, %v3522_v28 }
0x1314   : > { %v3532_v53 = vmul.f32 0.7978846, %v3531_v32 }
0x1316   : > { %4550 = vtanh.f32 %v3532_v53 }
0x1323   : > { %v4551_v36 = vpop.eup %4550 }
0x1324   : > { %v3534_v16 = vadd.f32 1.0, %v4551_v36 }
0x1326   : > { %v3535_v56 = vmul.f32 %v3534_v16, %v3527_v21 }
0x1328   : > { %v3536_v4 = vpack.c.bf16 %v3535_v56, %v3535_v56 }
0x132a   : > { %4251 = vmatmul.mubr.msk.bf16.vlgmr.msra.gmra.mxu1 %vm3315_vm12, %v3536_v4 }
0x13ea   : > { %v3613_v0 = vpop.f32.mrf.mxu1 }
0x13eb   : > { %v3614_v17 = vadd.f32 %v3915_v2, %v3613_v0 }
0x13ec   : > { %v4252_v5 = vpop.f32.mrf.mxu1 }
0x13ed   : > { %v3626_v8 = vrot.slane %v3614_v17, %v3625_v61 }
0x13ee   : > { %v3616_v41 = vpop.f32.mrf.mxu1 }
0x13ef   : > { %v3627_v30 = vcombine.high %v3626_v8, %v3626_v8  ;;  %v3634_v48 = vrot.slane %v3626_v8, %v3625_v61 }
0x13f0   : > { %v4253_v50 = vpop.f32.mrf.mxu1 }
0x13f1   : > { %v3641_v44 = vrot.slane %v3627_v30, %v3625_v61  ;;  %3645 = vst.msk [vmem:[#allocation3] sm:$0x1] %vm3644_vm0, %v3634_v48 }
0x13f3   : > { %3646 = vst.msk [vmem:[#allocation3 + $0x1] sm:$0x1] %vm3644_vm0, %v3641_v44 }
0x13f4 PF: > { %s5677_s11 = sld [smem:[#allocation7_spill]]  ;;  %s4624_s7 = smov [#allocation3]  }
0x13f5   : > { %s3656_s5 = sshll.u32 %s4624_s7, 4  ;;  %s3657_s5 = int_to_ptr.vmem [resolvable:$true] %s3656_s5 }
0x13f6   : > { %s4552_s1 = scalar_lea.vmem %s3657_s5, 32  ;;  %p4559_p11 = scmp.lt.s32.totalorder %s3657_s5, %s3657_s5 }
0x13f7   : > { %p4553_p8 = scmp.ne.s32.totalorder %s3657_s5, %s4552_s1  ;;  %p4560_p12 = scmp.lt.s32.totalorder %s4552_s1, %s4552_s1 }
0x13f9   : > { %p4561_p13 = por %p4560_p12, %p4559_p11 }
0x13fa   : > { %s5678_s24 = sadd.s32 4294967295, %s5677_s11  }
0x13fb   : > { %p5572_p7 = scmp.eq.s32.totalorder %s5678_s24, 1 }
0x13fd   : > { %p4554_p9 = pnand %p4553_p8, %p5572_p7 }
0x13ff   : > { %p4555_p10 = pneg %p4554_p9 }
0x1401   : > { %p4562_p0 = pnand %p4561_p13, %p4555_p10 }
0x1403   : > { %4565 = shalt.err (!%p4562_p0)
}
0x1404   : > { %s4625_s2 = smov 1   ;;  %s5680_s27 = sld [smem:[#allocation25_spill]] }
0x140a   : > { %4279 = dma.vmem_to_hbm [thread:$0]  (%p5572_p7), %s3657_s5, 32, %s5680_s27, [#allocation4], %s4619_s26, %s4619_s26, %s4625_s2  }
0x140b   : > { %4589 = dma.done.wait (%p5572_p7), [#allocation4], 32  }
0x140c   : > { %4591 = vsyncadd (%p5572_p7), [#allocation4], 4294967264 }
0x140d PF: > { %s5681_s4 = sld [smem:[#allocation7_spill]] }
0x140e   : > { %s5682_s27 = sld [smem:[#allocation6_spill]] }
0x140f   : > { %s5683_s3 = sld [smem:[#allocation8_spill]] }
0x1413   : > { %s37_s7 = sadd.s32 1, %s5681_s4  }
0x1414   : > { %p34_p1 = scmp.ge.s32.totalorder %s37_s7, 4  }
0x1416   :  { %36 = sbr.rel (!%p34_p1) target bundleno = 20 (0x14), region = 193 }
0x141b   :  { %3672 = vsyncpa [#allocation4], 1 }
0x141c   :  { %3674 = vsyncpa [#allocation4 + $0x1], 1 }

</bundles_post_ra>
